<compile_context>
chip_gen: v7x
topology: tpu7x:2x2x1
jax: 0.10.0
libtpu: 0.0.40
codegen_flags: <defaults>
</compile_context>

<pallas_src>
import numpy as np
import jax
import jax.numpy as jnp
from jax.experimental import pallas as pl
from jax.experimental.pallas import tpu as pltpu

EPS = 1e-5
GROUPS = 4
IN_CHANNELS = 3
OUT_CHANNELS = 16
KERNEL_SIZE = 3
PADDING = 1
STRIDE = 2
CG = OUT_CHANNELS // GROUPS
NSUB = 8                          # 2^3 output-parity classes (sub-pixel decomposition)
R = NSUB * OUT_CHANNELS           # 128 rows of the fused matmul output
KDIM = IN_CHANNELS * 8            # 24 = Cin * (2-tap window per spatial dim); f32 sublane-aligned


# ----------------------- fused Pallas kernel -----------------------

def fused_kernel(a_ref, w_ref, b_ref, g_ref, bt_ref, pmix_ref, mask_ref, o_ref):
    # a_ref   : (1, KDIM, M)  compact im2col for one sample (2-tap stride-1 windows)
    # w_ref   : (R, KDIM)     sub-pixel-decomposed conv weight, rows = (parity, Cout)
    # b_ref, g_ref, bt_ref : (R, 1)  conv bias / GN gamma / GN beta, tiled per parity class
    # pmix_ref: (R, R)        group-mixing matrix, pre-scaled by 1/(CG*OD*OH*OW)
    # mask_ref: (R, M)        1.0 where (parity, grid position) maps to a real output voxel
    # o_ref   : (1, R, M)
    z = jnp.dot(w_ref[...], a_ref[0], preferred_element_type=jnp.float32)   # (R, M)
    z = z + b_ref[...]
    y = z * (1.0 / (1.0 + jnp.exp(-z)))                                     # Swish

    # --- GroupNorm, single pass over real (un-cropped) output positions only ---
    ym = y * mask_ref[...]
    row_sum = jnp.sum(ym, axis=1, keepdims=True)           # (R, 1)
    row_sumsq = jnp.sum(ym * y, axis=1, keepdims=True)     # (R, 1)  (mask is 0/1)
    mean = jnp.dot(pmix_ref[...], row_sum, preferred_element_type=jnp.float32)   # already /count
    ex2 = jnp.dot(pmix_ref[...], row_sumsq, preferred_element_type=jnp.float32)
    var = jnp.maximum(ex2 - mean * mean, 0.0)               # guard against f32 cancellation
    inv = jax.lax.rsqrt(var + EPS)
    scale = inv * g_ref[...]                                # (R, 1)
    shift = bt_ref[...] - mean * scale                      # (R, 1)
    yn = y * scale + shift

    # --- HardSwish ---
    o_ref[0] = yn * jnp.clip(yn + 3.0, 0.0, 6.0) * (1.0 / 6.0)


# ----------------------- wrapper -----------------------

def model_forward(x, w, bias, gamma, beta):
    """ConvTranspose3d -> Swish -> GroupNorm -> HardSwish fused into one pallas_call."""
    N, Cin, D, H, W = x.shape
    Cout = OUT_CHANNELS
    K, S, P = KERNEL_SIZE, STRIDE, PADDING
    OD = (D - 1) * S - 2 * P + K
    OH = (H - 1) * S - 2 * P + K
    OW = (W - 1) * S - 2 * P + K
    assert (OD, OH, OW) == (2 * D - 1, 2 * H - 1, 2 * W - 1)   # parity decomposition assumes this
    M = D * H * W

    # ---- compact im2col: output voxel 2a+b only needs inputs {a, a+1} per dim ----
    # TODO(synk): the 8-view patch stack and final parity de-interleave stay in XLA; in-kernel
    # gather/scatter of these non-(8,128)-aligned 3-D views is not worth the lowering risk.
    xe = jnp.pad(x, ((0, 0), (0, 0), (0, 1), (0, 1), (0, 1)))
    patches = [xe[:, :, jd:jd + D, jh:jh + H, jw:jw + W]
               for jd in range(2) for jh in range(2) for jw in range(2)]
    A = jnp.stack(patches, axis=2).reshape(N, KDIM, M)          # (N, 24, M), M lane-aligned

    # ---- sub-pixel weight: W_all[(bd,bh,bw,co), (ci,jd,jh,jw)] ----
    # parity b, tap j -> kernel index k: (0,0)->1 ; (1,0)->2 ; (1,1)->0 ; (0,1) invalid (zeroed)
    kidx = jnp.array([[1, 0], [2, 0]], dtype=jnp.int32)
    vmask = jnp.array([[1.0, 0.0], [1.0, 1.0]], dtype=jnp.float32)
    wt = jnp.transpose(w, (1, 0, 2, 3, 4))                      # (Cout, Cin, K, K, K)
    wg = jnp.take(wt, kidx.reshape(-1), axis=2).reshape(Cout, Cin, 2, 2, K, K)
    wg = jnp.take(wg, kidx.reshape(-1), axis=4).reshape(Cout, Cin, 2, 2, 2, 2, K)
    wg = jnp.take(wg, kidx.reshape(-1), axis=6).reshape(Cout, Cin, 2, 2, 2, 2, 2, 2)
    # axes: (co, ci, bd, jd, bh, jh, bw, jw)
    wg = (wg * vmask[None, None, :, :, None, None, None, None]
             * vmask[None, None, None, None, :, :, None, None]
             * vmask[None, None, None, None, None, None, :, :])
    W_all = jnp.transpose(wg, (2, 4, 6, 0, 1, 3, 5, 7)).reshape(R, KDIM)

    # ---- per-row (parity, channel) constants ----
    b_row = jnp.tile(bias, NSUB).reshape(R, 1)
    gm_row = jnp.tile(gamma, NSUB).reshape(R, 1)
    bt_row = jnp.tile(beta, NSUB).reshape(R, 1)

    # group-mixing matrix (hoisted out of the kernel), pre-scaled by 1/group element count
    grp = (np.arange(R) % Cout) // CG
    pmix_np = (grp[:, None] == grp[None, :]).astype(np.float32) / np.float32(CG * OD * OH * OW)
    pmix = jnp.asarray(pmix_np, dtype=jnp.float32)

    # crop mask: parity-b voxel at grid position a is a real output iff 2a+b < O
    def valid_1d(n, o):
        a = np.arange(n)
        return np.stack([2 * a + 0 < o, 2 * a + 1 < o], axis=0)     # (2, n)
    vd, vh, vw = valid_1d(D, OD), valid_1d(H, OH), valid_1d(W, OW)
    m6 = (vd[:, None, None, :, None, None]
          & vh[None, :, None, None, :, None]
          & vw[None, None, :, None, None, :])                       # (2,2,2,D,H,W)
    mask_np = np.broadcast_to(m6.reshape(NSUB, 1, M), (NSUB, Cout, M)).reshape(R, M)
    mask = jnp.asarray(mask_np.astype(np.float32))

    out = pl.pallas_call(
        fused_kernel,
        out_shape=jax.ShapeDtypeStruct((N, R, M), jnp.float32),
        grid=(N,),
        in_specs=[
            pl.BlockSpec((1, KDIM, M), lambda n: (n, 0, 0)),
            pl.BlockSpec((R, KDIM), lambda n: (0, 0)),
            pl.BlockSpec((R, 1), lambda n: (0, 0)),
            pl.BlockSpec((R, 1), lambda n: (0, 0)),
            pl.BlockSpec((R, 1), lambda n: (0, 0)),
            pl.BlockSpec((R, R), lambda n: (0, 0)),
            pl.BlockSpec((R, M), lambda n: (0, 0)),
        ],
        out_specs=pl.BlockSpec((1, R, M), lambda n: (n, 0, 0)),
        compiler_params=pltpu.CompilerParams(dimension_semantics=("parallel",)),
    )(A, W_all, b_row, gm_row, bt_row, pmix, mask)

    # ---- parity de-interleave (pixel-shuffle) back to NCDHW and crop ----
    z8 = out.reshape(N, 2, 2, 2, Cout, D, H, W)                  # (n, bd, bh, bw, co, ad, ah, aw)
    y = jnp.transpose(z8, (0, 4, 5, 1, 6, 2, 7, 3)).reshape(N, Cout, 2 * D, 2 * H, 2 * W)
    return y[:, :, :OD, :OH, :OW]


# ----------------------- pure-JAX reference -----------------------

def reference(x, w, bias, gamma, beta):
    K, S, P = KERNEL_SIZE, STRIDE, PADDING
    w_flip = jnp.flip(w, axis=(2, 3, 4))                # (Cin, Cout, K, K, K)
    y = jax.lax.conv_general_dilated(
        x, jnp.transpose(w_flip, (1, 0, 2, 3, 4)),
        window_strides=(1, 1, 1),
        padding=[(K - 1 - P, K - 1 - P)] * 3,
        lhs_dilation=(S, S, S),
        dimension_numbers=('NCDHW', 'OIDHW', 'NCDHW'),
        precision=jax.lax.Precision.HIGHEST)
    y = y + bias.reshape(1, -1, 1, 1, 1)
    y = y * jax.nn.sigmoid(y)
    N, C = y.shape[:2]
    spatial = y.shape[2:]
    yg = y.reshape(N, GROUPS, C // GROUPS, -1)
    mean = yg.mean(axis=(2, 3), keepdims=True)
    var = ((yg - mean) ** 2).mean(axis=(2, 3), keepdims=True)
    yn = (yg - mean) / jnp.sqrt(var + EPS)
    yn = yn.reshape(N, C, *spatial)
    yn = yn * gamma.reshape(1, -1, 1, 1, 1) + beta.reshape(1, -1, 1, 1, 1)
    return yn * jnp.clip(yn + 3.0, 0.0, 6.0) / 6.0


# ----------------------- main -----------------------

if __name__ == "__main__":
    key = jax.random.PRNGKey(0)
    k_x, k_w, k_b, k_g, k_bt = jax.random.split(key, 5)

    N, D = 2, 8                                         # small shapes
    x = jax.random.normal(k_x, (N, IN_CHANNELS, D, D, D), dtype=jnp.float32)

    # Deterministic parameter init (shapes match nn.ConvTranspose3d / nn.GroupNorm).
    fan = IN_CHANNELS * KERNEL_SIZE ** 3
    w = jax.random.normal(k_w, (IN_CHANNELS, OUT_CHANNELS, KERNEL_SIZE, KERNEL_SIZE, KERNEL_SIZE),
                          dtype=jnp.float32) * (1.0 / np.sqrt(fan))
    bias = jax.random.normal(k_b, (OUT_CHANNELS,), dtype=jnp.float32) * 0.05
    gamma = 1.0 + 0.1 * jax.random.normal(k_g, (OUT_CHANNELS,), dtype=jnp.float32)
    beta = 0.1 * jax.random.normal(k_bt, (OUT_CHANNELS,), dtype=jnp.float32)

    out = jax.block_until_ready(model_forward(x, w, bias, gamma, beta))
    ref = jax.block_until_ready(reference(x, w, bias, gamma, beta))
    assert out.shape == ref.shape, (out.shape, ref.shape)

    max_err = float(jnp.max(jnp.abs(out - ref)))
    if not np.allclose(np.asarray(out), np.asarray(ref), rtol=1e-2, atol=1e-2):
        raise AssertionError(f"mismatch vs reference, max abs err = {max_err}")

    print("KERNEL_OK")
</pallas_src>

<mosaic_0001>
module attributes {stable_mosaic.version = 11 : i64} {
  func.func @fused_kernel(%arg0: i32, %arg1: memref<1x24x512xf32, #tpu.memory_space<vmem>>, %arg2: memref<128x24xf32, #tpu.memory_space<vmem>>, %arg3: memref<128x1xf32, #tpu.memory_space<vmem>>, %arg4: memref<128x1xf32, #tpu.memory_space<vmem>>, %arg5: memref<128x1xf32, #tpu.memory_space<vmem>>, %arg6: memref<128x128xf32, #tpu.memory_space<vmem>>, %arg7: memref<128x512xf32, #tpu.memory_space<vmem>>, %arg8: memref<1x128x512xf32, #tpu.memory_space<vmem>>) attributes {dimension_semantics = [#tpu.dimension_semantics<parallel>], iteration_bounds = array<i64: 2>, scalar_prefetch = 0 : i64, scratch_operands = 0 : i64, tpu.core_type = #tpu.core_type<tc>, window_params = [{transform_indices = @transform_0, window_bounds = array<i64: 1, 24, 512>}, {pipeline_mode = #tpu.pipeline_mode<synchronous>, transform_indices = @transform_1, window_bounds = array<i64: 128, 24>}, {pipeline_mode = #tpu.pipeline_mode<synchronous>, transform_indices = @transform_2, window_bounds = array<i64: 128, 1>}, {pipeline_mode = #tpu.pipeline_mode<synchronous>, transform_indices = @transform_3, window_bounds = array<i64: 128, 1>}, {pipeline_mode = #tpu.pipeline_mode<synchronous>, transform_indices = @transform_4, window_bounds = array<i64: 128, 1>}, {pipeline_mode = #tpu.pipeline_mode<synchronous>, transform_indices = @transform_5, window_bounds = array<i64: 128, 128>}, {pipeline_mode = #tpu.pipeline_mode<synchronous>, transform_indices = @transform_6, window_bounds = array<i64: 128, 512>}, {transform_indices = @transform_7, window_bounds = array<i64: 1, 128, 512>}]} {
    %c0 = arith.constant 0 : index
    %c0_0 = arith.constant 0 : index
    %0 = vector.load %arg2[%c0, %c0_0] : memref<128x24xf32, #tpu.memory_space<vmem>>, vector<128x24xf32>
    %c0_1 = arith.constant 0 : index
    %c0_2 = arith.constant 0 : index
    %c0_3 = arith.constant 0 : index
    %1 = vector.load %arg1[%c0_1, %c0_2, %c0_3] : memref<1x24x512xf32, #tpu.memory_space<vmem>>, vector<1x24x512xf32>
    %2 = vector.shape_cast %1 : vector<1x24x512xf32> to vector<24x512xf32>
    %cst = arith.constant dense<0.000000e+00> : vector<128x512xf32>
    %3 = tpu.matmul %0, %2, %cst {dimension_numbers = #tpu.dot_dimension_numbers<[1], [0], [0], [1], [0, 0, 1, 1], [], []>} : vector<128x24xf32>, vector<24x512xf32>, vector<128x512xf32> -> vector<128x512xf32>
    %c0_4 = arith.constant 0 : index
    %c0_5 = arith.constant 0 : index
    %4 = vector.load %arg3[%c0_4, %c0_5] : memref<128x1xf32, #tpu.memory_space<vmem>>, vector<128x1xf32>
    %5 = vector.broadcast %4 : vector<128x1xf32> to vector<128x512xf32>
    %6 = arith.addf %3, %5 : vector<128x512xf32>
    %cst_6 = arith.constant 0.000000e+00 : f32
    %7 = vector.broadcast %cst_6 : f32 to vector<128x512xf32>
    %8 = arith.subf %7, %6 : vector<128x512xf32>
    %9 = math.exp %8 : vector<128x512xf32>
    %cst_7 = arith.constant 1.000000e+00 : f32
    %10 = vector.broadcast %cst_7 : f32 to vector<128x512xf32>
    %11 = arith.addf %10, %9 : vector<128x512xf32>
    %cst_8 = arith.constant 1.000000e+00 : f32
    %12 = vector.broadcast %cst_8 : f32 to vector<128x512xf32>
    %13 = arith.divf %12, %11 : vector<128x512xf32>
    %14 = arith.mulf %6, %13 : vector<128x512xf32>
    %c0_9 = arith.constant 0 : index
    %c0_10 = arith.constant 0 : index
    %15 = vector.load %arg7[%c0_9, %c0_10] : memref<128x512xf32, #tpu.memory_space<vmem>>, vector<128x512xf32>
    %16 = arith.mulf %14, %15 : vector<128x512xf32>
    %cst_11 = arith.constant dense<0.000000e+00> : vector<128xf32>
    %17 = vector.multi_reduction <add>, %16, %cst_11 [1] : vector<128x512xf32> to vector<128xf32>
    %18 = vector.shape_cast %17 : vector<128xf32> to vector<128x1xf32>
    %19 = arith.mulf %16, %14 : vector<128x512xf32>
    %cst_12 = arith.constant dense<0.000000e+00> : vector<128xf32>
    %20 = vector.multi_reduction <add>, %19, %cst_12 [1] : vector<128x512xf32> to vector<128xf32>
    %21 = vector.shape_cast %20 : vector<128xf32> to vector<128x1xf32>
    %c0_13 = arith.constant 0 : index
    %c0_14 = arith.constant 0 : index
    %22 = vector.load %arg6[%c0_13, %c0_14] : memref<128x128xf32, #tpu.memory_space<vmem>>, vector<128x128xf32>
    %cst_15 = arith.constant dense<0.000000e+00> : vector<128x1xf32>
    %23 = tpu.matmul %22, %18, %cst_15 {dimension_numbers = #tpu.dot_dimension_numbers<[1], [0], [0], [1], [0, 0, 1, 1], [], []>} : vector<128x128xf32>, vector<128x1xf32>, vector<128x1xf32> -> vector<128x1xf32>
    %c0_16 = arith.constant 0 : index
    %c0_17 = arith.constant 0 : index
    %24 = vector.load %arg6[%c0_16, %c0_17] : memref<128x128xf32, #tpu.memory_space<vmem>>, vector<128x128xf32>
    %cst_18 = arith.constant dense<0.000000e+00> : vector<128x1xf32>
    %25 = tpu.matmul %24, %21, %cst_18 {dimension_numbers = #tpu.dot_dimension_numbers<[1], [0], [0], [1], [0, 0, 1, 1], [], []>} : vector<128x128xf32>, vector<128x1xf32>, vector<128x1xf32> -> vector<128x1xf32>
    %26 = arith.mulf %23, %23 : vector<128x1xf32>
    %27 = arith.subf %25, %26 : vector<128x1xf32>
    %cst_19 = arith.constant 0.000000e+00 : f32
    %28 = vector.broadcast %cst_19 : f32 to vector<128x1xf32>
    %29 = arith.maximumf %27, %28 : vector<128x1xf32>
    %cst_20 = arith.constant 9.99999974E-6 : f32
    %30 = vector.broadcast %cst_20 : f32 to vector<128x1xf32>
    %31 = arith.addf %29, %30 : vector<128x1xf32>
    %32 = math.rsqrt %31 : vector<128x1xf32>
    %c0_21 = arith.constant 0 : index
    %c0_22 = arith.constant 0 : index
    %33 = vector.load %arg4[%c0_21, %c0_22] : memref<128x1xf32, #tpu.memory_space<vmem>>, vector<128x1xf32>
    %34 = arith.mulf %32, %33 : vector<128x1xf32>
    %c0_23 = arith.constant 0 : index
    %c0_24 = arith.constant 0 : index
    %35 = vector.load %arg5[%c0_23, %c0_24] : memref<128x1xf32, #tpu.memory_space<vmem>>, vector<128x1xf32>
    %36 = arith.mulf %23, %34 : vector<128x1xf32>
    %37 = arith.subf %35, %36 : vector<128x1xf32>
    %38 = vector.broadcast %34 : vector<128x1xf32> to vector<128x512xf32>
    %39 = arith.mulf %14, %38 : vector<128x512xf32>
    %40 = vector.broadcast %37 : vector<128x1xf32> to vector<128x512xf32>
    %41 = arith.addf %39, %40 : vector<128x512xf32>
    %cst_25 = arith.constant 3.000000e+00 : f32
    %42 = vector.broadcast %cst_25 : f32 to vector<128x512xf32>
    %43 = arith.addf %41, %42 : vector<128x512xf32>
    %cst_26 = arith.constant 0.000000e+00 : f32
    %cst_27 = arith.constant 6.000000e+00 : f32
    %44 = vector.broadcast %cst_26 : f32 to vector<128x512xf32>
    %45 = arith.maximumf %44, %43 : vector<128x512xf32>
    %46 = vector.broadcast %cst_27 : f32 to vector<128x512xf32>
    %47 = arith.minimumf %46, %45 : vector<128x512xf32>
    %48 = arith.mulf %41, %47 : vector<128x512xf32>
    %cst_28 = arith.constant 0.166666672 : f32
    %49 = vector.broadcast %cst_28 : f32 to vector<128x512xf32>
    %50 = arith.mulf %48, %49 : vector<128x512xf32>
    %c0_29 = arith.constant 0 : index
    %c0_30 = arith.constant 0 : index
    %c0_31 = arith.constant 0 : index
    %51 = vector.load %arg8[%c0_29, %c0_30, %c0_31] : memref<1x128x512xf32, #tpu.memory_space<vmem>>, vector<1x128x512xf32>
    %52 = vector.shape_cast %51 : vector<1x128x512xf32> to vector<128x512xf32>
    %53 = vector.shape_cast %50 : vector<128x512xf32> to vector<1x128x512xf32>
    tpu.vector_store %arg8[%c0_29, %c0_30, %c0_31], %53 {strides = array<i32>} : memref<1x128x512xf32, #tpu.memory_space<vmem>>, vector<1x128x512xf32>,
    return
  }
  func.func @transform_0(%arg0: i32) -> (i32, i32, i32) {
    %c0_i32 = arith.constant 0 : i32
    %c0_i32_0 = arith.constant 0 : i32
    %c0_i32_1 = arith.constant 0 : i32
    return %arg0, %c0_i32, %c0_i32_0 : i32, i32, i32
  }
  func.func @transform_1(%arg0: i32) -> (i32, i32) {
    %c0_i32 = arith.constant 0 : i32
    %c0_i32_0 = arith.constant 0 : i32
    %c0_i32_1 = arith.constant 0 : i32
    return %c0_i32, %c0_i32_0 : i32, i32
  }
  func.func @transform_2(%arg0: i32) -> (i32, i32) {
    %c0_i32 = arith.constant 0 : i32
    %c0_i32_0 = arith.constant 0 : i32
    %c0_i32_1 = arith.constant 0 : i32
    return %c0_i32, %c0_i32_0 : i32, i32
  }
  func.func @transform_3(%arg0: i32) -> (i32, i32) {
    %c0_i32 = arith.constant 0 : i32
    %c0_i32_0 = arith.constant 0 : i32
    %c0_i32_1 = arith.constant 0 : i32
    return %c0_i32, %c0_i32_0 : i32, i32
  }
  func.func @transform_4(%arg0: i32) -> (i32, i32) {
    %c0_i32 = arith.constant 0 : i32
    %c0_i32_0 = arith.constant 0 : i32
    %c0_i32_1 = arith.constant 0 : i32
    return %c0_i32, %c0_i32_0 : i32, i32
  }
  func.func @transform_5(%arg0: i32) -> (i32, i32) {
    %c0_i32 = arith.constant 0 : i32
    %c0_i32_0 = arith.constant 0 : i32
    %c0_i32_1 = arith.constant 0 : i32
    return %c0_i32, %c0_i32_0 : i32, i32
  }
  func.func @transform_6(%arg0: i32) -> (i32, i32) {
    %c0_i32 = arith.constant 0 : i32
    %c0_i32_0 = arith.constant 0 : i32
    %c0_i32_1 = arith.constant 0 : i32
    return %c0_i32, %c0_i32_0 : i32, i32
  }
  func.func @transform_7(%arg0: i32) -> (i32, i32, i32) {
    %c0_i32 = arith.constant 0 : i32
    %c0_i32_0 = arith.constant 0 : i32
    %c0_i32_1 = arith.constant 0 : i32
    return %arg0, %c0_i32, %c0_i32_0 : i32, i32, i32
  }
}

</mosaic_0001>

<bundles_post_ra>
// kernel: tpu_custom_call.1
= control target key start
LH: loop header
LB: loop body
LE: loop exit
PB: predicated region body
PF: predicated region fallthrough
CT: control target
= control target key end

     0   :  { %s5561_s0 = inlined_call_operand.hbm [shape: f32[2,24,512], index: 0, kind: input, shape index: {}]   ;;  %s5562_s1 = inlined_call_operand.vmem [shape: f32[128,24], index: 1, kind: input, shape index: {}]   ;;  %s5563_s2 = inlined_call_operand.vmem [shape: f32[128,1], index: 2, kind: input, shape index: {}]   ;;  %s5564_s3 = inlined_call_operand.vmem [shape: f32[128,1], index: 3, kind: input, shape index: {}]   ;;  %s5565_s4 = inlined_call_operand.vmem [shape: f32[128,1], index: 4, kind: input, shape index: {}]   ;;  %s5566_s5 = inlined_call_operand.hbm [shape: f32[128,128], index: 5, kind: input, shape index: {}]   ;;  %s5567_s6 = inlined_call_operand.vmem [shape: f32[128,512], index: 6, kind: input, shape index: {}]   ;;  %s5568_s7 = inlined_call_operand.hbm [shape: f32[2,128,512], index: 7, kind: output, shape index: {}]  }
   0x1   :  { %5640 = sst [smem:[#allocation76_spill]] %s5566_s5 }
   0x2   :  { %12 = vsyncpa [#allocation3], 0 }
   0x3   :  { %14 = vsyncpa [#allocation3 + $0x1], 0 }
   0x4   :  { %15 = vsyncpa [#allocation6], 0 }
   0x5   :  { %16 = vsyncpa [#allocation4], 0 }
   0x6   :  { %18 = vsyncpa [#allocation4 + $0x1], 0  ;;  %s3675_s24 = smov 0   ;;  %s3677_s25 = smov 0  }
   0x7   :  { %s3679_s26 = smov 0   ;;  %s3681_s27 = smov 0  }
   0x8 LB: > { %s3696_s28 = sadd.s32 4294967295, %s3622_s27   ;;  %s2842_s29 = sadd.s32 4294967294, %s3622_s27   ;;  %s3622_s27 = sphi %s3681_s27, %s5851_s27   ;;  %s3618_s26 = sphi %s3679_s26, %s5850_s26   ;;  %s3614_s25 = sphi %s3677_s25, %s5849_s25   ;;  %s3610_s24 = sphi %s3675_s24, %s5848_s24  }
   0x9   : > { %p44_p0 = scmp.ne.s32.totalorder %s3614_s25, %s3610_s24  ;;  %p5569_p1 = scmp.eq.s32.totalorder %s3696_s28, 0 }
   0xa   : > { %p200_p3 = scmp.eq.s32.totalorder %s2842_s29, 1  ;;  %p2843_p5 = scmp.ge.s32.totalorder %s3622_s27, 1 }
   0xb   : > { %p3705_p4 = por %p5569_p1, %p44_p0  ;;  %p207_p7 = scmp.lt.s32.totalorder %s3622_s27, 3 }
   0xc   : > { %p3710_p6 = por %p200_p3, %p44_p0  ;;  %s3624_s10 = smov [#allocation5]  }
   0xd   : > { %s5641_s30 = scalar_select %p3705_p4, 1, 0 }
   0xe   : > { %s5642_s8 = scalar_select %p3710_p6, 1, 0 }
   0xf   : > { %p3715_p8 = pnand %p2843_p5, %p207_p7  ;;  %s231_s11 = sshll.u32 %s3624_s10, 4  ;;  %s3719_s11 = int_to_ptr.vmem [resolvable:$true] %s231_s11 }
  0x10   : > { %s3731_s13 = sadd.s32 1, %s3622_s27   ;;  %s31_s14 = sadd.s32 1, %s3618_s26 }
  0x11   : > { %s5643_s9 = scalar_select %p3715_p8, 1, 0 }
  0x12   : > { %p3147_p9 = pneg %p3715_p8  ;;  %s28_s15 = ssub.s32 %s3622_s27, %s3731_s13 }
  0x13   : > { %s5645_s5 = sld [smem:[#allocation76_spill]] }
  0x14   : > { %p3726_p11 = pnand %p3147_p9, %p5569_p1 }
  0x16   : > { %p3496_p13 = pneg %p3726_p11 }
  0x19   : > { %s3494_s18 = scalar_lea.hbm %s5645_s5, 2048 }
  0x1a   : > { %p3495_p12 = scmp.ne.s32.totalorder %s5645_s5, %s3494_s18  ;;  %p3501_p5 = scmp.lt.u32.totalorder %s3494_s18, %s5645_s5 }
  0x1c   : > { %p3497_p0 = pnand %p3496_p13, %p3495_p12 }
  0x1e   : > { %p3498_p3 = pneg %p3497_p0 }
  0x20   : > { %p3503_p7 = pnand %p3501_p5, %p3498_p3 }
  0x22   : > { %3506 = shalt.err (!%p3503_p7)
}
  0x23   : > { %s3507_s23 = scalar_lea.vmem %s3719_s11, 2048  ;;  %p3515_p2 = scmp.lt.s32.totalorder %s3719_s11, %s3719_s11 }
  0x24   : > { %p3508_p9 = scmp.ne.s32.totalorder %s3719_s11, %s3507_s23  ;;  %p3516_p6 = scmp.lt.s32.totalorder %s3507_s23, %s3507_s23 }
  0x26   : > { %p3510_p10 = pnand %p3508_p9, %p3496_p13  ;;  %p3517_p4 = por %p3516_p6, %p3515_p2 }
  0x28   : > { %p3511_p1 = pneg %p3510_p10 }
  0x2a   : > { %p3518_p8 = pnand %p3517_p4, %p3511_p1 }
  0x2c   : > { %3521 = shalt.err (!%p3518_p8)
}
  0x2d   : > { %s3625_s29 = smov 128   ;;  %s3626_s10 = smov 8  }
  0x2e   : > { %3150 = dma.hbm_to_vmem [thread:$0]  (!%p3726_p11), %s5645_s5, 2048, %s3719_s11, [#allocation6], %s3625_s29, %s3625_s29, %s3626_s10  }
  0x2f   : > { %p29_p2 = scmp.eq.s32.totalorder %s28_s15, 0  ;;  %p38_p1 = scmp.ne.s32.totalorder %s3618_s26, %s3614_s25 }
  0x30   : > { %p39_p4 = scmp.eq.s32.totalorder %s3622_s27, 0  ;;  %p3160_p6 = scmp.lt.s32.totalorder %s3622_s27, 2 }
  0x31   : > { %s3762_s18 = scalar_select %p29_p2, %s3618_s26, %s31_s14  }
  0x32   : > { %p40_p8 = por %p39_p4, %p38_p1  ;;  %p5646_p10 = scmp.eq.s32.totalorder %s3696_s28, 1 }
  0x33   : > { %s248_s20 = sand.u32 1, %s3618_s26   ;;  %s3137_s21 = smul.u32 1536, %s3622_s27 }
  0x34   : > { %p3766_p12 = por %p5646_p10, %p38_p1  ;;  %s3136_s22 = smul.u32 96, %s248_s20 }
  0x35   : > { %s3775_s16 = scalar_lea.hbm %s5561_s0, %s3137_s21  ;;  %p3777_p11 = pnand %p3160_p6, %p40_p8 }
  0x36   : > { %s252_s14 = scalar_lea.vmem [#allocation2], %s3136_s22  ;;  %s3783_s29 = scalar_lea.sflag [#allocation3], %s248_s20 }
  0x37   : > { %s259_s15 = sshll.u32 %s252_s14, 4  ;;  %s3522_s10 = scalar_lea.hbm %s3775_s16, 1536  ;;  %s3781_s15 = int_to_ptr.vmem [resolvable:$true] %s259_s15 }
  0x38   : > { %p3523_p13 = scmp.ne.s32.totalorder %s3775_s16, %s3522_s10  ;;  %p3524_p0 = pneg %p3777_p11 }
  0x39   : > { %s3527_s12 = scalar_lea.hbm %s5561_s0, 3072  ;;  %p3528_p7 = scmp.lt.u32.totalorder %s3775_s16, %s5561_s0 }
  0x3a   : > { %p3525_p3 = pnand %p3524_p0, %p3523_p13  ;;  %p3529_p9 = scmp.lt.u32.totalorder %s3527_s12, %s3522_s10 }
  0x3b   : > { %p3531_p1 = scmp.lt.u32.totalorder %s3522_s10, %s3775_s16 }
  0x3c   : > { %p3526_p5 = pneg %p3525_p3  ;;  %p3530_p2 = por %p3529_p9, %p3528_p7 }
  0x3e   : > { %p3532_p4 = por %p3531_p1, %p3530_p2 }
  0x40   : > { %p3533_p6 = pnand %p3532_p4, %p3526_p5 }
  0x42   : > { %3536 = shalt.err (!%p3533_p6)
}
  0x43   : > { %s3537_s20 = scalar_lea.vmem %s3781_s15, 1536  ;;  %s3627_s22 = smov [#allocation2]  }
  0x44   : > { %p3538_p8 = scmp.ne.s32.totalorder %s3781_s15, %s3537_s20  ;;  %s3542_s14 = sshll.u32 %s3627_s22, 4  ;;  %s3543_s14 = int_to_ptr.vmem [resolvable:$false] %s3542_s14 }
  0x45   : > { %s3544_s5 = scalar_lea.vmem %s3543_s14, 3072  ;;  %p3545_p3 = scmp.lt.s32.totalorder %s3781_s15, %s3543_s14 }
  0x46   : > { %p3540_p10 = pnand %p3538_p8, %p3524_p0  ;;  %p3546_p7 = scmp.lt.s32.totalorder %s3544_s5, %s3537_s20 }
  0x48   : > { %p3541_p13 = pneg %p3540_p10  ;;  %p3547_p9 = por %p3546_p7, %p3545_p3 }
  0x4a   : > { %p3548_p2 = pnand %p3547_p9, %p3541_p13 }
  0x4c   : > { %3551 = shalt.err (!%p3548_p2)
}
  0x4d   : > { %s3628_s10 = smov 512   ;;  %s3629_s17 = smov 32  }
  0x4e   : > { %3154 = dma.hbm_to_vmem [thread:$0]  (!%p3777_p11), %s3775_s16, 1536, %s3781_s15, %s3783_s29, %s3628_s10, %s3628_s10, %s3629_s17  }
  0x4f   : > { %p5649_p0 = scmp.ne.s32.totalorder %s5643_s9, 0 }
  0x51   : > { %271 = sbr.rel (%p5649_p0) target bundleno = 1152 (0x480), region = 48 }
  0x58   : > { %s3814_s21 = sand.u32 1, %s3614_s25   ;;  %p5650_p5 = scmp.ne.s32.totalorder %s5641_s30, 0 }
  0x59   : > { %s3138_s12 = smul.u32 96, %s3814_s21  ;;  %s274_s23 = scalar_lea.sflag [#allocation3], %s3814_s21 }
  0x5b   : > { %s3818_s20 = scalar_lea.vmem [#allocation2], %s3138_s12 }
  0x5c   : > { %3597 = dma.done.wait (%p5650_p5), %s274_s23, 1536  }
  0x5d   : > { %3599 = vsyncadd (%p5650_p5), %s274_s23, 4294965760  ;;  %p5651_p11 = scmp.eq.s32.totalorder %s3696_s28, 0 }
  0x5f   : > { %3601 = dma.done.wait (%p5651_p11), [#allocation6], 2048   ;;  %p5652_p1 = pmov %p5651_p11 }
  0x60   : > { %v3630_v0 = vmov 0.0   ;;  %v3631_v1 = vmov 0   ;;  %v329_v2 = vld [vmem:[%s3818_s20 + $0x8] sm:$0xff]  ;;  %v331_v4 = vld [vmem:[%s3818_s20 + $0x18] sm:$0xff]  ;;  %v328_v7 = vld [vmem:[%s3818_s20] sm:$0xff]  ;;  %vm436_vm0 = vcmask 195584  }
  0x61   : > { %3603 = vsyncadd (%p5652_p1), [#allocation6], 4294965248  ;;  %549 = vmatprep.mubr.f32.mxu0 %v3630_v0  ;;  %710 = vmatprep.mubr.f32.mxu1 %v3630_v0  ;;  %v333_v3 = vld [vmem:[%s3818_s20 + $0x28] sm:$0xff]  ;;  %v335_v6 = vld [vmem:[%s3818_s20 + $0x38] sm:$0xff]  ;;  %s2849_s15 = sshll.u32 %s3814_s21, 9  ;;  %s2887_s22 = sshll.u32 %s3696_s28, 13 }
  0x62   : > { %3204 = vset.pattern.permute.xlu0 %v3631_v1  ;;  %3205 = vset.pattern.permute.xlu1 %v3631_v1  ;;  %v3064_v5 = vpack.c.bf16 %v333_v3, %v329_v2  ;;  %v332_v8 = vld [vmem:[%s3818_s20 + $0x20] sm:$0xff]  ;;  %v3068_v9 = vpack.c.bf16 %v335_v6, %v331_v4  ;;  %v330_v11 = vld [vmem:[%s3818_s20 + $0x10] sm:$0xff]  ;;  %v337_v13 = vld [vmem:[%s3818_s20 + $0x48] sm:$0xff]  ;;  %s5259_s29 = scalar_lea.vmem [#allocation7], %s2849_s15  ;;  %s5511_s17 = scalar_lea.hbm %s5568_s7, %s2887_s22 }
  0x63   : > { %v3066_v10 = vpack.c.bf16 %v332_v8, %v328_v7  ;;  %v334_v12 = vld [vmem:[%s3818_s20 + $0x30] sm:$0xff]  ;;  %v339_v15 = vld [vmem:[%s3818_s20 + $0x58] sm:$0xff]  ;;  %v336_v16 = vld [vmem:[%s3818_s20 + $0x40] sm:$0xff]  ;;  %s2759_s14 = sshll.u32 %s5259_s29, 4  ;;  %s2746_s28 = scalar_lea.sflag [#allocation4], %s3814_s21  ;;  %s5513_s14 = int_to_ptr.vmem [resolvable:$true] %s2759_s14 }
  0x64   : > { %3065 = vmatprep.subr.bf16.mxu0 %v3064_v5  ;;  %v3070_v14 = vpack.c.bf16 %v334_v12, %v330_v11  ;;  %3069 = vmatprep.subr.bf16.mxu1 %v3068_v9  ;;  %v338_v17 = vld [vmem:[%s3818_s20 + $0x50] sm:$0xff]  ;;  %v312_v18 = vld [vmem:[%s5562_s1] sm:$0xff]  ;;  %v313_v20 = vld [vmem:[%s5562_s1 + $0x8] sm:$0xff]  ;;  %s3552_s12 = scalar_lea.vmem %s5513_s14, 8192  ;;  %s3632_s23 = smov [#allocation7]  }
  0x65   : > { %3067 = vmatpush1.bf16.msra.mxu0 %v3066_v10  ;;  %v340_v19 = vld [vmem:[%s5563_s2] sm:$0xff]  ;;  %v342_v21 = vld [vmem:[%s5563_s2 + $0x10] sm:$0xff]  ;;  %v341_v22 = vld [vmem:[%s5563_s2 + $0x8] sm:$0xff]  ;;  %p3553_p4 = scmp.ne.s32.totalorder %s5513_s14, %s3552_s12  ;;  %s3556_s20 = sshll.u32 %s3632_s23, 4  ;;  %s3557_s20 = int_to_ptr.vmem [resolvable:$false] %s3556_s20 }
  0x66   : > { %3071 = vmatpush1.bf16.msra.mxu1 %v3070_v14  ;;  %489 = vmatprep.subr.mxu0 %v337_v13  ;;  %v343_v23 = vld [vmem:[%s5563_s2 + $0x18] sm:$0xff]  ;;  %v314_v24 = vld [vmem:[%s5562_s1 + $0x10] sm:$0xff]  ;;  %v344_v25 = vld [vmem:[%s5563_s2 + $0x20] sm:$0xff]  ;;  %s3558_s30 = scalar_lea.vmem %s3557_s20, 16384  ;;  %p3559_p10 = scmp.lt.s32.totalorder %s5513_s14, %s3557_s20 }
  0x67   : > { %650 = vmatprep.subr.mxu1 %v339_v15  ;;  %358 = vperm.xlu0 %3204, %v340_v19   ;;  %v345_v26 = vld [vmem:[%s5563_s2 + $0x28] sm:$0xff]  ;;  %v315_v27 = vld [vmem:[%s5562_s1 + $0x18] sm:$0xff]  ;;  %v346_v28 = vld [vmem:[%s5563_s2 + $0x30] sm:$0xff]  ;;  %p3554_p6 = pnand %p3553_p4, %p3766_p12  ;;  %p3560_p13 = scmp.lt.s32.totalorder %s3558_s30, %s3552_s12 }
  0x68   : > { %368 = vperm.xlu1 %3205, %v342_v21   ;;  %v347_v29 = vld [vmem:[%s5563_s2 + $0x38] sm:$0xff]  ;;  %v316_v30 = vld [vmem:[%s5562_s1 + $0x20] sm:$0xff]  ;;  %v349_v32 = vld [vmem:[%s5563_s2 + $0x48] sm:$0xff] }
  0x69   : > { %490 = vmatpush1.msra.mxu0 %v336_v16  ;;  %v348_v31 = vld [vmem:[%s5563_s2 + $0x40] sm:$0xff]  ;;  %v317_v33 = vld [vmem:[%s5562_s1 + $0x28] sm:$0xff]  ;;  %v350_v34 = vld [vmem:[%s5563_s2 + $0x50] sm:$0xff]  ;;  %p3555_p8 = pneg %p3554_p6  ;;  %p3561_p3 = por %p3560_p13, %p3559_p10 }
  0x6a   : > { %651 = vmatpush1.msra.mxu1 %v338_v17  ;;  %2850 = vmatmul.mubr.msk.f32.vlgmr.msra.gmra.mrb[0].mxu0 %vm436_vm0, %v312_v18  ;;  %v351_v35 = vld [vmem:[%s5563_s2 + $0x58] sm:$0xff]  ;;  %v318_v36 = vld [vmem:[%s5562_s1 + $0x30] sm:$0xff]  ;;  %v352_v37 = vld [vmem:[%s5563_s2 + $0x60] sm:$0xff] }
  0x6b   : > { %2866 = vmatmul.mubr.msk.f32.vlgmr.msra.gmra.mrb[0].mxu1 %vm436_vm0, %v312_v18  ;;  %555 = vmatprep.mubr.f32.mxu0 %v3630_v0  ;;  %v353_v38 = vld [vmem:[%s5563_s2 + $0x68] sm:$0xff]  ;;  %v319_v39 = vld [vmem:[%s5562_s1 + $0x38] sm:$0xff]  ;;  %v354_v40 = vld [vmem:[%s5563_s2 + $0x70] sm:$0xff]  ;;  %p3562_p7 = pnand %p3561_p3, %p3555_p8 }
  0x6c   : > { %716 = vmatprep.mubr.f32.mxu1 %v3630_v0  ;;  %363 = vperm.xlu0 %3204, %v341_v22   ;;  %v355_v41 = vld [vmem:[%s5563_s2 + $0x78] sm:$0xff]  ;;  %v320_v42 = vld [vmem:[%s5562_s1 + $0x40] sm:$0xff]  ;;  %v321_v43 = vld [vmem:[%s5562_s1 + $0x48] sm:$0xff] }
  0x6d   : > { %373 = vperm.xlu1 %3205, %v343_v23   ;;  %v322_v44 = vld [vmem:[%s5562_s1 + $0x50] sm:$0xff]  ;;  %v323_v45 = vld [vmem:[%s5562_s1 + $0x58] sm:$0xff]  ;;  %v324_v46 = vld [vmem:[%s5562_s1 + $0x60] sm:$0xff] }
  0x6e   : > { %2851 = vmatmul.mubr.msk.f32.gmra.mrb[2].mxu0 %vm436_vm0, %v313_v20  ;;  %v325_v47 = vld [vmem:[%s5562_s1 + $0x68] sm:$0xff]  ;;  %v326_v48 = vld [vmem:[%s5562_s1 + $0x70] sm:$0xff]  ;;  %v327_v49 = vld [vmem:[%s5562_s1 + $0x78] sm:$0xff] }
  0x6f   : > { %2867 = vmatmul.mubr.msk.f32.gmra.mrb[2].mxu1 %vm436_vm0, %v313_v20  ;;  %561 = vmatprep.mubr.f32.mxu0 %v3630_v0 }
  0x70   : > { %722 = vmatprep.mubr.f32.mxu1 %v3630_v0  ;;  %378 = vperm.xlu0 %3204, %v344_v25  }
  0x71   : > { %383 = vperm.xlu1 %3205, %v345_v26  }
  0x72   : > { %2852 = vmatmul.mubr.msk.f32.gmra.mrb[4].mxu0 %vm436_vm0, %v314_v24 }
  0x73   : > { %2868 = vmatmul.mubr.msk.f32.gmra.mrb[4].mxu1 %vm436_vm0, %v314_v24  ;;  %567 = vmatprep.mubr.f32.mxu0 %v3630_v0 }
  0x74   : > { %728 = vmatprep.mubr.f32.mxu1 %v3630_v0  ;;  %388 = vperm.xlu0 %3204, %v346_v28  }
  0x75   : > { %393 = vperm.xlu1 %3205, %v347_v29  }
  0x76   : > { %2853 = vmatmul.mubr.msk.f32.gmra.mrb[6].mxu0 %vm436_vm0, %v315_v27 }
  0x77   : > { %2869 = vmatmul.mubr.msk.f32.gmra.mrb[6].mxu1 %vm436_vm0, %v315_v27  ;;  %573 = vmatprep.mubr.f32.mxu0 %v3630_v0 }
  0x78   : > { %734 = vmatprep.mubr.f32.mxu1 %v3630_v0  ;;  %398 = vperm.xlu0 %3204, %v348_v31  }
  0x79   : > { %403 = vperm.xlu1 %3205, %v349_v32  }
  0x7a   : > { %2854 = vmatmul.mubr.msk.f32.gmra.mrb[8].mxu0 %vm436_vm0, %v316_v30 }
  0x7b   : > { %2870 = vmatmul.mubr.msk.f32.gmra.mrb[8].mxu1 %vm436_vm0, %v316_v30  ;;  %579 = vmatprep.mubr.f32.mxu0 %v3630_v0 }
  0x7c   : > { %740 = vmatprep.mubr.f32.mxu1 %v3630_v0  ;;  %408 = vperm.xlu0 %3204, %v350_v34  }
  0x7d   : > { %413 = vperm.xlu1 %3205, %v351_v35  }
  0x7e   : > { %2855 = vmatmul.mubr.msk.f32.gmra.mrb[10].mxu0 %vm436_vm0, %v317_v33 }
  0x7f   : > { %2871 = vmatmul.mubr.msk.f32.gmra.mrb[10].mxu1 %vm436_vm0, %v317_v33  ;;  %585 = vmatprep.mubr.f32.mxu0 %v3630_v0 }
  0x80   : > { %746 = vmatprep.mubr.f32.mxu1 %v3630_v0  ;;  %418 = vperm.xlu0 %3204, %v352_v37  }
  0x81   : > { %423 = vperm.xlu1 %3205, %v353_v38  }
  0x82   : > { %2856 = vmatmul.mubr.msk.f32.gmra.mrb[12].mxu0 %vm436_vm0, %v318_v36 }
  0x83   : > { %2872 = vmatmul.mubr.msk.f32.gmra.mrb[12].mxu1 %vm436_vm0, %v318_v36  ;;  %591 = vmatprep.mubr.f32.mxu0 %v3630_v0 }
  0x84   : > { %752 = vmatprep.mubr.f32.mxu1 %v3630_v0  ;;  %428 = vperm.xlu0 %3204, %v354_v40  }
  0x85   : > { %433 = vperm.xlu1 %3205, %v355_v41  }
  0x86   : > { %2857 = vmatmul.mubr.msk.f32.gmra.mrb[14].mxu0 %vm436_vm0, %v319_v39 }
  0x87   : > { %2873 = vmatmul.mubr.msk.f32.gmra.mrb[14].mxu1 %vm436_vm0, %v319_v39  ;;  %597 = vmatprep.mubr.f32.mxu0 %v3630_v0 }
  0x88   : > { %758 = vmatprep.mubr.f32.mxu1 %v3630_v0 }
  0x8a   : > { %2858 = vmatmul.mubr.msk.f32.gmra.mrb[16].mxu0 %vm436_vm0, %v320_v42 }
  0x8b   : > { %2874 = vmatmul.mubr.msk.f32.gmra.mrb[16].mxu1 %vm436_vm0, %v320_v42  ;;  %603 = vmatprep.mubr.f32.mxu0 %v3630_v0 }
  0x8c   : > { %764 = vmatprep.mubr.f32.mxu1 %v3630_v0 }
  0x8e   : > { %2859 = vmatmul.mubr.msk.f32.gmra.mrb[18].mxu0 %vm436_vm0, %v321_v43 }
  0x8f   : > { %2875 = vmatmul.mubr.msk.f32.gmra.mrb[18].mxu1 %vm436_vm0, %v321_v43  ;;  %609 = vmatprep.mubr.f32.mxu0 %v3630_v0 }
  0x90   : > { %770 = vmatprep.mubr.f32.mxu1 %v3630_v0 }
  0x92   : > { %2860 = vmatmul.mubr.msk.f32.gmra.mrb[20].mxu0 %vm436_vm0, %v322_v44 }
  0x93   : > { %2876 = vmatmul.mubr.msk.f32.gmra.mrb[20].mxu1 %vm436_vm0, %v322_v44  ;;  %615 = vmatprep.mubr.f32.mxu0 %v3630_v0 }
  0x94   : > { %776 = vmatprep.mubr.f32.mxu1 %v3630_v0 }
  0x96   : > { %2861 = vmatmul.mubr.msk.f32.gmra.mrb[22].mxu0 %vm436_vm0, %v323_v45 }
  0x97   : > { %2877 = vmatmul.mubr.msk.f32.gmra.mrb[22].mxu1 %vm436_vm0, %v323_v45  ;;  %621 = vmatprep.mubr.f32.mxu0 %v3630_v0 }
  0x98   : > { %782 = vmatprep.mubr.f32.mxu1 %v3630_v0 }
  0x9a   : > { %2862 = vmatmul.mubr.msk.f32.gmra.mrb[24].mxu0 %vm436_vm0, %v324_v46 }
  0x9b   : > { %2878 = vmatmul.mubr.msk.f32.gmra.mrb[24].mxu1 %vm436_vm0, %v324_v46  ;;  %627 = vmatprep.mubr.f32.mxu0 %v3630_v0 }
  0x9c   : > { %788 = vmatprep.mubr.f32.mxu1 %v3630_v0 }
  0x9e   : > { %2863 = vmatmul.mubr.msk.f32.gmra.mrb[26].mxu0 %vm436_vm0, %v325_v47 }
  0x9f   : > { %2879 = vmatmul.mubr.msk.f32.gmra.mrb[26].mxu1 %vm436_vm0, %v325_v47  ;;  %633 = vmatprep.mubr.f32.mxu0 %v3630_v0 }
  0xa0   : > { %794 = vmatprep.mubr.f32.mxu1 %v3630_v0 }
  0xa2   : > { %2864 = vmatmul.mubr.msk.f32.gmra.mrb[28].mxu0 %vm436_vm0, %v326_v48 }
  0xa3   : > { %2880 = vmatmul.mubr.msk.f32.gmra.mrb[28].mxu1 %vm436_vm0, %v326_v48  ;;  %639 = vmatprep.mubr.f32.mxu0 %v3630_v0 }
  0xa4   : > { %800 = vmatprep.mubr.f32.mxu1 %v3630_v0 }
  0xa6   : > { %2865 = vmatmul.mubr.msk.f32.gmra.mrb[30].mxu0 %vm436_vm0, %v327_v49 }
  0xa7   : > { %2881 = vmatmul.mubr.msk.f32.gmra.mrb[30].mxu1 %vm436_vm0, %v327_v49 }
  0xe6   : > { %v359_v50 = vpop.permute.xlu0 %358 }
  0xe7   : > { %v369_v5 = vpop.permute.xlu1 %368 }
  0xeb   : > { %v364_v60 = vpop.permute.xlu0 %363 }
  0xec   : > { %v374_v29 = vpop.permute.xlu1 %373 }
 0x13d   : > { %v551_v51 = vpop.f32.mrb[0].mxu0 }
 0x13e   : > { %v4000_v52 = vadd.f32 %v551_v51, %v359_v50  ;;  %v712_v53 = vpop.f32.mrb[0].mxu1  ;;  %v553_v54 = vpop.f32.mrb[1].mxu0 }
 0x13f   : > { %v4002_v55 = vadd.f32 %v712_v53, %v359_v50  ;;  %v4004_v56 = vadd.f32 %v553_v54, %v359_v50  ;;  %v714_v57 = vpop.f32.mrb[1].mxu1 }
 0x140   : > { %v807_v58 = vsub.f32 0.0, %v4000_v52  ;;  %v4007_v59 = vadd.f32 %v714_v57, %v359_v50 }
 0x141   : > { %v809_v61 = vsub.f32 0.0, %v4002_v55  ;;  %v808_v62 = vsub.f32 0.0, %v4004_v56  ;;  %v557_v63 = vpop.f32.mrb[2].mxu0 }
 0x142   : > { %v871_v0 = vmul.f32 1.442695, %v807_v58  ;;  %v810_v1 = vsub.f32 0.0, %v4007_v59  ;;  %v4012_v2 = vadd.f32 %v557_v63, %v364_v60  ;;  %v718_v3 = vpop.f32.mrb[2].mxu1  ;;  %v559_v4 = vpop.f32.mrb[3].mxu0 }
 0x143   : > { %v875_v6 = vmul.f32 1.442695, %v809_v61  ;;  %v873_v7 = vmul.f32 1.442695, %v808_v62  ;;  %v4014_v8 = vadd.f32 %v718_v3, %v364_v60  ;;  %v4016_v9 = vadd.f32 %v559_v4, %v364_v60  ;;  %v720_v10 = vpop.f32.mrb[3].mxu1 }
 0x144   : > { %3206 = vpow2.f32 %v871_v0  ;;  %v877_v11 = vmul.f32 1.442695, %v810_v1  ;;  %v811_v12 = vsub.f32 0.0, %v4012_v2  ;;  %v4019_v13 = vadd.f32 %v720_v10, %v364_v60  ;;  %v379_v10 = vpop.permute.xlu0 %378 }
 0x145   : > { %3208 = vpow2.f32 %v875_v6  ;;  %v813_v14 = vsub.f32 0.0, %v4014_v8  ;;  %v812_v15 = vsub.f32 0.0, %v4016_v9  ;;  %v563_v16 = vpop.f32.mrb[4].mxu0 }
 0x146   : > { %3210 = vpow2.f32 %v873_v7  ;;  %v879_v17 = vmul.f32 1.442695, %v811_v12  ;;  %v814_v18 = vsub.f32 0.0, %v4019_v13  ;;  %v4024_v19 = vadd.f32 %v563_v16, %v369_v5  ;;  %v724_v20 = vpop.f32.mrb[4].mxu1  ;;  %v565_v21 = vpop.f32.mrb[5].mxu0 }
 0x147   : > { %3212 = vpow2.f32 %v877_v11  ;;  %v883_v22 = vmul.f32 1.442695, %v813_v14  ;;  %v881_v23 = vmul.f32 1.442695, %v812_v15  ;;  %v4026_v24 = vadd.f32 %v724_v20, %v369_v5  ;;  %v726_v25 = vpop.f32.mrb[5].mxu1 }
 0x148   : > { %3214 = vpow2.f32 %v879_v17  ;;  %v885_v26 = vmul.f32 1.442695, %v814_v18  ;;  %v815_v27 = vsub.f32 0.0, %v4024_v19  ;;  %v4029_v28 = vadd.f32 %v565_v21, %v369_v5 }
 0x149   : > { %3216 = vpow2.f32 %v883_v22  ;;  %v817_v30 = vsub.f32 0.0, %v4026_v24  ;;  %v4032_v31 = vadd.f32 %v726_v25, %v369_v5  ;;  %v569_v32 = vpop.f32.mrb[6].mxu0 }
 0x14a   : > { %3218 = vpow2.f32 %v881_v23  ;;  %v887_v33 = vmul.f32 1.442695, %v815_v27  ;;  %v816_v34 = vsub.f32 0.0, %v4029_v28  ;;  %v4035_v35 = vadd.f32 %v569_v32, %v374_v29  ;;  %v730_v36 = vpop.f32.mrb[6].mxu1  ;;  %v571_v37 = vpop.f32.mrb[7].mxu0 }
 0x14b   : > { %3220 = vpow2.f32 %v885_v26  ;;  %v891_v38 = vmul.f32 1.442695, %v817_v30  ;;  %v818_v39 = vsub.f32 0.0, %v4032_v31  ;;  %v732_v40 = vpop.f32.mrb[7].mxu1  ;;  %v4039_v44 = vadd.f32 %v730_v36, %v374_v29 }
 0x14c   : > { %3222 = vpow2.f32 %v887_v33  ;;  %v889_v41 = vmul.f32 1.442695, %v816_v34  ;;  %v819_v42 = vsub.f32 0.0, %v4035_v35  ;;  %v4041_v48 = vadd.f32 %v571_v37, %v374_v29  ;;  %v384_v33 = vpop.permute.xlu1 %383 }
 0x14d   : > { %3224 = vpow2.f32 %v891_v38  ;;  %v893_v43 = vmul.f32 1.442695, %v818_v39  ;;  %v575_v45 = vpop.f32.mrb[8].mxu0  ;;  %v821_v62 = vsub.f32 0.0, %v4039_v44  ;;  %v4044_v63 = vadd.f32 %v732_v40, %v374_v29 }
 0x14e   : > { %v3207_v46 = vpop.eup %3206  ;;  %3226 = vpow2.f32 %v889_v41  ;;  %v895_v47 = vmul.f32 1.442695, %v819_v42  ;;  %v736_v49 = vpop.f32.mrb[8].mxu1  ;;  %v820_v4 = vsub.f32 0.0, %v4041_v48  ;;  %v4047_v16 = vadd.f32 %v575_v45, %v379_v10 }
 0x14f   : > { %v577_v50 = vpop.f32.mrb[9].mxu0  ;;  %v3209_v51 = vpop.eup %3208  ;;  %v999_v53 = vadd.f32 1.0, %v3207_v46  ;;  %3228 = vpow2.f32 %v893_v43  ;;  %v899_v20 = vmul.f32 1.442695, %v821_v62  ;;  %v822_v21 = vsub.f32 0.0, %v4044_v63 }
 0x150   : > { %v738_v54 = vpop.f32.mrb[9].mxu1  ;;  %v3211_v57 = vpop.eup %3210  ;;  %v1001_v58 = vadd.f32 1.0, %v3209_v51  ;;  %3230 = vpow2.f32 %v895_v47  ;;  %v897_v26 = vmul.f32 1.442695, %v820_v4  ;;  %v4050_v27 = vadd.f32 %v736_v49, %v379_v10 }
 0x151   : > { %v3213_v60 = vpop.eup %3212  ;;  %3232 = vrcp.f32 %v999_v53  ;;  %v1000_v61 = vadd.f32 1.0, %v3211_v57  ;;  %v581_v0 = vpop.f32.mrb[10].mxu0  ;;  %v4054_v36 = vadd.f32 %v577_v50, %v379_v10  ;;  %v4056_v37 = vadd.f32 %v738_v54, %v379_v10 }
 0x152   : > { %v3215_v1 = vpop.eup %3214  ;;  %3234 = vrcp.f32 %v1001_v58  ;;  %v1002_v3 = vadd.f32 1.0, %v3213_v60  ;;  %v742_v5 = vpop.f32.mrb[10].mxu1  ;;  %v823_v41 = vsub.f32 0.0, %v4047_v16  ;;  %v4061_v42 = vadd.f32 %v581_v0, %v384_v33 }
 0x153   : > { %v583_v6 = vpop.f32.mrb[11].mxu0  ;;  %v3217_v7 = vpop.eup %3216  ;;  %3236 = vrcp.f32 %v1000_v61  ;;  %v1003_v11 = vadd.f32 1.0, %v3215_v1  ;;  %v4063_v46 = vadd.f32 %v742_v5, %v384_v33  ;;  %v901_v53 = vmul.f32 1.442695, %v822_v21 }
 0x154   : > { %v744_v12 = vpop.f32.mrb[11].mxu1  ;;  %v3219_v14 = vpop.eup %3218  ;;  %3238 = vrcp.f32 %v1002_v3  ;;  %v1005_v15 = vadd.f32 1.0, %v3217_v7  ;;  %v4065_v47 = vadd.f32 %v583_v6, %v384_v33  ;;  %v825_v54 = vsub.f32 0.0, %v4050_v27 }
 0x155   : > { %v3221_v17 = vpop.eup %3220  ;;  %3240 = vrcp.f32 %v1003_v11  ;;  %v1004_v18 = vadd.f32 1.0, %v3219_v14  ;;  %v587_v22 = vpop.f32.mrb[12].mxu0  ;;  %v824_v62 = vsub.f32 0.0, %v4054_v36  ;;  %v826_v0 = vsub.f32 0.0, %v4056_v37 }
 0x156   : > { %v3223_v23 = vpop.eup %3222  ;;  %3242 = vrcp.f32 %v1005_v15  ;;  %v1006_v25 = vadd.f32 1.0, %v3221_v17  ;;  %v748_v29 = vpop.f32.mrb[12].mxu1  ;;  %v903_v5 = vmul.f32 1.442695, %v823_v41  ;;  %v827_v6 = vsub.f32 0.0, %v4061_v42 }
 0x157   : > { %v4052_v30 = vpop.f32.mrb[13].mxu0  ;;  %v3225_v32 = vpop.eup %3224  ;;  %3244 = vrcp.f32 %v1004_v18  ;;  %v1007_v34 = vadd.f32 1.0, %v3223_v23  ;;  %v4079_v7 = vadd.f32 %v744_v12, %v384_v33  ;;  %v829_v11 = vsub.f32 0.0, %v4063_v46 }
 0x158   : > { %v4058_v38 = vpop.f32.mrb[13].mxu1  ;;  %v3227_v39 = vpop.eup %3226  ;;  %3246 = vrcp.f32 %v1006_v25  ;;  %v1009_v40 = vadd.f32 1.0, %v3225_v32  ;;  %v828_v14 = vsub.f32 0.0, %v4065_v47  ;;  %v907_v23 = vmul.f32 1.442695, %v825_v54 }
 0x159   : > { %v3229_v43 = vpop.eup %3228  ;;  %3248 = vrcp.f32 %v1007_v34  ;;  %v1008_v45 = vadd.f32 1.0, %v3227_v39  ;;  %v4067_v49 = vpop.f32.mrb[14].mxu0  ;;  %v905_v39 = vmul.f32 1.442695, %v824_v62  ;;  %v911_v41 = vmul.f32 1.442695, %v827_v6 }
 0x15a   : > { %v3231_v50 = vpop.eup %3230  ;;  %3250 = vrcp.f32 %v1009_v40  ;;  %v1010_v51 = vadd.f32 1.0, %v3229_v43  ;;  %v4070_v57 = vpop.f32.mrb[14].mxu1  ;;  %v830_v43 = vsub.f32 0.0, %v4079_v7 }
 0x15b   : > { %v4072_v58 = vpop.f32.mrb[15].mxu0  ;;  %v3233_v60 = vpop.eup %3232  ;;  %3252 = vrcp.f32 %v1008_v45  ;;  %v1011_v61 = vadd.f32 1.0, %v3231_v50 }
 0x15c   : > { %v4076_v1 = vpop.f32.mrb[15].mxu1  ;;  %v3235_v3 = vpop.eup %3234  ;;  %3254 = vrcp.f32 %v1010_v51  ;;  %v4088_v21 = vmul.f32 %v3233_v60, %v4000_v52  ;;  %v909_v52 = vmul.f32 1.442695, %v826_v0 }
 0x15d   : > { %v389_v4 = vpop.permute.xlu0 %388  ;;  %v3237_v10 = vpop.eup %3236  ;;  %3256 = vrcp.f32 %v1011_v61  ;;  %v4126_v6 = vmul.f32 %v3235_v3, %v4002_v55  ;;  %v917_v55 = vmul.f32 1.442695, %v830_v43 }
 0x15e   : > { %v4083_v15 = vadd.f32 %v587_v22, %v389_v4  ;;  %v4085_v17 = vpop.f32.mrb[16].mxu0  ;;  %v3239_v18 = vpop.eup %3238  ;;  %5654 = vst [vmem:[#allocation12_spill] sm:$0xff] %v4088_v21  ;;  %3258 = vpow2.f32 %v899_v20  ;;  %v4090_v25 = vadd.f32 %v748_v29, %v389_v4  ;;  %v1255_v22 = vld [vmem:[%s5567_s6] sm:$0xff]  ;;  %v4100_v34 = vmul.f32 %v3237_v10, %v4004_v56  ;;  %v1256_v29 = vld [vmem:[%s5567_s6 + $0x8] sm:$0xff] }
 0x15f   : > { %v4092_v12 = vpop.f32.mrb[16].mxu1  ;;  %v4094_v32 = vpop.f32.mrb[17].mxu0  ;;  %3260 = vpow2.f32 %v897_v26  ;;  %v4109_v45 = vadd.f32 %v4052_v30, %v389_v4  ;;  %v915_v56 = vmul.f32 1.442695, %v829_v11  ;;  %v913_v26 = vmul.f32 1.442695, %v828_v14 }
 0x160   : > { %5653 = vst [vmem:[#allocation11_spill] sm:$0xff] %v4083_v15  ;;  %5655 = vst [vmem:[#allocation13_spill] sm:$0xff] %v4090_v25  ;;  %v3241_v33 = vpop.eup %3240  ;;  %v4102_v40 = vpop.f32.mrb[17].mxu1  ;;  %3262 = vpow2.f32 %v901_v53  ;;  %v831_v51 = vsub.f32 0.0, %v4083_v15  ;;  %v4115_v61 = vmul.f32 %v1255_v22, %v4088_v21  ;;  %v833_v62 = vsub.f32 0.0, %v4090_v25  ;;  %v1259_v11 = vld [vmem:[%s5567_s6 + $0x20] sm:$0xff] }
 0x161   : > { %5656 = vst [vmem:[#allocation14_spill] sm:$0xff] %v4100_v34  ;;  %v3243_v20 = vpop.eup %3242  ;;  %5657 = vst [vmem:[#allocation15_spill] sm:$0xff] %v4109_v45  ;;  %3264 = vpow2.f32 %v903_v5  ;;  %v4112_v54 = vpop.f32.mrb[18].mxu0  ;;  %v4118_v53 = vmul.f32 %v3241_v33, %v4012_v2  ;;  %v4129_v10 = vmul.f32 %v1256_v29, %v4100_v34  ;;  %v1260_v33 = vld [vmem:[%s5567_s6 + $0x28] sm:$0xff]  ;;  %v832_v3 = vsub.f32 0.0, %v4109_v45 }
 0x162   : > { %v3245_v50 = vpop.eup %3244  ;;  %3266 = vpow2.f32 %v907_v23  ;;  %v4121_v30 = vpop.f32.mrb[18].mxu1  ;;  %5659 = vst [vmem:[#allocation17_spill] sm:$0xff] %v4126_v6  ;;  %v4144_v22 = vadd.f32 %v4058_v38, %v389_v4  ;;  %v4147_v25 = vmul.f32 %v3239_v18, %v4007_v59  ;;  %v1263_v59 = vld [vmem:[%s5567_s6 + $0x40] sm:$0xff]  ;;  %v923_v38 = vmul.f32 1.442695, %v833_v62 }
 0x163   : > { %v3247_v60 = vpop.eup %3246  ;;  %5658 = vst [vmem:[#allocation16_spill] sm:$0xff] %v4118_v53  ;;  %v4123_v0 = vpop.f32.mrb[19].mxu0  ;;  %v4135_v2 = vmul.f32 %v3245_v50, %v4016_v9  ;;  %3268 = vpow2.f32 %v905_v39  ;;  %v919_v39 = vmul.f32 1.442695, %v831_v51  ;;  %v4159_v43 = vmul.f32 %v1259_v11, %v4118_v53 }
 0x164   : > { %v3249_v5 = vpop.eup %3248  ;;  %v4137_v14 = vpop.f32.mrb[19].mxu1  ;;  %3270 = vpow2.f32 %v909_v52  ;;  %5661 = vst [vmem:[#allocation19_spill] sm:$0xff] %v4144_v22  ;;  %5662 = vst [vmem:[#allocation20_spill] sm:$0xff] %v4147_v25  ;;  %v4156_v52 = vmul.f32 %v4115_v61, %v4088_v21  ;;  %v4173_v51 = vmul.f32 %v3243_v20, %v4014_v8  ;;  %v4181_v21 = vmul.f32 %v3247_v60, %v4019_v13 }
 0x165   : > { %5660 = vst [vmem:[#allocation18_spill] sm:$0xff] %v4135_v2  ;;  %v3251_v23 = vpop.eup %3250  ;;  %v4150_v9 = vmul.f32 %v3249_v5, %v4024_v19  ;;  %3272 = vpow2.f32 %v911_v41  ;;  %v4152_v50 = vpop.f32.mrb[20].mxu0  ;;  %v4170_v41 = vmul.f32 %v4129_v10, %v4100_v34  ;;  %v4176_v5 = vmul.f32 %v1260_v33, %v4135_v2 }
 0x166   : > { %v3253_v29 = vpop.eup %3252  ;;  %5664 = vst [vmem:[#allocation22_spill] sm:$0xff] %v4156_v52  ;;  %3274 = vpow2.f32 %v915_v56  ;;  %v4164_v19 = vpop.f32.mrb[20].mxu1  ;;  %5666 = vst [vmem:[#allocation24_spill] sm:$0xff] %v4173_v51  ;;  %v4183_v52 = vmul.f32 1.442695, %v832_v3  ;;  %v834_v34 = vsub.f32 0.0, %v4144_v22  ;;  %v4196_v13 = vmul.f32 %v4159_v43, %v4118_v53 }
 0x167   : > { %5663 = vst [vmem:[#allocation21_spill] sm:$0xff] %v4150_v9  ;;  %v3255_v15 = vpop.eup %3254  ;;  %v4166_v4 = vpop.f32.mrb[21].mxu0  ;;  %5665 = vst [vmem:[#allocation23_spill] sm:$0xff] %v4170_v41  ;;  %3276 = vpow2.f32 %v913_v26  ;;  %v4187_v8 = vmul.f32 %v1263_v59, %v4150_v9  ;;  %v4199_v60 = vmul.f32 %v3251_v23, %v4026_v24  ;;  %v1264_v23 = vld [vmem:[%s5567_s6 + $0x48] sm:$0xff] }
 0x168   : > { %v3257_v18 = vpop.eup %3256  ;;  %v4178_v11 = vpop.f32.mrb[21].mxu1  ;;  %5667 = vst [vmem:[#allocation25_spill] sm:$0xff] %v4181_v21  ;;  %3278 = vpow2.f32 %v917_v55  ;;  %5669 = vst [vmem:[#allocation27_spill] sm:$0xff] %v4196_v13 }
 0x169   : > { %v3259_v56 = vpop.eup %3258  ;;  %v394_v62 = vpop.permute.xlu1 %393  ;;  %5668 = vst [vmem:[#allocation26_spill] sm:$0xff] %v4187_v8  ;;  %3280 = vpow2.f32 %v919_v39  ;;  %5670 = vst [vmem:[#allocation28_spill] sm:$0xff] %v4199_v60  ;;  %v4220_v60 = vmul.f32 1.442695, %v834_v34  ;;  %v4230_v22 = vmul.f32 %v3257_v18, %v4035_v35 }
 0x16a   : > { %v3261_v41 = vpop.eup %3260  ;;  %v1013_v20 = vadd.f32 1.0, %v3259_v56  ;;  %v4190_v26 = vadd.f32 %v4067_v49, %v394_v62  ;;  %v4192_v33 = vpop.f32.mrb[22].mxu0  ;;  %3282 = vpow2.f32 %v923_v38  ;;  %v4207_v49 = vmul.f32 %v4176_v5, %v4135_v2 }
 0x16b   : > { %v3263_v45 = vpop.eup %3262  ;;  %v1012_v55 = vadd.f32 1.0, %v3261_v41  ;;  %v4201_v3 = vpop.f32.mrb[22].mxu1  ;;  %v4210_v56 = vmul.f32 %v3253_v29, %v4029_v28  ;;  %v4218_v38 = vmul.f32 %v3255_v15, %v4032_v31  ;;  %v4224_v28 = vmul.f32 %v4187_v8, %v4150_v9  ;;  %5675 = vst [vmem:[#allocation33_spill] sm:$0xff] %v4230_v22  ;;  %v1267_v9 = vld [vmem:[%s5567_s6 + $0x60] sm:$0xff] }
 0x16c   : > { %v4203_v59 = vpop.f32.mrb[23].mxu0  ;;  %v3265_v39 = vpop.eup %3264  ;;  %5671 = vst [vmem:[#allocation29_spill] sm:$0xff] %v4207_v49  ;;  %3284 = vrcp.f32 %v1013_v20  ;;  %v1014_v53 = vadd.f32 1.0, %v3263_v45  ;;  %v835_v29 = vsub.f32 0.0, %v4190_v26  ;;  %v4233_v15 = vadd.f32 %v4070_v57, %v394_v62 }
 0x16d   : > { %5672 = vst [vmem:[#allocation30_spill] sm:$0xff] %v4210_v56  ;;  %v4212_v13 = vpop.f32.mrb[23].mxu1  ;;  %v3267_v24 = vpop.eup %3266  ;;  %5673 = vst [vmem:[#allocation31_spill] sm:$0xff] %v4218_v38  ;;  %3286 = vrcp.f32 %v1012_v55  ;;  %v1015_v41 = vadd.f32 1.0, %v3265_v39 }
 0x16e   : > { %v3269_v2 = vpop.eup %3268  ;;  %5674 = vst [vmem:[#allocation32_spill] sm:$0xff] %v4224_v28  ;;  %3288 = vrcp.f32 %v1014_v53  ;;  %v1017_v45 = vadd.f32 1.0, %v3267_v24  ;;  %v4227_v20 = vpop.f32.mrb[24].mxu0  ;;  %5676 = vst [vmem:[#allocation34_spill] sm:$0xff] %v4233_v15  ;;  %v4240_v24 = vmul.f32 %v1264_v23, %v4210_v56  ;;  %v4251_v28 = vadd.f32 %v4076_v1, %v394_v62 }
 0x16f   : > { %v3271_v49 = vpop.eup %3270  ;;  %3290 = vrcp.f32 %v1015_v41  ;;  %v1016_v31 = vadd.f32 1.0, %v3269_v2  ;;  %v4235_v34 = vpop.f32.mrb[24].mxu1  ;;  %v4246_v2 = vadd.f32 %v4072_v58, %v394_v62  ;;  %v837_v1 = vsub.f32 0.0, %v4233_v15 }
 0x170   : > { %5677 = vst [vmem:[#allocation35_spill] sm:$0xff] %v4235_v34  ;;  %v4237_v55 = vpop.f32.mrb[25].mxu0  ;;  %v3273_v39 = vpop.eup %3272  ;;  %5679 = vst [vmem:[#allocation37_spill] sm:$0xff] %v4240_v24  ;;  %3292 = vrcp.f32 %v1017_v45  ;;  %v1018_v35 = vadd.f32 1.0, %v3271_v49 }
 0x171   : > { %5678 = vst [vmem:[#allocation36_spill] sm:$0xff] %v4237_v55  ;;  %v399_v53 = vpop.permute.xlu0 %398  ;;  %v4248_v57 = vpop.f32.mrb[25].mxu1  ;;  %3294 = vrcp.f32 %v1016_v31  ;;  %v1019_v41 = vadd.f32 1.0, %v3273_v39  ;;  %v927_v55 = vmul.f32 1.442695, %v835_v29 }
 0x172   : > { %5680 = vst [vmem:[#allocation38_spill] sm:$0xff] %v4248_v57  ;;  %v3275_v18 = vpop.eup %3274  ;;  %v4254_v23 = vadd.f32 %v4085_v17, %v399_v53  ;;  %3296 = vrcp.f32 %v1018_v35  ;;  %v4257_v49 = vadd.f32 %v4092_v12, %v399_v53  ;;  %v4259_v58 = vpop.f32.mrb[26].mxu0  ;;  %v4262_v57 = vmul.f32 %v1267_v9, %v4230_v22 }
 0x173   : > { %v3277_v38 = vpop.eup %3276  ;;  %v1021_v8 = vadd.f32 1.0, %v3275_v18  ;;  %5681 = vst [vmem:[#allocation39_spill] sm:$0xff] %v4259_v58  ;;  %3298 = vrcp.f32 %v1019_v41  ;;  %v4265_v62 = vpop.f32.mrb[26].mxu1  ;;  %v836_v12 = vsub.f32 0.0, %v4246_v2  ;;  %v4271_v35 = vadd.f32 %v4094_v32, %v399_v53 }
 0x174   : > { %v3279_v45 = vpop.eup %3278  ;;  %5682 = vst [vmem:[#allocation40_spill] sm:$0xff] %v4262_v57  ;;  %v1020_v31 = vadd.f32 1.0, %v3277_v38  ;;  %5683 = vst [vmem:[#allocation41_spill] sm:$0xff] %v4265_v62  ;;  %v4267_v17 = vpop.f32.mrb[27].mxu0  ;;  %v838_v38 = vsub.f32 0.0, %v4251_v28  ;;  %v839_v58 = vsub.f32 0.0, %v4254_v23 }
 0x175   : > { %5684 = vst [vmem:[#allocation42_spill] sm:$0xff] %v4267_v17  ;;  %v3281_v39 = vpop.eup %3280  ;;  %3300 = vrcp.f32 %v1021_v8  ;;  %v1022_v29 = vadd.f32 1.0, %v3279_v45  ;;  %v4273_v18 = vpop.f32.mrb[27].mxu1  ;;  %v841_v8 = vsub.f32 0.0, %v4257_v49  ;;  %v4279_v45 = vadd.f32 %v4102_v40, %v399_v53 }
 0x176   : > { %5685 = vst [vmem:[#allocation43_spill] sm:$0xff] %v4273_v18  ;;  %v3283_v9 = vpop.eup %3282  ;;  %3302 = vrcp.f32 %v1020_v31  ;;  %v1023_v41 = vadd.f32 1.0, %v3281_v39  ;;  %v404_v15 = vpop.permute.xlu1 %403  ;;  %v4285_v31 = vmul.f32 %v4240_v24, %v4210_v56  ;;  %v4289_v39 = vmul.f32 %v4262_v57, %v4230_v22 }
 0x177   : > { %v3285_v62 = vpop.eup %3284  ;;  %3304 = vrcp.f32 %v1022_v29  ;;  %v1025_v17 = vadd.f32 1.0, %v3283_v9  ;;  %v4281_v32 = vpop.f32.mrb[28].mxu0  ;;  %v4292_v29 = vadd.f32 %v4112_v54, %v404_v15  ;;  %v931_v53 = vmul.f32 1.442695, %v837_v1  ;;  %v1268_v54 = vld [vmem:[%s5567_s6 + $0x68] sm:$0xff] }
 0x178   : > { %5686 = vst [vmem:[#allocation44_spill] sm:$0xff] %v4281_v32  ;;  %v3287_v34 = vpop.eup %3286  ;;  %5687 = vst [vmem:[#allocation45_spill] sm:$0xff] %v4285_v31  ;;  %3306 = vrcp.f32 %v1023_v41  ;;  %v4294_v9 = vpop.f32.mrb[28].mxu1  ;;  %v840_v32 = vsub.f32 0.0, %v4271_v35  ;;  %v4300_v56 = vadd.f32 %v4121_v30, %v404_v15  ;;  %v939_v30 = vmul.f32 1.442695, %v841_v8 }
 0x179   : > { %5688 = vst [vmem:[#allocation46_spill] sm:$0xff] %v4289_v39  ;;  %5689 = vst [vmem:[#allocation47_spill] sm:$0xff] %v4294_v9  ;;  %v4296_v18 = vpop.f32.mrb[29].mxu0  ;;  %v3289_v40 = vpop.eup %3288  ;;  %3308 = vrcp.f32 %v1025_v17  ;;  %v4305_v41 = vmul.f32 %v3287_v34, %v4041_v48  ;;  %v929_v39 = vmul.f32 1.442695, %v836_v12  ;;  %v842_v9 = vsub.f32 0.0, %v4279_v45 }
 0x17a   : > { %5690 = vst [vmem:[#allocation48_spill] sm:$0xff] %v4296_v18  ;;  %v4302_v31 = vpop.f32.mrb[29].mxu1  ;;  %v3291_v22 = vpop.eup %3290  ;;  %3310 = vpow2.f32 %v4183_v52  ;;  %v933_v17 = vmul.f32 1.442695, %v838_v38  ;;  %v935_v18 = vmul.f32 1.442695, %v839_v58  ;;  %v4317_v34 = vadd.f32 %v4123_v0, %v404_v15 }
 0x17b   : > { %5691 = vst [vmem:[#allocation49_spill] sm:$0xff] %v4302_v31  ;;  %5692 = vst [vmem:[#allocation50_spill] sm:$0xff] %v4305_v41  ;;  %v3293_v1 = vpop.eup %3292  ;;  %3312 = vpow2.f32 %v4220_v60  ;;  %v4313_v31 = vpop.f32.mrb[30].mxu0  ;;  %v843_v48 = vsub.f32 0.0, %v4292_v29  ;;  %v4320_v52 = vadd.f32 %v4137_v14, %v404_v15  ;;  %v4327_v58 = vmul.f32 %v3291_v22, %v4047_v16  ;;  %v1271_v15 = vld [vmem:[%s5567_s6 + $0x80] sm:$0xff] }
 0x17c   : > { %5693 = vst [vmem:[#allocation51_spill] sm:$0xff] %v4313_v31  ;;  %v3295_v57 = vpop.eup %3294  ;;  %3314 = vpow2.f32 %v927_v55  ;;  %v4322_v12 = vpop.f32.mrb[30].mxu1  ;;  %v937_v8 = vmul.f32 1.442695, %v840_v32  ;;  %v845_v55 = vsub.f32 0.0, %v4300_v56  ;;  %v4333_v0 = vmul.f32 %v3285_v62, %v4039_v44  ;;  %v1272_v44 = vld [vmem:[%s5567_s6 + $0x88] sm:$0xff] }
 0x17d   : > { %5694 = vst [vmem:[#allocation52_spill] sm:$0xff] %v4322_v12  ;;  %v4324_v38 = vpop.f32.mrb[31].mxu0  ;;  %v3297_v60 = vpop.eup %3296  ;;  %5696 = vst [vmem:[#allocation54_spill] sm:$0xff] %v4327_v58  ;;  %3316 = vpow2.f32 %v931_v53  ;;  %v4336_v14 = vmul.f32 %v1268_v54, %v4305_v41  ;;  %v4342_v16 = vmul.f32 %v3295_v57, %v4054_v36  ;;  %v4345_v32 = vmul.f32 %v3289_v40, %v4044_v63  ;;  %v1275_v36 = vld [vmem:[%s5567_s6 + $0xa0] sm:$0xff] }
 0x17e   : > { %5695 = vst [vmem:[#allocation53_spill] sm:$0xff] %v4324_v38  ;;  %v4330_v31 = vpop.f32.mrb[31].mxu1  ;;  %v3299_v24 = vpop.eup %3298  ;;  %5698 = vst [vmem:[#allocation56_spill] sm:$0xff] %v4333_v0  ;;  %3318 = vpow2.f32 %v929_v39  ;;  %v941_v53 = vmul.f32 1.442695, %v842_v9  ;;  %v844_v39 = vsub.f32 0.0, %v4317_v34  ;;  %v4359_v38 = vmul.f32 %v1271_v15, %v4327_v58 }
 0x17f   : > { %5697 = vst [vmem:[#allocation55_spill] sm:$0xff] %v4330_v31  ;;  %5699 = vst [vmem:[#allocation57_spill] sm:$0xff] %v4342_v16  ;;  %v3301_v22 = vpop.eup %3300  ;;  %v4351_v62 = vmul.f32 %v3299_v24, %v4061_v42  ;;  %3320 = vpow2.f32 %v933_v17  ;;  %v943_v57 = vmul.f32 1.442695, %v843_v48  ;;  %v846_v63 = vsub.f32 0.0, %v4320_v52  ;;  %v409_v31 = vpop.permute.xlu0 %408 }
 0x180   : > { %5700 = vst [vmem:[#allocation58_spill] sm:$0xff] %v4345_v32  ;;  %v3303_v54 = vpop.eup %3302  ;;  %3322 = vpow2.f32 %v935_v18  ;;  %v4362_v42 = vmul.f32 %v3293_v1, %v4050_v27  ;;  %v947_v24 = vmul.f32 1.442695, %v845_v55  ;;  %v4366_v17 = vmul.f32 %v4336_v14, %v4305_v41 }
 0x181   : > { %5701 = vst [vmem:[#allocation59_spill] sm:$0xff] %v4351_v62  ;;  %v3305_v40 = vpop.eup %3304  ;;  %3324 = vpow2.f32 %v939_v30  ;;  %v4369_v18 = vmul.f32 %v1272_v44, %v4342_v16  ;;  %v4372_v48 = vadd.f32 %v4152_v50, %v409_v31  ;;  %v4375_v15 = vmul.f32 %v3297_v60, %v4056_v37 }
 0x182   : > { %5702 = vst [vmem:[#allocation60_spill] sm:$0xff] %v4362_v42  ;;  %v3307_v9 = vpop.eup %3306  ;;  %5703 = vst [vmem:[#allocation61_spill] sm:$0xff] %v4366_v17  ;;  %3326 = vpow2.f32 %v937_v8  ;;  %v4378_v27 = vmul.f32 %v1275_v36, %v4351_v62  ;;  %v4381_v1 = vadd.f32 %v4164_v19, %v409_v31  ;;  %v4384_v55 = vmul.f32 %v3303_v54, %v4065_v47  ;;  %v1276_v19 = vld [vmem:[%s5567_s6 + $0xa8] sm:$0xff] }
 0x183   : > { %v3309_v12 = vpop.eup %3308  ;;  %3328 = vpow2.f32 %v941_v53  ;;  %v945_v8 = vmul.f32 1.442695, %v844_v39  ;;  %v4386_v44 = vmul.f32 1.442695, %v846_v63  ;;  %v4390_v37 = vmul.f32 %v4359_v38, %v4327_v58 }
 0x184   : > { %5704 = vst [vmem:[#allocation62_spill] sm:$0xff] %v4378_v27  ;;  %v3311_v30 = vpop.eup %3310  ;;  %5705 = vst [vmem:[#allocation63_spill] sm:$0xff] %v4384_v55  ;;  %3330 = vpow2.f32 %v943_v57  ;;  %v4393_v60 = vmul.f32 %v3301_v22, %v4063_v46  ;;  %v4400_v54 = vmul.f32 %v4369_v18, %v4342_v16  ;;  %v4403_v36 = vmul.f32 %v3305_v40, %v4079_v7  ;;  %v1257_v46 = vld [vmem:[%s5567_s6 + $0x10] sm:$0xff]  ;;  %v1258_v7 = vld [vmem:[%s5567_s6 + $0x18] sm:$0xff] }
 0x185   : > { %v3313_v50 = vpop.eup %3312  ;;  %5706 = vst [vmem:[#allocation64_spill] sm:$0xff] %v4390_v37  ;;  %v1024_v53 = vadd.f32 1.0, %v3311_v30  ;;  %3332 = vpow2.f32 %v947_v24  ;;  %v847_v39 = vsub.f32 0.0, %v4372_v48  ;;  %v4411_v63 = vmul.f32 %v4378_v27, %v4351_v62 }
 0x186   : > { %5707 = vst [vmem:[#allocation65_spill] sm:$0xff] %v4393_v60  ;;  %v3315_v47 = vpop.eup %3314  ;;  %5708 = vst [vmem:[#allocation66_spill] sm:$0xff] %v4400_v54  ;;  %v1026_v57 = vadd.f32 1.0, %v3313_v50  ;;  %v849_v30 = vsub.f32 0.0, %v4381_v1  ;;  %v4418_v50 = vmul.f32 %v1276_v19, %v4384_v55  ;;  %v4421_v58 = vadd.f32 %v4166_v4, %v409_v31  ;;  %v1262_v60 = vld [vmem:[%s5567_s6 + $0x38] sm:$0xff] }
 0x187   : > { %5709 = vst [vmem:[#allocation67_spill] sm:$0xff] %v4403_v36  ;;  %v3317_v22 = vpop.eup %3316  ;;  %5710 = vst [vmem:[#allocation68_spill] sm:$0xff] %v4411_v63  ;;  %3334 = vrcp.f32 %v1024_v53  ;;  %v1027_v24 = vadd.f32 1.0, %v3315_v47  ;;  %v4424_v53 = vmul.f32 %v1257_v46, %v4126_v6  ;;  %v1383_v47 = vadd.f32 %v4129_v10, %v4115_v61  ;;  %v414_v36 = vpop.permute.xlu1 %413  ;;  %v5711_v61 = vld [vmem:[#allocation11_spill] sm:$0xff] }
 0x188   : > { %v3319_v40 = vpop.eup %3318  ;;  %v1029_v16 = vadd.f32 1.0, %v3317_v22  ;;  %3336 = vpow2.f32 %v945_v8  ;;  %v4429_v19 = vadd.f32 %v4178_v11, %v409_v31  ;;  %v4432_v8 = vmul.f32 %v1258_v7, %v4147_v25 }
 0x189   : > { %v3321_v41 = vpop.eup %3320  ;;  %3338 = vrcp.f32 %v1027_v24  ;;  %v1028_v62 = vadd.f32 1.0, %v3319_v40  ;;  %v1384_v24 = vadd.f32 %v1383_v47, %v4424_v53  ;;  %v4436_v46 = vadd.f32 %v4192_v33, %v414_v36  ;;  %v1279_v33 = vld [vmem:[%s5567_s6 + $0xc0] sm:$0xff]  ;;  %v5713_v47 = vld [vmem:[#allocation13_spill] sm:$0xff] }
 0x18a   : > { %v3323_v63 = vpop.eup %3322  ;;  %3340 = vrcp.f32 %v1026_v57  ;;  %v1030_v27 = vadd.f32 1.0, %v3321_v41  ;;  %v4439_v10 = vmul.f32 %v3307_v9, %v5711_v61  ;;  %v4442_v11 = vadd.f32 %v4201_v3, %v414_v36  ;;  %v1261_v61 = vld [vmem:[%s5567_s6 + $0x30] sm:$0xff] }
 0x18b   : > { %v3325_v4 = vpop.eup %3324  ;;  %3342 = vrcp.f32 %v1028_v62  ;;  %v1031_v22 = vadd.f32 1.0, %v3323_v63  ;;  %v848_v62 = vsub.f32 0.0, %v4421_v58  ;;  %v1385_v63 = vadd.f32 %v1384_v24, %v4432_v8 }
 0x18c   : > { %v3327_v40 = vpop.eup %3326  ;;  %5712 = vst [vmem:[#allocation11_spill] sm:$0xff] %v4439_v10  ;;  %3344 = vrcp.f32 %v1029_v16  ;;  %v1033_v41 = vadd.f32 1.0, %v3325_v4  ;;  %v4450_v9 = vmul.f32 %v3309_v12, %v5713_v47  ;;  %v4453_v3 = vadd.f32 %v4203_v59, %v414_v36 }
 0x18d   : > { %v3329_v31 = vpop.eup %3328  ;;  %3346 = vrcp.f32 %v1030_v27  ;;  %v1032_v57 = vadd.f32 1.0, %v3327_v40  ;;  %v850_v40 = vsub.f32 0.0, %v4429_v19  ;;  %1386 = vadd.xlane.f32.xlu0 %v1385_v63  ;;  %v851_v24 = vsub.f32 0.0, %v4436_v46 }
 0x18e   : > { %v3331_v7 = vpop.eup %3330  ;;  %5714 = vst [vmem:[#allocation13_spill] sm:$0xff] %v4450_v9  ;;  %3348 = vrcp.f32 %v1031_v22  ;;  %v1034_v16 = vadd.f32 1.0, %v3329_v31  ;;  %v951_v47 = vmul.f32 1.442695, %v847_v39  ;;  %v853_v22 = vsub.f32 0.0, %v4442_v11 }
 0x18f   : > { %v3333_v4 = vpop.eup %3332  ;;  %3350 = vrcp.f32 %v1033_v41  ;;  %v1035_v27 = vadd.f32 1.0, %v3331_v7  ;;  %v4462_v59 = vmul.f32 %v1279_v33, %v4439_v10  ;;  %v955_v41 = vmul.f32 1.442695, %v849_v30 }
 0x190   : > { %3352 = vrcp.f32 %v1032_v57  ;;  %v1037_v12 = vadd.f32 1.0, %v3333_v4  ;;  %v953_v7 = vmul.f32 1.442695, %v848_v62  ;;  %v852_v63 = vsub.f32 0.0, %v4453_v3 }
 0x191   : > { %v3335_v31 = vpop.eup %3334  ;;  %3354 = vrcp.f32 %v1034_v16  ;;  %v4469_v57 = vmul.f32 %v1261_v61, %v4173_v51  ;;  %v1388_v39 = vadd.f32 %v4176_v5, %v4159_v43  ;;  %v957_v33 = vmul.f32 1.442695, %v850_v40  ;;  %v5717_v40 = vld [vmem:[#allocation22_spill] sm:$0xff] }
 0x192   : > { %v3337_v9 = vpop.eup %3336  ;;  %3356 = vrcp.f32 %v1035_v27  ;;  %v959_v16 = vmul.f32 1.442695, %v851_v24  ;;  %v4474_v30 = vadd.f32 %v4212_v13, %v414_v36  ;;  %v5715_v27 = vld [vmem:[#allocation15_spill] sm:$0xff]  ;;  %v963_v37 = vmul.f32 1.442695, %v853_v22 }
 0x193   : > { %v3339_v4 = vpop.eup %3338  ;;  %3358 = vrcp.f32 %v1037_v12  ;;  %v4477_v54 = vmul.f32 %v3335_v31, %v5715_v27  ;;  %v1389_v61 = vadd.f32 %v1388_v39, %v4469_v57  ;;  %v4482_v43 = vmul.f32 %v1262_v60, %v4181_v21  ;;  %v5718_v13 = vld [vmem:[#allocation23_spill] sm:$0xff]  ;;  %v1280_v12 = vld [vmem:[%s5567_s6 + $0xc8] sm:$0xff] }
 0x194   : > { %v3341_v62 = vpop.eup %3340  ;;  %3360 = vpow2.f32 %v4386_v44  ;;  %v1465_v5 = vmul.f32 %v4424_v53, %v4126_v6  ;;  %v1527_v36 = vadd.f32 %v5718_v13, %v5717_v40  ;;  %v4492_v44 = vmul.f32 %v3339_v4, %v4190_v26  ;;  %v1283_v53 = vld [vmem:[%s5567_s6 + $0xe0] sm:$0xff]  ;;  %v1284_v31 = vld [vmem:[%s5567_s6 + $0xe8] sm:$0xff] }
 0x195   : > { %5716 = vst [vmem:[#allocation15_spill] sm:$0xff] %v4477_v54  ;;  %v3343_v17 = vpop.eup %3342  ;;  %3362 = vpow2.f32 %v951_v47  ;;  %v961_v60 = vmul.f32 1.442695, %v852_v63  ;;  %v1390_v39 = vadd.f32 %v1389_v61, %v4482_v43  ;;  %v1466_v26 = vmul.f32 %v4432_v8, %v4147_v25 }
 0x196   : > { %v3345_v24 = vpop.eup %3344  ;;  %5719 = vst [vmem:[#allocation22_spill] sm:$0xff] %v4492_v44  ;;  %v4495_v22 = vmul.f32 %v3343_v17, %v4246_v2  ;;  %3364 = vpow2.f32 %v955_v41  ;;  %v1528_v4 = vadd.f32 %v1527_v36, %v1465_v5  ;;  %v419_v17 = vpop.permute.xlu0 %418  ;;  %v4508_v41 = vmul.f32 %v4418_v50, %v4384_v55 }
 0x197   : > { %v3347_v47 = vpop.eup %3346  ;;  %3366 = vpow2.f32 %v953_v7  ;;  %v1036_v63 = vadd.f32 1.0, %v3337_v9  ;;  %v854_v27 = vsub.f32 0.0, %v4474_v30  ;;  %v4512_v13 = vmul.f32 %v1280_v12, %v4477_v54  ;;  %1391 = vadd.xlane.f32.xlu1 %v1390_v39  ;;  %v5724_v12 = vld [vmem:[#allocation35_spill] sm:$0xff] }
 0x198   : > { %5720 = vst [vmem:[#allocation23_spill] sm:$0xff] %v4495_v22  ;;  %v3349_v2 = vpop.eup %3348  ;;  %3368 = vpow2.f32 %v957_v33  ;;  %v1529_v7 = vadd.f32 %v1528_v4, %v1466_v26  ;;  %v4515_v8 = vadd.f32 %v4227_v20, %v419_v17  ;;  %v4519_v5 = vmul.f32 %v4462_v59, %v4439_v10  ;;  %v5725_v4 = vld [vmem:[#allocation19_spill] sm:$0xff] }
 0x199   : > { %v3351_v40 = vpop.eup %3350  ;;  %3370 = vpow2.f32 %v959_v16  ;;  %v4522_v9 = vmul.f32 %v1283_v53, %v4492_v44  ;;  %v4525_v33 = vmul.f32 %v1284_v31, %v4495_v22  ;;  %v4528_v16 = vmul.f32 %v3349_v2, %v4254_v23  ;;  %v5726_v53 = vld [vmem:[#allocation34_spill] sm:$0xff] }
 0x19a   : > { %v3353_v61 = vpop.eup %3352  ;;  %3372 = vpow2.f32 %v963_v37  ;;  %1530 = vadd.xlane.f32.xlu0 %v1529_v7  ;;  %v855_v20 = vsub.f32 0.0, %v4515_v8  ;;  %v4532_v39 = vadd.f32 %v5724_v12, %v419_v17  ;;  %v4535_v10 = vmul.f32 %v3341_v62, %v5725_v4  ;;  %v1287_v37 = vld [vmem:[%s5567_s6 + $0x100] sm:$0xff]  ;;  %v5730_v7 = vld [vmem:[#allocation36_spill] sm:$0xff] }
 0x19b   : > { %5721 = vst [vmem:[#allocation69_spill] sm:$0xff] %v4522_v9  ;;  %5722 = vst [vmem:[#allocation70_spill] sm:$0xff] %v4525_v33  ;;  %v3355_v36 = vpop.eup %3354  ;;  %3374 = vpow2.f32 %v961_v60  ;;  %v4538_v55 = vmul.f32 %v3345_v24, %v5726_v53  ;;  %v965_v23 = vmul.f32 1.442695, %v854_v27  ;;  %v4547_v31 = vmul.f32 %v4512_v13, %v4477_v54  ;;  %v5733_v53 = vld [vmem:[#allocation38_spill] sm:$0xff] }
 0x19c   : > { %5723 = vst [vmem:[#allocation71_spill] sm:$0xff] %v4528_v16  ;;  %v3357_v26 = vpop.eup %3356  ;;  %3376 = vrcp.f32 %v1036_v63  ;;  %v4550_v2 = vmul.f32 %v3347_v47, %v4251_v28  ;;  %v967_v62 = vmul.f32 1.442695, %v855_v20  ;;  %v4553_v12 = vadd.f32 %v5730_v7, %v419_v17 }
 0x19d   : > { %5727 = vst [vmem:[#allocation35_spill] sm:$0xff] %v4538_v55  ;;  %v4543_v60 = vpop.eup %3358  ;;  %5728 = vst [vmem:[#allocation19_spill] sm:$0xff] %v4547_v31  ;;  %v4557_v4 = vmul.f32 %v4522_v9, %v4492_v44  ;;  %v4560_v63 = vmul.f32 %v3351_v40, %v4257_v49  ;;  %v857_v27 = vsub.f32 0.0, %v4532_v39  ;;  %v4564_v54 = vadd.f32 %v5733_v53, %v419_v17  ;;  %v1265_v17 = vld [vmem:[%s5567_s6 + $0x50] sm:$0xff] }
 0x19e   : > { %5729 = vst [vmem:[#allocation34_spill] sm:$0xff] %v4550_v2  ;;  %v3361_v24 = vpop.eup %3360  ;;  %v4568_v28 = vmul.f32 %v4525_v33, %v4495_v22  ;;  %v4571_v47 = vmul.f32 %v1287_v37, %v4528_v16  ;;  %3378 = vpow2.f32 %v967_v62  ;;  %v4574_v44 = vmul.f32 %v3353_v61, %v4271_v35 }
 0x19f   : > { %5731 = vst [vmem:[#allocation36_spill] sm:$0xff] %v4557_v4  ;;  %5732 = vst [vmem:[#allocation72_spill] sm:$0xff] %v4560_v63  ;;  %v3363_v25 = vpop.eup %3362  ;;  %v1038_v20 = vadd.f32 1.0, %v3361_v24  ;;  %3380 = vpow2.f32 %v965_v23  ;;  %v856_v40 = vsub.f32 0.0, %v4553_v12  ;;  %v4581_v22 = vmul.f32 %v3355_v36, %v4279_v45  ;;  %v5738_v45 = vld [vmem:[#allocation28_spill] sm:$0xff]  ;;  %v5739_v4 = vld [vmem:[#allocation26_spill] sm:$0xff] }
 0x1a0   : > { %5734 = vst [vmem:[#allocation38_spill] sm:$0xff] %v4568_v28  ;;  %v3365_v7 = vpop.eup %3364  ;;  %5735 = vst [vmem:[#allocation73_spill] sm:$0xff] %v4574_v44  ;;  %v1039_v49 = vadd.f32 1.0, %v3363_v25  ;;  %v4584_v37 = vmul.f32 %v3357_v26, %v4292_v29  ;;  %v1266_v25 = vld [vmem:[%s5567_s6 + $0x58] sm:$0xff]  ;;  %v971_v23 = vmul.f32 1.442695, %v857_v27  ;;  %v1329_v36 = vmul.f32 %v1265_v17, %v5738_v45 }
 0x1a1   : > { %v3367_v53 = vpop.eup %3366  ;;  %5736 = vst [vmem:[#allocation74_spill] sm:$0xff] %v4581_v22  ;;  %3382 = vrcp.f32 %v1038_v20  ;;  %v1041_v62 = vadd.f32 1.0, %v3365_v7  ;;  %v858_v24 = vsub.f32 0.0, %v4564_v54  ;;  %v5740_v29 = vld [vmem:[#allocation37_spill] sm:$0xff]  ;;  %v969_v22 = vmul.f32 1.442695, %v856_v40 }
 0x1a2   : > { %5737 = vst [vmem:[#allocation75_spill] sm:$0xff] %v4584_v37  ;;  %v3369_v35 = vpop.eup %3368  ;;  %3384 = vrcp.f32 %v1039_v49  ;;  %v1040_v61 = vadd.f32 1.0, %v3367_v53  ;;  %v1393_v26 = vadd.f32 %v5740_v29, %v5739_v4  ;;  %v5741_v63 = vld [vmem:[#allocation31_spill] sm:$0xff]  ;;  %v424_v49 = vpop.permute.xlu1 %423  ;;  %v1469_v9 = vmul.f32 %v4469_v57, %v4173_v51 }
 0x1a3   : > { %v3371_v6 = vpop.eup %3370  ;;  %3386 = vrcp.f32 %v1041_v62  ;;  %v1042_v28 = vadd.f32 1.0, %v3369_v35  ;;  %v1330_v2 = vmul.f32 %v1266_v25, %v5741_v63  ;;  %v5742_v62 = vld [vmem:[#allocation27_spill] sm:$0xff]  ;;  %v5743_v35 = vld [vmem:[#allocation29_spill] sm:$0xff] }
 0x1a4   : > { %v3373_v20 = vpop.eup %3372  ;;  %3388 = vrcp.f32 %v1040_v61  ;;  %v1043_v7 = vadd.f32 1.0, %v3371_v6  ;;  %v1394_v27 = vadd.f32 %v1393_v26, %v1329_v36  ;;  %v1532_v55 = vadd.f32 %v5743_v35, %v5742_v62  ;;  %v5744_v4 = vld [vmem:[#allocation39_spill] sm:$0xff]  ;;  %v5745_v6 = vld [vmem:[#allocation41_spill] sm:$0xff]  ;;  %v5747_v62 = vld [vmem:[#allocation42_spill] sm:$0xff] }
 0x1a5   : > { %v3375_v33 = vpop.eup %3374  ;;  %v1045_v53 = vadd.f32 1.0, %v3373_v20  ;;  %3390 = vrcp.f32 %v1042_v28  ;;  %v4599_v29 = vadd.f32 %v5744_v4, %v424_v49  ;;  %v4602_v40 = vadd.f32 %v5745_v6, %v424_v49  ;;  %v1288_v35 = vld [vmem:[%s5567_s6 + $0x108] sm:$0xff]  ;;  %v5748_v4 = vld [vmem:[#allocation43_spill] sm:$0xff] }
 0x1a6   : > { %v3377_v17 = vpop.eup %3376  ;;  %v1044_v31 = vadd.f32 1.0, %v3375_v33  ;;  %3392 = vrcp.f32 %v1043_v7  ;;  %v1395_v25 = vadd.f32 %v1394_v27, %v1330_v2  ;;  %v1470_v61 = vmul.f32 %v4482_v43, %v4181_v21 }
 0x1a7   : > { %5746 = vst [vmem:[#allocation26_spill] sm:$0xff] %v4602_v40  ;;  %v1533_v26 = vadd.f32 %v1532_v55, %v1469_v9  ;;  %3394 = vrcp.f32 %v1045_v53  ;;  %v859_v57 = vsub.f32 0.0, %v4599_v29  ;;  %v861_v20 = vsub.f32 0.0, %v4602_v40  ;;  %v1291_v9 = vld [vmem:[%s5567_s6 + $0x120] sm:$0xff] }
 0x1a8   : > { %v4609_v28 = vadd.f32 %v5747_v62, %v424_v49  ;;  %v3379_v33 = vpop.eup %3378  ;;  %3396 = vrcp.f32 %v1044_v31  ;;  %v973_v7 = vmul.f32 1.442695, %v858_v24  ;;  %1396 = vadd.xlane.f32.xlu1 %v1395_v25  ;;  %v4615_v43 = vadd.f32 %v5748_v4, %v424_v49  ;;  %v1292_v24 = vld [vmem:[%s5567_s6 + $0x128] sm:$0xff] }
 0x1a9   : > { %v1534_v27 = vadd.f32 %v1533_v26, %v1470_v61  ;;  %v3381_v55 = vpop.eup %3380  ;;  %v4621_v53 = vmul.f32 %v3377_v17, %v4317_v34  ;;  %v1047_v6 = vadd.f32 1.0, %v3379_v33  ;;  %3398 = vpow2.f32 %v971_v23  ;;  %v5751_v17 = vld [vmem:[#allocation32_spill] sm:$0xff]  ;;  %v5752_v26 = vld [vmem:[#allocation45_spill] sm:$0xff] }
 0x1aa   : > { %5749 = vst [vmem:[#allocation37_spill] sm:$0xff] %v4615_v43  ;;  %v975_v62 = vmul.f32 1.442695, %v859_v57  ;;  %v4625_v31 = vmul.f32 %v4571_v47, %v4528_v16  ;;  %3400 = vpow2.f32 %v969_v22  ;;  %v979_v49 = vmul.f32 1.442695, %v861_v20  ;;  %v5754_v16 = vld [vmem:[#allocation40_spill] sm:$0xff] }
 0x1ab   : > { %5750 = vst [vmem:[#allocation27_spill] sm:$0xff] %v4621_v53  ;;  %v3383_v21 = vpop.eup %3382  ;;  %1535 = vadd.xlane.f32.xlu0 %v1534_v27  ;;  %v860_v25 = vsub.f32 0.0, %v4609_v28  ;;  %v4632_v34 = vmul.f32 %v1288_v35, %v4574_v44  ;;  %3402 = vrcp.f32 %v1047_v6  ;;  %v1473_v23 = vmul.f32 %v1329_v36, %v5738_v45  ;;  %v1269_v27 = vld [vmem:[%s5567_s6 + $0x70] sm:$0xff] }
 0x1ac   : > { %v3385_v61 = vpop.eup %3384  ;;  %v1537_v57 = vadd.f32 %v5752_v26, %v5751_v17  ;;  %v4638_v4 = vmul.f32 %v1291_v9, %v4584_v37  ;;  %3404 = vpow2.f32 %v973_v7  ;;  %v862_v20 = vsub.f32 0.0, %v4615_v43  ;;  %v429_v26 = vpop.permute.xlu0 %428 }
 0x1ad   : > { %v3387_v33 = vpop.eup %3386  ;;  %v977_v22 = vmul.f32 1.442695, %v860_v25  ;;  %v4645_v6 = vmul.f32 %v1292_v24, %v4621_v53  ;;  %3406 = vpow2.f32 %v975_v62  ;;  %v1474_v36 = vmul.f32 %v1330_v2, %v5741_v63  ;;  %v1270_v25 = vld [vmem:[%s5567_s6 + $0x78] sm:$0xff]  ;;  %v1295_v62 = vld [vmem:[%s5567_s6 + $0x140] sm:$0xff] }
 0x1ae   : > { %v3389_v35 = vpop.eup %3388  ;;  %v1538_v17 = vadd.f32 %v1537_v57, %v1473_v23  ;;  %v4649_v9 = vmul.f32 %v3385_v61, %v4372_v48  ;;  %v1046_v7 = vadd.f32 1.0, %v3381_v55  ;;  %3408 = vpow2.f32 %v979_v49  ;;  %v5755_v48 = vld [vmem:[#allocation44_spill] sm:$0xff] }
 0x1af   : > { %v1398_v45 = vadd.f32 %v4336_v14, %v5754_v16  ;;  %v3391_v51 = vpop.eup %3390  ;;  %3410 = vpow2.f32 %v977_v22  ;;  %v4660_v24 = vmul.f32 %v1269_v27, %v4333_v0  ;;  %v4663_v55 = vadd.f32 %v5755_v48, %v429_v26 }
 0x1b0   : > { %5753 = vst [vmem:[#allocation29_spill] sm:$0xff] %v4649_v9  ;;  %v1539_v2 = vadd.f32 %v1538_v17, %v1474_v36  ;;  %v3393_v49 = vpop.eup %3392  ;;  %v4667_v61 = vmul.f32 %v4632_v34, %v4574_v44  ;;  %v4671_v14 = vmul.f32 %v4638_v4, %v4584_v37  ;;  %v4675_v16 = vmul.f32 %v4543_v60, %v4300_v56  ;;  %v5756_v17 = vld [vmem:[#allocation47_spill] sm:$0xff] }
 0x1b1   : > { %v981_v23 = vmul.f32 1.442695, %v862_v20  ;;  %v3395_v57 = vpop.eup %3394  ;;  %v4678_v22 = vmul.f32 %v1270_v25, %v4345_v32  ;;  %v1399_v27 = vadd.f32 %v1398_v45, %v4660_v24  ;;  %v863_v36 = vsub.f32 0.0, %v4663_v55  ;;  %v5760_v20 = vld [vmem:[#allocation48_spill] sm:$0xff] }
 0x1b2   : > { %1540 = vadd.xlane.f32.xlu1 %v1539_v2  ;;  %v4683_v48 = vadd.f32 %v5756_v17, %v429_v26  ;;  %v3397_v44 = vpop.eup %3396  ;;  %v4687_v37 = vmul.f32 %v4645_v6, %v4621_v53  ;;  %v4690_v56 = vmul.f32 %v1295_v62, %v4649_v9  ;;  %v4693_v60 = vmul.f32 %v3389_v35, %v4421_v58  ;;  %v1296_v2 = vld [vmem:[%s5567_s6 + $0x148] sm:$0xff] }
 0x1b3   : > { %v4696_v25 = vadd.f32 %v5760_v20, %v429_v26  ;;  %v3399_v45 = vpop.eup %3398  ;;  %3412 = vrcp.f32 %v1046_v7  ;;  %v1400_v17 = vadd.f32 %v1399_v27, %v4678_v22  ;;  %v983_v63 = vmul.f32 1.442695, %v863_v36  ;;  %v5761_v27 = vld [vmem:[#allocation49_spill] sm:$0xff] }
 0x1b4   : > { %5757 = vst [vmem:[#allocation39_spill] sm:$0xff] %v4683_v48  ;;  %5758 = vst [vmem:[#allocation41_spill] sm:$0xff] %v4687_v37  ;;  %v865_v53 = vsub.f32 0.0, %v4683_v48  ;;  %v3401_v43 = vpop.eup %3400  ;;  %v4704_v62 = vmul.f32 %v3383_v21, %v4320_v52  ;;  %v4707_v58 = vmul.f32 %v3387_v33, %v4381_v1  ;;  %v4710_v35 = vmul.f32 %v3391_v51, %v4429_v19  ;;  %v1273_v1 = vld [vmem:[%s5567_s6 + $0x90] sm:$0xff] }
 0x1b5   : > { %5759 = vst [vmem:[#allocation42_spill] sm:$0xff] %v4693_v60  ;;  %v1049_v20 = vadd.f32 1.0, %v3399_v45  ;;  %v3403_v40 = vpop.eup %3402  ;;  %v1048_v37 = vadd.f32 1.0, %v3401_v43  ;;  %3414 = vpow2.f32 %v981_v23  ;;  %1401 = vadd.xlane.f32.xlu0 %v1400_v17  ;;  %v4713_v36 = vadd.f32 %v5761_v27, %v429_v26  ;;  %v1274_v26 = vld [vmem:[%s5567_s6 + $0x98] sm:$0xff] }
 0x1b6   : > { %v987_v7 = vmul.f32 1.442695, %v865_v53  ;;  %v3405_v48 = vpop.eup %3404  ;;  %v4717_v21 = vmul.f32 %v4690_v56, %v4649_v9  ;;  %v4720_v52 = vmul.f32 %v1296_v2, %v4693_v60  ;;  %3416 = vpow2.f32 %v983_v63 }
 0x1b7   : > { %5762 = vst [vmem:[#allocation43_spill] sm:$0xff] %v4713_v36  ;;  %v864_v51 = vsub.f32 0.0, %v4696_v25  ;;  %v3407_v19 = vpop.eup %3406  ;;  %v4727_v43 = vmul.f32 %v3393_v49, %v4436_v46  ;;  %3418 = vrcp.f32 %v1049_v20  ;;  %v1050_v53 = vadd.f32 1.0, %v3405_v48 }
 0x1b8   : > { %v866_v33 = vsub.f32 0.0, %v4713_v36  ;;  %v3409_v23 = vpop.eup %3408  ;;  %v4734_v63 = vmul.f32 %v3395_v57, %v4442_v11  ;;  %v4737_v45 = vmul.f32 %v3397_v44, %v4453_v3  ;;  %3420 = vrcp.f32 %v1048_v37  ;;  %v434_v57 = vpop.permute.xlu1 %433 }
 0x1b9   : > { %5763 = vst [vmem:[#allocation32_spill] sm:$0xff] %v4727_v43  ;;  %v1051_v2 = vadd.f32 1.0, %v3407_v19  ;;  %v3411_v17 = vpop.eup %3410  ;;  %v4740_v46 = vmul.f32 %v3403_v40, %v4515_v8  ;;  %3422 = vpow2.f32 %v987_v7  ;;  %v1337_v49 = vmul.f32 %v1273_v1, %v4362_v42  ;;  %v1299_v8 = vld [vmem:[%s5567_s6 + $0x160] sm:$0xff]  ;;  %v5766_v7 = vld [vmem:[#allocation46_spill] sm:$0xff]  ;;  %v5767_v1 = vld [vmem:[#allocation61_spill] sm:$0xff] }
 0x1ba   : > { %5764 = vst [vmem:[#allocation45_spill] sm:$0xff] %v4737_v45  ;;  %v1403_v48 = vadd.f32 %v4369_v18, %v4359_v38  ;;  %3424 = vrcp.f32 %v1050_v53  ;;  %v1053_v20 = vadd.f32 1.0, %v3409_v23  ;;  %v985_v27 = vmul.f32 1.442695, %v864_v51  ;;  %v5768_v18 = vld [vmem:[#allocation51_spill] sm:$0xff]  ;;  %v5770_v51 = vld [vmem:[#allocation52_spill] sm:$0xff] }
 0x1bb   : > { %5765 = vst [vmem:[#allocation40_spill] sm:$0xff] %v4740_v46  ;;  %v1338_v11 = vmul.f32 %v1274_v26, %v4375_v15  ;;  %3426 = vrcp.f32 %v1051_v2  ;;  %v1052_v3 = vadd.f32 1.0, %v3411_v17  ;;  %v989_v44 = vmul.f32 1.442695, %v866_v33  ;;  %v5772_v2 = vld [vmem:[#allocation53_spill] sm:$0xff] }
 0x1bc   : > { %v1404_v37 = vadd.f32 %v1403_v48, %v1337_v49  ;;  %v1477_v40 = vmul.f32 %v4660_v24, %v4333_v0  ;;  %v1542_v38 = vadd.f32 %v5767_v1, %v5766_v7  ;;  %v4754_v19 = vadd.f32 %v5768_v18, %v434_v57  ;;  %v5774_v48 = vld [vmem:[#allocation55_spill] sm:$0xff]  ;;  %v1300_v24 = vld [vmem:[%s5567_s6 + $0x168] sm:$0xff]  ;;  %v1277_v0 = vld [vmem:[%s5567_s6 + $0xb0] sm:$0xff] }
 0x1bd   : > { %v4757_v53 = vadd.f32 %v5770_v51, %v434_v57  ;;  %v3413_v26 = vpop.eup %3412  ;;  %v1478_v33 = vmul.f32 %v4678_v22, %v4345_v32  ;;  %v4762_v17 = vadd.f32 %v5772_v2, %v434_v57  ;;  %v4765_v9 = vadd.f32 %v5774_v48, %v434_v57  ;;  %v1303_v7 = vld [vmem:[%s5567_s6 + $0x180] sm:$0xff] }
 0x1be   : > { %5769 = vst [vmem:[#allocation44_spill] sm:$0xff] %v4754_v19  ;;  %v1405_v23 = vadd.f32 %v1404_v37, %v1338_v11  ;;  %3428 = vpow2.f32 %v985_v27  ;;  %v1543_v1 = vadd.f32 %v1542_v38, %v1477_v40  ;;  %v867_v37 = vsub.f32 0.0, %v4754_v19 }
 0x1bf   : > { %5771 = vst [vmem:[#allocation47_spill] sm:$0xff] %v4757_v53  ;;  %5773 = vst [vmem:[#allocation48_spill] sm:$0xff] %v4762_v17  ;;  %v869_v22 = vsub.f32 0.0, %v4757_v53  ;;  %v3415_v18 = vpop.eup %3414  ;;  %v4777_v51 = vmul.f32 %v4720_v52, %v4693_v60  ;;  %v4780_v57 = vmul.f32 %v1299_v8, %v4727_v43  ;;  %3430 = vpow2.f32 %v989_v44 }
 0x1c0   : > { %5775 = vst [vmem:[#allocation49_spill] sm:$0xff] %v4765_v9  ;;  %1406 = vadd.xlane.f32.xlu1 %v1405_v23  ;;  %v868_v2 = vsub.f32 0.0, %v4762_v17  ;;  %v3417_v48 = vpop.eup %3416  ;;  %v4784_v27 = vmul.f32 %v3413_v26, %v4474_v30  ;;  %v1544_v40 = vadd.f32 %v1543_v1, %v1478_v33  ;;  %v991_v38 = vmul.f32 1.442695, %v867_v37  ;;  %v5776_v33 = vld [vmem:[#allocation64_spill] sm:$0xff]  ;;  %v5777_v1 = vld [vmem:[#allocation66_spill] sm:$0xff] }
 0x1c1   : > { %v995_v32 = vmul.f32 1.442695, %v869_v22  ;;  %v3419_v60 = vpop.eup %3418  ;;  %v4790_v53 = vmul.f32 %v1300_v24, %v4737_v45  ;;  %v4793_v44 = vmul.f32 %v1303_v7, %v4740_v46  ;;  %3432 = vrcp.f32 %v1053_v20  ;;  %v1278_v24 = vld [vmem:[%s5567_s6 + $0xb8] sm:$0xff]  ;;  %v5778_v7 = vld [vmem:[#allocation65_spill] sm:$0xff] }
 0x1c2   : > { %v870_v8 = vsub.f32 0.0, %v4765_v9  ;;  %v3421_v23 = vpop.eup %3420  ;;  %3434 = vrcp.f32 %v1052_v3  ;;  %1545 = vadd.xlane.f32.xlu0 %v1544_v40  ;;  %v993_v30 = vmul.f32 1.442695, %v868_v2  ;;  %v1481_v26 = vmul.f32 %v1337_v49, %v4362_v42  ;;  %v5779_v17 = vld [vmem:[#allocation62_spill] sm:$0xff] }
 0x1c3   : > { %v1547_v37 = vadd.f32 %v5777_v1, %v5776_v33  ;;  %v3423_v22 = vpop.eup %3422  ;;  %v1054_v36 = vadd.f32 1.0, %v3415_v18  ;;  %3436 = vpow2.f32 %v991_v38  ;;  %v1341_v20 = vmul.f32 %v1277_v0, %v5778_v7  ;;  %v1281_v33 = vld [vmem:[%s5567_s6 + $0xd0] sm:$0xff]  ;;  %v5781_v38 = vld [vmem:[#allocation67_spill] sm:$0xff] }
 0x1c4   : > { %v1408_v9 = vadd.f32 %v4418_v50, %v5779_v17  ;;  %v3425_v3 = vpop.eup %3424  ;;  %v1055_v40 = vadd.f32 1.0, %v3417_v48  ;;  %3438 = vpow2.f32 %v995_v32  ;;  %v1482_v49 = vmul.f32 %v1338_v11, %v4375_v15  ;;  %v1304_v11 = vld [vmem:[%s5567_s6 + $0x188] sm:$0xff] }
 0x1c5   : > { %v1548_v2 = vadd.f32 %v1547_v37, %v1481_v26  ;;  %v3427_v1 = vpop.eup %3426  ;;  %v4810_v42 = vmul.f32 %v3421_v23, %v4553_v12  ;;  %v997_v18 = vmul.f32 1.442695, %v870_v8  ;;  %v1342_v0 = vmul.f32 %v1278_v24, %v5781_v38  ;;  %v1282_v12 = vld [vmem:[%s5567_s6 + $0xd8] sm:$0xff]  ;;  %v5782_v8 = vld [vmem:[#allocation13_spill] sm:$0xff] }
 0x1c6   : > { %v1409_v19 = vadd.f32 %v1408_v9, %v1341_v20  ;;  %v4815_v50 = vmul.f32 %v4780_v57, %v4727_v43  ;;  %v4819_v32 = vmul.f32 %v4790_v53, %v4737_v45  ;;  %3440 = vpow2.f32 %v993_v30  ;;  %v5789_v43 = vld [vmem:[#allocation72_spill] sm:$0xff] }
 0x1c7   : > { %5780 = vst [vmem:[#allocation46_spill] sm:$0xff] %v4810_v42  ;;  %v1549_v17 = vadd.f32 %v1548_v2, %v1482_v49  ;;  %3442 = vrcp.f32 %v1054_v36  ;;  %v1057_v9 = vadd.f32 1.0, %v3423_v22  ;;  %v1345_v23 = vmul.f32 %v1281_v33, %v5782_v8 }
 0x1c8   : > { %v1410_v48 = vadd.f32 %v1409_v19, %v1342_v0  ;;  %v3429_v26 = vpop.eup %3428  ;;  %v4830_v37 = vmul.f32 %v4793_v44, %v4740_v46  ;;  %v4833_v24 = vmul.f32 %v3419_v60, %v4532_v39  ;;  %3444 = vrcp.f32 %v1055_v40  ;;  %v5783_v60 = vld [vmem:[#allocation68_spill] sm:$0xff] }
 0x1c9   : > { %1550 = vadd.xlane.f32.xlu1 %v1549_v17  ;;  %v1413_v30 = vadd.f32 %v4512_v13, %v4462_v59  ;;  %v3431_v49 = vpop.eup %3430  ;;  %v4838_v36 = vmul.f32 %v1304_v11, %v4810_v42  ;;  %v4841_v19 = vmul.f32 %v3425_v3, %v4564_v54  ;;  %3446 = vpow2.f32 %v997_v18  ;;  %v1285_v59 = vld [vmem:[%s5567_s6 + $0xf0] sm:$0xff]  ;;  %v5784_v18 = vld [vmem:[#allocation19_spill] sm:$0xff] }
 0x1ca   : > { %1411 = vadd.xlane.f32.xlu0 %v1410_v48  ;;  %v1346_v22 = vmul.f32 %v1282_v12, %v4535_v10  ;;  %v1056_v2 = vadd.f32 1.0, %v3429_v26  ;;  %v1485_v39 = vmul.f32 %v1341_v20, %v5778_v7  ;;  %v1552_v40 = vadd.f32 %v4508_v41, %v5783_v60  ;;  %v1286_v26 = vld [vmem:[%s5567_s6 + $0xf8] sm:$0xff] }
 0x1cb   : > { %v1414_v33 = vadd.f32 %v1413_v30, %v1345_v23  ;;  %v4850_v13 = vpop.eup %3432  ;;  %v4853_v54 = vmul.f32 %v3427_v1, %v4599_v29  ;;  %3448 = vrcp.f32 %v1057_v9  ;;  %v1489_v3 = vmul.f32 %v1345_v23, %v5782_v8  ;;  %v1289_v29 = vld [vmem:[%s5567_s6 + $0x110] sm:$0xff] }
 0x1cc   : > { %v1557_v11 = vadd.f32 %v5784_v18, %v4519_v5  ;;  %v3435_v17 = vpop.eup %3434  ;;  %v1058_v20 = vadd.f32 1.0, %v3431_v49  ;;  %v1486_v41 = vmul.f32 %v1342_v0, %v5781_v38  ;;  %v1553_v48 = vadd.f32 %v1552_v40, %v1485_v39  ;;  %v1307_v5 = vld [vmem:[%s5567_s6 + $0x1a0] sm:$0xff]  ;;  %v5786_v49 = vld [vmem:[#allocation69_spill] sm:$0xff] }
 0x1cd   : > { %v1415_v12 = vadd.f32 %v1414_v33, %v1346_v22  ;;  %v3437_v1 = vpop.eup %3436  ;;  %v4867_v9 = vmul.f32 %v4838_v36, %v4810_v42  ;;  %v5785_v0 = vld [vmem:[#allocation35_spill] sm:$0xff]  ;;  %v5787_v33 = vld [vmem:[#allocation70_spill] sm:$0xff]  ;;  %3450 = vrcp.f32 %v1056_v2  ;;  %v1490_v46 = vmul.f32 %v1346_v22, %v4535_v10  ;;  %v1308_v22 = vld [vmem:[%s5567_s6 + $0x1a8] sm:$0xff] }
 0x1ce   : > { %v1558_v23 = vadd.f32 %v1557_v11, %v1489_v3  ;;  %v1349_v30 = vmul.f32 %v1285_v59, %v5785_v0  ;;  %v1418_v39 = vadd.f32 %v5787_v33, %v5786_v49  ;;  %v3439_v60 = vpop.eup %3438  ;;  %v1059_v40 = vadd.f32 1.0, %v3437_v1  ;;  %v1290_v42 = vld [vmem:[%s5567_s6 + $0x118] sm:$0xff] }
 0x1cf   : > { %1416 = vadd.xlane.f32.xlu1 %v1415_v12  ;;  %v1554_v18 = vadd.f32 %v1553_v48, %v1486_v41  ;;  %v4880_v45 = vmul.f32 %v3435_v17, %v4609_v28  ;;  %v5788_v3 = vld [vmem:[#allocation34_spill] sm:$0xff]  ;;  %v1353_v8 = vmul.f32 %v1289_v29, %v5789_v43  ;;  %v4885_v2 = vmul.f32 %v1307_v5, %v4853_v54  ;;  %v1293_v5 = vld [vmem:[%s5567_s6 + $0x130] sm:$0xff] }
 0x1d0   : > { %v1350_v11 = vmul.f32 %v1286_v26, %v5788_v3  ;;  %v1419_v59 = vadd.f32 %v1418_v39, %v1349_v30  ;;  %v3441_v49 = vpop.eup %3440  ;;  %3452 = vrcp.f32 %v1058_v20  ;;  %v1559_v12 = vadd.f32 %v1558_v23, %v1490_v46  ;;  %v5790_v1 = vld [vmem:[#allocation74_spill] sm:$0xff]  ;;  %v5791_v46 = vld [vmem:[#allocation36_spill] sm:$0xff] }
 0x1d1   : > { %1555 = vadd.xlane.f32.xlu0 %v1554_v18  ;;  %v1423_v28 = vadd.f32 %v4632_v34, %v4571_v47  ;;  %v3443_v17 = vpop.eup %3442  ;;  %v1061_v41 = vadd.f32 1.0, %v3439_v60  ;;  %v1060_v48 = vadd.f32 1.0, %v3441_v49  ;;  %v1354_v29 = vmul.f32 %v1290_v42, %v5790_v1  ;;  %v5792_v23 = vld [vmem:[#allocation38_spill] sm:$0xff] }
 0x1d2   : > { %v1420_v26 = vadd.f32 %v1419_v59, %v1350_v11  ;;  %v3445_v33 = vpop.eup %3444  ;;  %3454 = vrcp.f32 %v1059_v40  ;;  %v1493_v20 = vmul.f32 %v1349_v30, %v5785_v0  ;;  %v1562_v18 = vadd.f32 %v5792_v23, %v5791_v46  ;;  %v1297_v40 = vld [vmem:[%s5567_s6 + $0x150] sm:$0xff] }
 0x1d3   : > { %1560 = vadd.xlane.f32.xlu1 %v1559_v12  ;;  %v1424_v39 = vadd.f32 %v1423_v28, %v1353_v8  ;;  %v3447_v47 = vpop.eup %3446  ;;  %v4900_v34 = vmul.f32 %v1308_v22, %v4880_v45  ;;  %3456 = vrcp.f32 %v1060_v48  ;;  %v1497_v42 = vmul.f32 %v1353_v8, %v5789_v43  ;;  %v1294_v22 = vld [vmem:[%s5567_s6 + $0x138] sm:$0xff] }
 0x1d4   : > { %v1567_v60 = vadd.f32 %v4667_v61, %v4625_v31  ;;  %v1494_v30 = vmul.f32 %v1350_v11, %v5788_v3  ;;  %v1563_v49 = vadd.f32 %v1562_v18, %v1493_v20  ;;  %v1357_v12 = vmul.f32 %v1293_v5, %v4675_v16  ;;  %v1298_v8 = vld [vmem:[%s5567_s6 + $0x158] sm:$0xff] }
 0x1d5   : > { %1421 = vadd.xlane.f32.xlu0 %v1420_v26  ;;  %v1425_v59 = vadd.f32 %v1424_v39, %v1354_v29  ;;  %v3449_v31 = vpop.eup %3448  ;;  %v4917_v61 = vmul.f32 %v3445_v33, %v4663_v55  ;;  %3458 = vrcp.f32 %v1061_v41  ;;  %v1428_v11 = vadd.f32 %v4645_v6, %v4638_v4  ;;  %v5793_v6 = vld [vmem:[#allocation41_spill] sm:$0xff] }
 0x1d6   : > { %v1568_v28 = vadd.f32 %v1567_v60, %v1497_v42  ;;  %v1564_v48 = vadd.f32 %v1563_v49, %v1494_v30  ;;  %v1498_v26 = vmul.f32 %v1354_v29, %v5790_v1  ;;  %v1361_v39 = vmul.f32 %v1297_v40, %v4707_v58  ;;  %v1301_v42 = vld [vmem:[%s5567_s6 + $0x170] sm:$0xff]  ;;  %v1311_v40 = vld [vmem:[%s5567_s6 + $0x1c0] sm:$0xff] }
 0x1d7   : > { %1426 = vadd.xlane.f32.xlu1 %v1425_v59  ;;  %v1433_v5 = vadd.f32 %v4720_v52, %v4690_v56  ;;  %v1062_v20 = vadd.f32 1.0, %v3447_v47  ;;  %v1358_v46 = vmul.f32 %v1294_v22, %v4704_v62  ;;  %v1429_v23 = vadd.f32 %v1428_v11, %v1357_v12  ;;  %v3451_v41 = vpop.eup %3450  ;;  %v5794_v56 = vld [vmem:[#allocation26_spill] sm:$0xff]  ;;  %v5795_v47 = vld [vmem:[#allocation37_spill] sm:$0xff] }
 0x1d8   : > { %v1362_v55 = vmul.f32 %v1298_v8, %v4710_v35  ;;  %v1569_v33 = vadd.f32 %v1568_v28, %v1498_v26  ;;  %v1501_v4 = vmul.f32 %v1357_v12, %v4675_v16  ;;  %v1572_v29 = vadd.f32 %v5793_v6, %v4671_v14 }
 0x1d9   : > { %1565 = vadd.xlane.f32.xlu0 %v1564_v48  ;;  %v1434_v18 = vadd.f32 %v1433_v5, %v1361_v39  ;;  %v4935_v52 = vmul.f32 %v4850_v13, %v5794_v56  ;;  %v4938_v60 = vmul.f32 %v3443_v17, %v5795_v47  ;;  %v1430_v59 = vadd.f32 %v1429_v23, %v1358_v46  ;;  %v1305_v17 = vld [vmem:[%s5567_s6 + $0x190] sm:$0xff]  ;;  %v5797_v56 = vld [vmem:[#allocation44_spill] sm:$0xff] }
 0x1da   : > { %v1577_v30 = vadd.f32 %v4777_v51, %v4717_v21  ;;  %v3453_v14 = vpop.eup %3452  ;;  %v4947_v49 = vmul.f32 %v4885_v2, %v4853_v54  ;;  %v1573_v13 = vadd.f32 %v1572_v29, %v1501_v4  ;;  %v1505_v12 = vmul.f32 %v1361_v39, %v4707_v58  ;;  %v1302_v51 = vld [vmem:[%s5567_s6 + $0x178] sm:$0xff]  ;;  %v1312_v39 = vld [vmem:[%s5567_s6 + $0x1c8] sm:$0xff] }
 0x1db   : > { %1570 = vadd.xlane.f32.xlu1 %v1569_v33  ;;  %v1435_v22 = vadd.f32 %v1434_v18, %v1362_v55  ;;  %v4955_v8 = vmul.f32 %v4900_v34, %v4880_v45  ;;  %v4958_v21 = vmul.f32 %v3451_v41, %v4696_v25  ;;  %v1365_v28 = vmul.f32 %v1301_v42, %v4734_v63  ;;  %v5796_v41 = vld [vmem:[#allocation39_spill] sm:$0xff] }
 0x1dc   : > { %v1438_v11 = vadd.f32 %v4790_v53, %v4780_v57  ;;  %v3455_v48 = vpop.eup %3454  ;;  %v1375_v26 = vmul.f32 %v1311_v40, %v4917_v61  ;;  %3460 = vrcp.f32 %v1062_v20  ;;  %v1502_v25 = vmul.f32 %v1358_v46, %v4704_v62  ;;  %v1306_v53 = vld [vmem:[%s5567_s6 + $0x198] sm:$0xff] }
 0x1dd   : > { %1431 = vadd.xlane.f32.xlu0 %v1430_v59  ;;  %v1578_v5 = vadd.f32 %v1577_v30, %v1505_v12  ;;  %v3457_v23 = vpop.eup %3456  ;;  %v4972_v33 = vmul.f32 %v3449_v31, %v5796_v41  ;;  %v1369_v57 = vmul.f32 %v1305_v17, %v4833_v24  ;;  %v1443_v4 = vadd.f32 %v4838_v36, %v4793_v44  ;;  %v1309_v44 = vld [vmem:[%s5567_s6 + $0x1b0] sm:$0xff]  ;;  %v1315_v36 = vld [vmem:[%s5567_s6 + $0x1e0] sm:$0xff] }
 0x1de   : > { %v1439_v18 = vadd.f32 %v1438_v11, %v1365_v28  ;;  %v1574_v20 = vadd.f32 %v1573_v13, %v1502_v25  ;;  %v1506_v6 = vmul.f32 %v1362_v55, %v4710_v35  ;;  %v1366_v46 = vmul.f32 %v1302_v51, %v4784_v27  ;;  %v5799_v55 = vld [vmem:[#allocation48_spill] sm:$0xff]  ;;  %v5801_v12 = vld [vmem:[#allocation43_spill] sm:$0xff] }
 0x1df   : > { %1436 = vadd.xlane.f32.xlu1 %v1435_v22  ;;  %v1582_v31 = vadd.f32 %v4819_v32, %v4815_v50  ;;  %v3459_v29 = vpop.eup %3458  ;;  %v1376_v42 = vmul.f32 %v1312_v39, %v4958_v21  ;;  %v4986_v47 = vmul.f32 %v3455_v48, %v5797_v56  ;;  %v1444_v40 = vadd.f32 %v1443_v4, %v1369_v57  ;;  %v1316_v51 = vld [vmem:[%s5567_s6 + $0x1e8] sm:$0xff]  ;;  %v1313_v48 = vld [vmem:[%s5567_s6 + $0x1d0] sm:$0xff] }
 0x1e0   : > { %v1509_v59 = vmul.f32 %v1365_v28, %v4734_v63  ;;  %v4996_v30 = vmul.f32 %v3457_v23, %v5799_v55  ;;  %v1579_v50 = vadd.f32 %v1578_v5, %v1506_v6  ;;  %v1440_v32 = vadd.f32 %v1439_v18, %v1366_v46 }
 0x1e1   : > { %5798 = vst [vmem:[#allocation61_spill] sm:$0xff] %v4986_v47  ;;  %1575 = vadd.xlane.f32.xlu0 %v1574_v20  ;;  %v1370_v22 = vmul.f32 %v1306_v53, %v4841_v19  ;;  %v1519_v13 = vmul.f32 %v1375_v26, %v4917_v61  ;;  %v5001_v17 = vmul.f32 %v3453_v14, %v5801_v12  ;;  %v5802_v20 = vld [vmem:[#allocation47_spill] sm:$0xff] }
 0x1e2   : > { %5800 = vst [vmem:[#allocation51_spill] sm:$0xff] %v4996_v30  ;;  %v1583_v28 = vadd.f32 %v1582_v31, %v1509_v59  ;;  %v1587_v11 = vadd.f32 %v4867_v9, %v4830_v37  ;;  %v1513_v25 = vmul.f32 %v1369_v57, %v4833_v24  ;;  %v1373_v5 = vmul.f32 %v1309_v44, %v4935_v52  ;;  %v1310_v37 = vld [vmem:[%s5567_s6 + $0x1b8] sm:$0xff] }
 0x1e3   : > { %1580 = vadd.xlane.f32.xlu1 %v1579_v50  ;;  %v1445_v39 = vadd.f32 %v1444_v40, %v1370_v22  ;;  %v1448_v14 = vadd.f32 %v4900_v34, %v4885_v2  ;;  %v1520_v23 = vmul.f32 %v1376_v42, %v4958_v21  ;;  %v1379_v41 = vmul.f32 %v1315_v36, %v4986_v47  ;;  %v1314_v2 = vld [vmem:[%s5567_s6 + $0x1d8] sm:$0xff] }
 0x1e4   : > { %v1510_v18 = vmul.f32 %v1366_v46, %v4784_v27  ;;  %v1453_v9 = vadd.f32 %v1376_v42, %v1375_v26  ;;  %v1380_v53 = vmul.f32 %v1316_v51, %v4996_v30  ;;  %v1588_v57 = vadd.f32 %v1587_v11, %v1513_v25  ;;  %v5804_v51 = vld [vmem:[#allocation49_spill] sm:$0xff] }
 0x1e5   : > { %1441 = vadd.xlane.f32.xlu0 %v1440_v32  ;;  %v1449_v4 = vadd.f32 %v1448_v14, %v1373_v5  ;;  %v1377_v34 = vmul.f32 %v1313_v48, %v4972_v33  ;;  %v5027_v6 = vmul.f32 %v3459_v29, %v5802_v20  ;;  %v1514_v46 = vmul.f32 %v1370_v22, %v4841_v19  ;;  %v1317_v29 = vld [vmem:[%s5567_s6 + $0x1f0] sm:$0xff] }
 0x1e6   : > { %v3461_v31 = vpop.eup %3460  ;;  %v1584_v56 = vadd.f32 %v1583_v28, %v1510_v18  ;;  %v1374_v26 = vmul.f32 %v1310_v37, %v4938_v60  ;;  %v1592_v40 = vadd.f32 %v4955_v8, %v4947_v49  ;;  %v1378_v59 = vmul.f32 %v1314_v2, %v5001_v17 }
 0x1e7   : > { %5803 = vst [vmem:[#allocation52_spill] sm:$0xff] %v5027_v6  ;;  %1446 = vadd.xlane.f32.xlu1 %v1445_v39  ;;  %v1454_v42 = vadd.f32 %v1453_v9, %v1377_v34  ;;  %v1517_v44 = vmul.f32 %v1373_v5, %v4935_v52  ;;  %v1589_v36 = vadd.f32 %v1588_v57, %v1514_v46  ;;  %v1318_v39 = vld [vmem:[%s5567_s6 + $0x1f8] sm:$0xff] }
 0x1e8   : > { %v1450_v55 = vadd.f32 %v1449_v4, %v1374_v26  ;;  %v1597_v50 = vadd.f32 %v1520_v23, %v1519_v13  ;;  %v1458_v32 = vadd.f32 %v1380_v53, %v1379_v41  ;;  %v1523_v22 = vmul.f32 %v1379_v41, %v4986_v47 }
 0x1e9   : > { %1585 = vadd.xlane.f32.xlu0 %v1584_v56  ;;  %v1524_v12 = vmul.f32 %v1380_v53, %v4996_v30  ;;  %v5041_v28 = vmul.f32 %v3461_v31, %v5804_v51  ;;  %v1455_v49 = vadd.f32 %v1454_v42, %v1378_v59  ;;  %v1593_v8 = vadd.f32 %v1592_v40, %v1517_v44 }
 0x1ea   : > { %v1521_v11 = vmul.f32 %v1377_v34, %v4972_v33  ;;  %v1381_v48 = vmul.f32 %v1317_v29, %v5027_v6  ;;  %v1518_v13 = vmul.f32 %v1374_v26, %v4938_v60  ;;  %v1522_v23 = vmul.f32 %v1378_v59, %v5001_v17  ;;  %v1607_v34 = vld [vmem:[#allocation5] sm:$0xff] }
 0x1eb   : > { %5805 = vst [vmem:[#allocation53_spill] sm:$0xff] %v5041_v28  ;;  %1590 = vadd.xlane.f32.xlu1 %v1589_v36  ;;  %v1382_v41 = vmul.f32 %v1318_v39, %v5041_v28  ;;  %v1602_v18 = vadd.f32 %v1524_v12, %v1523_v22  ;;  %2984 = vmatprep.mubr.f32.mxu0 %v1607_v34 }
 0x1ec   : > { %v1598_v25 = vadd.f32 %v1597_v50, %v1521_v11  ;;  %v1459_v5 = vadd.f32 %v1458_v32, %v1381_v48  ;;  %v1594_v14 = vadd.f32 %v1593_v8, %v1518_v13  ;;  %v1525_v53 = vmul.f32 %v1381_v48, %v5027_v6  ;;  %3040 = vmatprep.mubr.f32.mxu1 %v1607_v34 }
 0x1ed   : > { %1451 = vadd.xlane.f32.xlu0 %v1450_v55  ;;  %v1526_v4 = vmul.f32 %v1382_v41, %v5041_v28 }
 0x1ee   : > { %v1599_v37 = vadd.f32 %v1598_v25, %v1522_v23  ;;  %v1460_v9 = vadd.f32 %v1459_v5, %v1382_v41  ;;  %v1603_v57 = vadd.f32 %v1602_v18, %v1525_v53 }
 0x1ef   : > { %1456 = vadd.xlane.f32.xlu1 %v1455_v49 }
 0x1f0   : > { %v1604_v2 = vadd.f32 %v1603_v57, %v1526_v4 }
 0x1f1   : > { %1595 = vadd.xlane.f32.xlu0 %v1594_v14 }
 0x1f3   : > { %1600 = vadd.xlane.f32.xlu1 %v1599_v37 }
 0x1f5   : > { %1461 = vadd.xlane.f32.xlu0 %v1460_v9 }
 0x1f9   : > { %1605 = vadd.xlane.f32.xlu0 %v1604_v2 }
 0x21a   : > { %v1387_v20 = vpop.xlane.xlu0 %1386 }
 0x224   : > { %v1392_v46 = vpop.xlane.xlu1 %1391 }
 0x225   : > { %v3072_v31 = vpack.c.bf16 %v1392_v46, %v1387_v20 }
 0x227   : > { %3073 = vmatprep.subr.bf16.mxu0 %v3072_v31  ;;  %v1531_v56 = vpop.xlane.xlu0 %1530 }
 0x228   : > { %3075 = vmatpush3.bf16.msra.mxu0 %v3072_v31 }
 0x235   : > { %v1397_v40 = vpop.xlane.xlu1 %1396 }
 0x238   : > { %v1536_v26 = vpop.xlane.xlu0 %1535 }
 0x239   : > { %v3104_v42 = vpack.c.bf16 %v1536_v26, %v1531_v56 }
 0x23b   : > { %3105 = vmatprep.subr.bf16.mxu1 %v3104_v42 }
 0x23c   : > { %3107 = vmatpush3.bf16.msra.mxu1 %v3104_v42 }
 0x23f   : > { %v1541_v29 = vpop.xlane.xlu1 %1540 }
 0x242   : > { %v1402_v59 = vpop.xlane.xlu0 %1401 }
 0x243   : > { %v3076_v44 = vpack.c.bf16 %v1402_v59, %v1397_v40 }
 0x245   : > { %3077 = vmatprep.subr.bf16.mxu0 %v3076_v44 }
 0x246   : > { %3079 = vmatpush3.bf16.msra.mxu0 %v3076_v44 }
 0x24d   : > { %v1407_v36 = vpop.xlane.xlu1 %1406 }
 0x24f   : > { %v1546_v55 = vpop.xlane.xlu0 %1545 }
 0x250   : > { %v3108_v50 = vpack.c.bf16 %v1546_v55, %v1541_v29  ;;  %v1608_v55 = vld [vmem:[#allocation5 + $0x8] sm:$0xff] }
 0x252   : > { %3109 = vmatprep.subr.bf16.mxu1 %v3108_v50 }
 0x253   : > { %3111 = vmatpush3.bf16.msra.mxu1 %v3108_v50 }
 0x256   : > { %v1551_v32 = vpop.xlane.xlu1 %1550 }
 0x257   : > { %v1412_v22 = vpop.xlane.xlu0 %1411 }
 0x258   : > { %v3080_v12 = vpack.c.bf16 %v1412_v22, %v1407_v36  ;;  %v1610_v22 = vld [vmem:[#allocation5 + $0x18] sm:$0xff] }
 0x25a   : > { %3081 = vmatprep.subr.bf16.mxu0 %v3080_v12 }
 0x25b   : > { %3083 = vmatpush3.bf16.msra.mxu0 %v3080_v12  ;;  %v1611_v12 = vld [vmem:[#allocation5 + $0x20] sm:$0xff] }
 0x25c   : > { %v1417_v51 = vpop.xlane.xlu1 %1416 }
 0x25e   : > { %v1556_v49 = vpop.xlane.xlu0 %1555 }
 0x25f   : > { %v3112_v8 = vpack.c.bf16 %v1556_v49, %v1551_v32  ;;  %v1609_v32 = vld [vmem:[#allocation5 + $0x10] sm:$0xff] }
 0x260   : > { %v1561_v11 = vpop.xlane.xlu1 %1560  ;;  %v1613_v49 = vld [vmem:[#allocation5 + $0x30] sm:$0xff] }
 0x261   : > { %3113 = vmatprep.subr.bf16.mxu1 %v3112_v8 }
 0x262   : > { %3115 = vmatpush3.bf16.msra.mxu1 %v3112_v8  ;;  %v1422_v48 = vpop.xlane.xlu0 %1421  ;;  %v1614_v8 = vld [vmem:[#allocation5 + $0x38] sm:$0xff] }
 0x263   : > { %v3084_v39 = vpack.c.bf16 %v1422_v48, %v1417_v51  ;;  %v1612_v51 = vld [vmem:[#allocation5 + $0x28] sm:$0xff] }
 0x264   : > { %v1427_v13 = vpop.xlane.xlu1 %1426  ;;  %v1616_v48 = vld [vmem:[#allocation5 + $0x48] sm:$0xff] }
 0x265   : > { %3085 = vmatprep.subr.bf16.mxu0 %v3084_v39 }
 0x266   : > { %3087 = vmatpush3.bf16.msra.mxu0 %v3084_v39  ;;  %v1566_v25 = vpop.xlane.xlu0 %1565  ;;  %v1617_v39 = vld [vmem:[#allocation5 + $0x50] sm:$0xff] }
 0x267   : > { %v3116_v5 = vpack.c.bf16 %v1566_v25, %v1561_v11  ;;  %v1615_v11 = vld [vmem:[#allocation5 + $0x40] sm:$0xff] }
 0x268   : > { %v1571_v14 = vpop.xlane.xlu1 %1570  ;;  %v1619_v25 = vld [vmem:[#allocation5 + $0x60] sm:$0xff] }
 0x269   : > { %3117 = vmatprep.subr.bf16.mxu1 %v3116_v5 }
 0x26a   : > { %3119 = vmatpush3.bf16.msra.mxu1 %v3116_v5  ;;  %v1432_v23 = vpop.xlane.xlu0 %1431  ;;  %v1620_v5 = vld [vmem:[#allocation5 + $0x68] sm:$0xff] }
 0x26b   : > { %v3088_v41 = vpack.c.bf16 %v1432_v23, %v1427_v13  ;;  %v1618_v13 = vld [vmem:[#allocation5 + $0x58] sm:$0xff] }
 0x26c   : > { %v1437_v18 = vpop.xlane.xlu1 %1436  ;;  %v1622_v23 = vld [vmem:[#allocation5 + $0x78] sm:$0xff] }
 0x26d   : > { %3089 = vmatprep.subr.bf16.mxu0 %v3088_v41 }
 0x26e   : > { %3091 = vmatpush3.bf16.msra.mxu0 %v3088_v41  ;;  %v1576_v37 = vpop.xlane.xlu0 %1575 }
 0x26f   : > { %v3120_v9 = vpack.c.bf16 %v1576_v37, %v1571_v14  ;;  %v1621_v14 = vld [vmem:[#allocation5 + $0x70] sm:$0xff] }
 0x270   : > { %v1581_v53 = vpop.xlane.xlu1 %1580 }
 0x271   : > { %3121 = vmatprep.subr.bf16.mxu1 %v3120_v9 }
 0x272   : > { %3123 = vmatpush3.bf16.msra.mxu1 %v3120_v9  ;;  %v1442_v57 = vpop.xlane.xlu0 %1441 }
 0x273   : > { %v3092_v4 = vpack.c.bf16 %v1442_v57, %v1437_v18 }
 0x274   : > { %v1447_v2 = vpop.xlane.xlu1 %1446 }
 0x275   : > { %3093 = vmatprep.subr.bf16.mxu0 %v3092_v4 }
 0x276   : > { %3095 = vmatpush3.bf16.msra.mxu0 %v3092_v4  ;;  %v1586_v34 = vpop.xlane.xlu0 %1585 }
 0x277   : > { %v3124_v20 = vpack.c.bf16 %v1586_v34, %v1581_v53 }
 0x278   : > { %v1591_v46 = vpop.xlane.xlu1 %1590 }
 0x279   : > { %3125 = vmatprep.subr.bf16.mxu1 %v3124_v20 }
 0x27a   : > { %3127 = vmatpush3.bf16.msra.mxu1 %v3124_v20  ;;  %v1452_v31 = vpop.xlane.xlu0 %1451 }
 0x27b   : > { %v3096_v56 = vpack.c.bf16 %v1452_v31, %v1447_v2 }
 0x27c   : > { %v1457_v40 = vpop.xlane.xlu1 %1456 }
 0x27d   : > { %3097 = vmatprep.subr.bf16.mxu0 %v3096_v56 }
 0x27e   : > { %3099 = vmatpush3.bf16.msra.mxu0 %v3096_v56  ;;  %v1596_v26 = vpop.xlane.xlu0 %1595 }
 0x27f   : > { %v3128_v42 = vpack.c.bf16 %v1596_v26, %v1591_v46 }
 0x280   : > { %v1601_v29 = vpop.xlane.xlu1 %1600 }
 0x281   : > { %3129 = vmatprep.subr.bf16.mxu1 %v3128_v42 }
 0x282   : > { %3131 = vmatpush3.bf16.msra.mxu1 %v3128_v42  ;;  %v1462_v59 = vpop.xlane.xlu0 %1461 }
 0x283   : > { %v3100_v44 = vpack.c.bf16 %v1462_v59, %v1457_v40 }
 0x285   : > { %3101 = vmatprep.subr.bf16.mxu0 %v3100_v44 }
 0x286   : > { %3103 = vmatpush3.bf16.msra.mxu0 %v3100_v44  ;;  %v1606_v36 = vpop.xlane.xlu0 %1605 }
 0x287   : > { %v3132_v50 = vpack.c.bf16 %v1606_v36, %v1601_v29 }
 0x289   : > { %3133 = vmatprep.subr.bf16.mxu1 %v3132_v50  ;;  %2985 = vmatmul.mubr.f32.vlgmr.msra.gmra.mrb[32].mxu0 %v1608_v55 }
 0x28a   : > { %3135 = vmatpush3.bf16.msra.mxu1 %v3132_v50  ;;  %2987 = vmatprep.mubr.f32.mxu0 %v1609_v32 }
 0x28d   : > { %3041 = vmatmul.mubr.f32.vlgmr.msra.gmra.mrb[32].mxu1 %v1608_v55  ;;  %2988 = vmatmul.mubr.f32.gmra.mrb[34].mxu0 %v1610_v22 }
 0x28e   : > { %3043 = vmatprep.mubr.f32.mxu1 %v1609_v32  ;;  %2990 = vmatprep.mubr.f32.mxu0 %v1611_v12 }
 0x291   : > { %3044 = vmatmul.mubr.f32.gmra.mrb[34].mxu1 %v1610_v22  ;;  %2991 = vmatmul.mubr.f32.gmra.mrb[36].mxu0 %v1612_v51 }
 0x292   : > { %3046 = vmatprep.mubr.f32.mxu1 %v1611_v12  ;;  %2993 = vmatprep.mubr.f32.mxu0 %v1613_v49 }
 0x295   : > { %3047 = vmatmul.mubr.f32.gmra.mrb[36].mxu1 %v1612_v51  ;;  %2994 = vmatmul.mubr.f32.gmra.mrb[38].mxu0 %v1614_v8 }
 0x296   : > { %3049 = vmatprep.mubr.f32.mxu1 %v1613_v49  ;;  %2996 = vmatprep.mubr.f32.mxu0 %v1615_v11 }
 0x299   : > { %3050 = vmatmul.mubr.f32.gmra.mrb[38].mxu1 %v1614_v8  ;;  %2997 = vmatmul.mubr.f32.gmra.mrb[40].mxu0 %v1616_v48 }
 0x29a   : > { %3052 = vmatprep.mubr.f32.mxu1 %v1615_v11  ;;  %2999 = vmatprep.mubr.f32.mxu0 %v1617_v39 }
 0x29d   : > { %3053 = vmatmul.mubr.f32.gmra.mrb[40].mxu1 %v1616_v48  ;;  %3000 = vmatmul.mubr.f32.gmra.mrb[42].mxu0 %v1618_v13 }
 0x29e   : > { %3055 = vmatprep.mubr.f32.mxu1 %v1617_v39  ;;  %3002 = vmatprep.mubr.f32.mxu0 %v1619_v25 }
 0x2a1   : > { %3056 = vmatmul.mubr.f32.gmra.mrb[42].mxu1 %v1618_v13  ;;  %3003 = vmatmul.mubr.f32.gmra.mrb[44].mxu0 %v1620_v5 }
 0x2a2   : > { %3058 = vmatprep.mubr.f32.mxu1 %v1619_v25  ;;  %3005 = vmatprep.mubr.f32.mxu0 %v1621_v14 }
 0x2a5   : > { %3059 = vmatmul.mubr.f32.gmra.mrb[44].mxu1 %v1620_v5  ;;  %3006 = vmatmul.mubr.f32.gmra.mrb[46].mxu0 %v1622_v23 }
 0x2a6   : > { %3061 = vmatprep.mubr.f32.mxu1 %v1621_v14 }
 0x2a9   : > { %3062 = vmatmul.mubr.f32.gmra.mrb[46].mxu1 %v1622_v23 }
 0x35c   : > { %v5053_v41 = vpop.f32.mrb[32].mxu0 }
 0x35d   : > { %v1914_v18 = vmul.f32 %v5053_v41, %v5053_v41  ;;  %v5057_v37 = vpop.f32.mrb[33].mxu0 }
 0x35e   : > { %v1913_v9 = vmul.f32 %v5057_v37, %v5057_v37 }
 0x360   : > { %v3042_v53 = vpop.f32.mrb[32].mxu1  ;;  %v5061_v57 = vpop.f32.mrb[34].mxu0 }
 0x361   : > { %v1930_v4 = vsub.f32 %v3042_v53, %v1914_v18  ;;  %v1834_v2 = vpop.f32.mrb[33].mxu1  ;;  %v1916_v34 = vmul.f32 %v5061_v57, %v5061_v57  ;;  %v5065_v20 = vpop.f32.mrb[35].mxu0 }
 0x362   : > { %v1929_v46 = vsub.f32 %v1834_v2, %v1913_v9  ;;  %v1915_v31 = vmul.f32 %v5065_v20, %v5065_v20 }
 0x363   : > { %v1946_v56 = vmax.f32 %v1930_v4, 0.0 }
 0x364   : > { %v1945_v26 = vmax.f32 %v1929_v46, 0.0  ;;  %v3045_v42 = vpop.f32.mrb[34].mxu1  ;;  %v5069_v40 = vpop.f32.mrb[36].mxu0 }
 0x365   : > { %v1962_v59 = vadd.f32 1e-05, %v1946_v56  ;;  %v1932_v44 = vsub.f32 %v3045_v42, %v1916_v34  ;;  %v1844_v29 = vpop.f32.mrb[35].mxu1  ;;  %v1918_v36 = vmul.f32 %v5069_v40, %v5069_v40  ;;  %v5073_v55 = vpop.f32.mrb[37].mxu0 }
 0x366   : > { %v1961_v50 = vadd.f32 1e-05, %v1945_v26  ;;  %v1931_v32 = vsub.f32 %v1844_v29, %v1915_v31  ;;  %v1917_v22 = vmul.f32 %v5073_v55, %v5073_v55  ;;  %v1994_v29 = vld [vmem:[%s5564_s3 + $0x8] sm:$0xff] }
 0x367   : > { %3462 = vrsqrt.f32 %v1962_v59  ;;  %v1948_v12 = vmax.f32 %v1932_v44, 0.0 }
 0x368   : > { %3464 = vrsqrt.f32 %v1961_v50  ;;  %v1947_v51 = vmax.f32 %v1931_v32, 0.0  ;;  %v3048_v49 = vpop.f32.mrb[36].mxu1  ;;  %v5077_v8 = vpop.f32.mrb[38].mxu0 }
 0x369   : > { %v1964_v11 = vadd.f32 1e-05, %v1948_v12  ;;  %v1934_v48 = vsub.f32 %v3048_v49, %v1918_v36  ;;  %v1854_v39 = vpop.f32.mrb[37].mxu1  ;;  %v1920_v13 = vmul.f32 %v5077_v8, %v5077_v8  ;;  %v5081_v25 = vpop.f32.mrb[39].mxu0 }
 0x36a   : > { %v1963_v5 = vadd.f32 1e-05, %v1947_v51  ;;  %v1933_v14 = vsub.f32 %v1854_v39, %v1917_v22  ;;  %v1919_v23 = vmul.f32 %v5081_v25, %v5081_v25  ;;  %v1993_v22 = vld [vmem:[%s5564_s3] sm:$0xff] }
 0x36b   : > { %3466 = vrsqrt.f32 %v1964_v11  ;;  %v1950_v18 = vmax.f32 %v1934_v48, 0.0 }
 0x36c   : > { %3468 = vrsqrt.f32 %v1963_v5  ;;  %v1949_v9 = vmax.f32 %v1933_v14, 0.0  ;;  %v3051_v53 = vpop.f32.mrb[38].mxu1  ;;  %v5085_v4 = vpop.f32.mrb[40].mxu0 }
 0x36d   : > { %v1966_v2 = vadd.f32 1e-05, %v1950_v18  ;;  %v1936_v34 = vsub.f32 %v3051_v53, %v1920_v13  ;;  %v1864_v46 = vpop.f32.mrb[39].mxu1  ;;  %v1922_v31 = vmul.f32 %v5085_v4, %v5085_v4  ;;  %v5089_v56 = vpop.f32.mrb[41].mxu0 }
 0x36e   : > { %v1965_v26 = vadd.f32 1e-05, %v1949_v9  ;;  %v1935_v42 = vsub.f32 %v1864_v46, %v1919_v23  ;;  %v1921_v59 = vmul.f32 %v5089_v56, %v5089_v56 }
 0x36f   : > { %3470 = vrsqrt.f32 %v1966_v2  ;;  %v1952_v44 = vmax.f32 %v1936_v34, 0.0  ;;  %v1996_v2 = vld [vmem:[%s5564_s3 + $0x18] sm:$0xff] }
 0x370   : > { %3472 = vrsqrt.f32 %v1965_v26  ;;  %v1951_v36 = vmax.f32 %v1935_v42, 0.0  ;;  %v3054_v50 = vpop.f32.mrb[40].mxu1  ;;  %v5096_v32 = vpop.f32.mrb[42].mxu0 }
 0x371   : > { %v3463_v12 = vpop.eup %3462  ;;  %v1968_v51 = vadd.f32 1e-05, %v1952_v44  ;;  %v1938_v49 = vsub.f32 %v3054_v50, %v1922_v31  ;;  %v1874_v11 = vpop.f32.mrb[41].mxu1  ;;  %v1924_v48 = vmul.f32 %v5096_v32, %v5096_v32  ;;  %v2025_v31 = vld [vmem:[%s5565_s4] sm:$0xff] }
 0x372   : > { %v5103_v39 = vpop.f32.mrb[43].mxu0  ;;  %v3465_v13 = vpop.eup %3464  ;;  %v1967_v5 = vadd.f32 1e-05, %v1951_v36  ;;  %v1937_v14 = vsub.f32 %v1874_v11, %v1921_v59  ;;  %v2010_v23 = vmul.f32 %v3463_v12, %v1994_v29 }
 0x373   : > { %v1923_v18 = vmul.f32 %v5103_v39, %v5103_v39  ;;  %3474 = vrsqrt.f32 %v1968_v51  ;;  %v1954_v9 = vmax.f32 %v1938_v49, 0.0  ;;  %v2009_v53 = vmul.f32 %v3465_v13, %v1993_v22  ;;  %v1995_v51 = vld [vmem:[%s5564_s3 + $0x10] sm:$0xff] }
 0x374   : > { %3476 = vrsqrt.f32 %v1967_v5  ;;  %v1953_v34 = vmax.f32 %v1937_v14, 0.0  ;;  %2080 = vperm.xlu0 %3204, %v2010_v23   ;;  %v3057_v46 = vpop.f32.mrb[42].mxu1  ;;  %v5113_v26 = vpop.f32.mrb[44].mxu0  ;;  %v2042_v42 = vmul.f32 %v5053_v41, %v2010_v23  ;;  %v1998_v23 = vld [vmem:[%s5564_s3 + $0x28] sm:$0xff] }
 0x375   : > { %v3467_v59 = vpop.eup %3466  ;;  %v1970_v44 = vadd.f32 1e-05, %v1954_v9  ;;  %2075 = vperm.xlu1 %3205, %v2009_v53   ;;  %v1940_v29 = vsub.f32 %v3057_v46, %v1924_v48  ;;  %v1884_v36 = vpop.f32.mrb[43].mxu1  ;;  %v2041_v50 = vmul.f32 %v2009_v53, %v5057_v37  ;;  %v1926_v22 = vmul.f32 %v5113_v26, %v5113_v26  ;;  %v2026_v48 = vld [vmem:[%s5565_s4 + $0x8] sm:$0xff] }
 0x376   : > { %v5119_v12 = vpop.f32.mrb[45].mxu0  ;;  %v3469_v49 = vpop.eup %3468  ;;  %v1969_v11 = vadd.f32 1e-05, %v1953_v34  ;;  %v1939_v13 = vsub.f32 %v1884_v36, %v1923_v18  ;;  %v2012_v41 = vmul.f32 %v3467_v59, %v1996_v2  ;;  %v1997_v18 = vld [vmem:[%s5564_s3 + $0x20] sm:$0xff] }
 0x377   : > { %3478 = vrsqrt.f32 %v1970_v44  ;;  %v1956_v5 = vmax.f32 %v1940_v29, 0.0  ;;  %v2057_v37 = vsub.f32 %v2025_v31, %v2041_v50  ;;  %v1925_v14 = vmul.f32 %v5119_v12, %v5119_v12 }
 0x378   : > { %3480 = vrsqrt.f32 %v1969_v11  ;;  %v1955_v9 = vmax.f32 %v1939_v13, 0.0  ;;  %v3060_v53 = vpop.f32.mrb[44].mxu1  ;;  %v2011_v2 = vmul.f32 %v3469_v49, %v1995_v51  ;;  %v5135_v34 = vpop.f32.mrb[46].mxu0  ;;  %v5138_v46 = vmul.f32 %v5061_v57, %v2012_v41 }
 0x379   : > { %v3471_v31 = vpop.eup %3470  ;;  %v1972_v59 = vadd.f32 1e-05, %v1956_v5  ;;  %2219 = vperm.xlu0 %3204, %v2057_v37   ;;  %2090 = vperm.xlu1 %3205, %v2012_v41   ;;  %v2058_v44 = vsub.f32 %v2026_v48, %v2042_v42  ;;  %v1942_v29 = vsub.f32 %v3060_v53, %v1926_v22  ;;  %v1894_v36 = vpop.f32.mrb[45].mxu1  ;;  %v1928_v50 = vmul.f32 %v5135_v34, %v5135_v34  ;;  %v2000_v42 = vld [vmem:[%s5564_s3 + $0x38] sm:$0xff]  ;;  %v2027_v48 = vld [vmem:[%s5565_s4 + $0x10] sm:$0xff] }
 0x37a   : > { %v5142_v11 = vpop.f32.mrb[47].mxu0  ;;  %v3473_v13 = vpop.eup %3472  ;;  %v1971_v28 = vadd.f32 1e-05, %v1955_v9  ;;  %v1941_v51 = vsub.f32 %v1894_v36, %v1925_v14  ;;  %v2043_v49 = vmul.f32 %v2011_v2, %v5065_v20  ;;  %v2014_v6 = vmul.f32 %v3471_v31, %v1998_v23  ;;  %v1999_v20 = vld [vmem:[%s5564_s3 + $0x30] sm:$0xff] }
 0x37b   : > { %3482 = vrsqrt.f32 %v1972_v59  ;;  %v2013_v57 = vmul.f32 %v3473_v13, %v1997_v18  ;;  %v1958_v30 = vmax.f32 %v1942_v29, 0.0  ;;  %v1927_v41 = vmul.f32 %v5142_v11, %v5142_v11 }
 0x37c   : > { %3484 = vrsqrt.f32 %v1971_v28  ;;  %v1957_v22 = vmax.f32 %v1941_v51, 0.0  ;;  %v3063_v5 = vpop.f32.mrb[46].mxu1  ;;  %v5158_v28 = vmul.f32 %v5069_v40, %v2014_v6  ;;  %v2059_v36 = vsub.f32 %v2027_v48, %v2043_v49 }
 0x37d   : > { %v3475_v37 = vpop.eup %3474  ;;  %2224 = vperm.xlu1 %3205, %v2058_v44   ;;  %2095 = vperm.xlu0 %3204, %v2013_v57   ;;  %v1974_v14 = vadd.f32 1e-05, %v1958_v30  ;;  %v1944_v23 = vsub.f32 %v3063_v5, %v1928_v50  ;;  %v1904_v9 = vpop.f32.mrb[47].mxu1  ;;  %v2045_v18 = vmul.f32 %v2013_v57, %v5073_v55  ;;  %v2002_v44 = vld [vmem:[%s5564_s3 + $0x48] sm:$0xff]  ;;  %v2001_v55 = vld [vmem:[%s5564_s3 + $0x40] sm:$0xff] }
 0x37e   : > { %v3477_v53 = vpop.eup %3476  ;;  %v1973_v31 = vadd.f32 1e-05, %v1957_v22  ;;  %v1943_v59 = vsub.f32 %v1904_v9, %v1927_v41  ;;  %v2016_v29 = vmul.f32 %v3475_v37, %v2000_v42 }
 0x37f   : > { %3486 = vrsqrt.f32 %v1974_v14  ;;  %v2015_v13 = vmul.f32 %v3477_v53, %v1999_v20  ;;  %v1960_v51 = vmax.f32 %v1944_v23, 0.0  ;;  %v2004_v20 = vld [vmem:[%s5564_s3 + $0x58] sm:$0xff] }
 0x380   : > { %3488 = vrsqrt.f32 %v1973_v31  ;;  %v1959_v30 = vmax.f32 %v1943_v59, 0.0  ;;  %v2048_v40 = vmul.f32 %v5077_v8, %v2016_v29  ;;  %v2028_v8 = vld [vmem:[%s5565_s4 + $0x18] sm:$0xff] }
 0x381   : > { %v3479_v50 = vpop.eup %3478  ;;  %2085 = vperm.xlu1 %3205, %v2011_v2   ;;  %2229 = vperm.xlu0 %3204, %v2059_v36   ;;  %v1976_v57 = vadd.f32 1e-05, %v1960_v51  ;;  %v2047_v49 = vmul.f32 %v2015_v13, %v5081_v25  ;;  %v2029_v2 = vld [vmem:[%s5565_s4 + $0x20] sm:$0xff]  ;;  %v2003_v25 = vld [vmem:[%s5564_s3 + $0x50] sm:$0xff]  ;;  %v2060_v53 = vsub.f32 %v2028_v8, %v5138_v46  ;;  %v2006_v36 = vld [vmem:[%s5564_s3 + $0x68] sm:$0xff] }
 0x382   : > { %v3481_v41 = vpop.eup %3480  ;;  %v1975_v42 = vadd.f32 1e-05, %v1959_v30  ;;  %v2018_v22 = vmul.f32 %v3479_v50, %v2002_v44  ;;  %v2061_v31 = vsub.f32 %v2029_v2, %v2045_v18  ;;  %v2005_v51 = vld [vmem:[%s5564_s3 + $0x60] sm:$0xff]  ;;  %v2008_v18 = vld [vmem:[%s5564_s3 + $0x78] sm:$0xff]  ;;  %v2030_v30 = vld [vmem:[%s5565_s4 + $0x28] sm:$0xff] }
 0x383   : > { %3490 = vrsqrt.f32 %v1976_v57  ;;  %v2017_v48 = vmul.f32 %v3481_v41, %v2001_v55  ;;  %v2007_v55 = vld [vmem:[%s5564_s3 + $0x70] sm:$0xff] }
 0x384   : > { %3492 = vrsqrt.f32 %v1975_v42  ;;  %v2050_v5 = vmul.f32 %v5085_v4, %v2018_v22 }
 0x385   : > { %v3483_v37 = vpop.eup %3482  ;;  %2100 = vperm.xlu1 %3205, %v2014_v6   ;;  %2105 = vperm.xlu0 %3204, %v2015_v13   ;;  %v2049_v14 = vmul.f32 %v2017_v48, %v5089_v56 }
 0x386   : > { %v3485_v23 = vpop.eup %3484  ;;  %v2020_v9 = vmul.f32 %v3483_v37, %v2004_v20  ;;  %v2062_v20 = vsub.f32 %v2030_v30, %v5158_v28  ;;  %v5809_v30 = vld [vmem:[#allocation20_spill] sm:$0xff] }
 0x387   : > { %v2019_v59 = vmul.f32 %v3485_v23, %v2003_v25 }
 0x388   : > { %v2052_v4 = vmul.f32 %v5096_v32, %v2020_v9  ;;  %v2031_v32 = vld [vmem:[%s5565_s4 + $0x30] sm:$0xff] }
 0x389   : > { %v3487_v6 = vpop.eup %3486  ;;  %2234 = vperm.xlu1 %3205, %v2060_v53   ;;  %2239 = vperm.xlu0 %3204, %v2061_v31   ;;  %v2051_v56 = vmul.f32 %v2019_v59, %v5103_v39  ;;  %v2063_v8 = vsub.f32 %v2031_v32, %v2047_v49  ;;  %v2038_v53 = vld [vmem:[%s5565_s4 + $0x68] sm:$0xff] }
 0x38a   : > { %v3489_v13 = vpop.eup %3488  ;;  %v2022_v44 = vmul.f32 %v3487_v6, %v2006_v36  ;;  %v5806_v6 = vld [vmem:[#allocation12_spill] sm:$0xff] }
 0x38b   : > { %v2021_v46 = vmul.f32 %v3489_v13, %v2005_v51  ;;  %v5807_v13 = vld [vmem:[#allocation14_spill] sm:$0xff] }
 0x38c   : > { %v2054_v39 = vmul.f32 %v5113_v26, %v2022_v44  ;;  %v2032_v26 = vld [vmem:[%s5565_s4 + $0x38] sm:$0xff] }
 0x38d   : > { %v3491_v50 = vpop.eup %3490  ;;  %2110 = vperm.xlu1 %3205, %v2016_v29   ;;  %2115 = vperm.xlu0 %3204, %v2017_v48   ;;  %v2053_v57 = vmul.f32 %v2021_v46, %v5119_v12  ;;  %v2033_v12 = vld [vmem:[%s5565_s4 + $0x40] sm:$0xff]  ;;  %v2064_v29 = vsub.f32 %v2032_v26, %v2048_v40  ;;  %v2036_v40 = vld [vmem:[%s5565_s4 + $0x58] sm:$0xff] }
 0x38e   : > { %v3493_v41 = vpop.eup %3492  ;;  %v2024_v42 = vmul.f32 %v3491_v50, %v2008_v18  ;;  %v2065_v28 = vsub.f32 %v2033_v12, %v2049_v14  ;;  %v2068_v14 = vsub.f32 %v2036_v40, %v2052_v4  ;;  %v2070_v31 = vsub.f32 %v2038_v53, %v2054_v39  ;;  %v5813_v12 = vld [vmem:[#allocation25_spill] sm:$0xff] }
 0x38f   : > { %v2023_v2 = vmul.f32 %v3493_v41, %v2007_v55 }
 0x390   : > { %v2056_v25 = vmul.f32 %v5135_v34, %v2024_v42  ;;  %v2034_v34 = vld [vmem:[%s5565_s4 + $0x48] sm:$0xff] }
 0x391   : > { %2244 = vperm.xlu1 %3205, %v2062_v20   ;;  %2249 = vperm.xlu0 %3204, %v2063_v8   ;;  %v2055_v37 = vmul.f32 %v2023_v2, %v5142_v11  ;;  %v2035_v11 = vld [vmem:[%s5565_s4 + $0x50] sm:$0xff]  ;;  %v2066_v49 = vsub.f32 %v2034_v34, %v2050_v5  ;;  %v5810_v20 = vld [vmem:[#allocation16_spill] sm:$0xff] }
 0x392   : > { %v2067_v48 = vsub.f32 %v2035_v11, %v2051_v56 }
 0x395   : > { %2120 = vperm.xlu1 %3205, %v2018_v22   ;;  %2125 = vperm.xlu0 %3204, %v2019_v59   ;;  %v2037_v22 = vld [vmem:[%s5565_s4 + $0x60] sm:$0xff]  ;;  %v2040_v59 = vld [vmem:[%s5565_s4 + $0x78] sm:$0xff] }
 0x396   : > { %v2069_v23 = vsub.f32 %v2037_v22, %v2053_v57  ;;  %v2072_v36 = vsub.f32 %v2040_v59, %v2056_v25  ;;  %v5815_v22 = vld [vmem:[#allocation50_spill] sm:$0xff] }
 0x399   : > { %2254 = vperm.xlu1 %3205, %v2064_v29   ;;  %2259 = vperm.xlu0 %3204, %v2065_v28  }
 0x39d   : > { %2130 = vperm.xlu1 %3205, %v2020_v9   ;;  %2135 = vperm.xlu0 %3204, %v2021_v46   ;;  %v2039_v9 = vld [vmem:[%s5565_s4 + $0x70] sm:$0xff] }
 0x39e   : > { %v2071_v5 = vsub.f32 %v2039_v9, %v2055_v37  ;;  %v5808_v46 = vld [vmem:[#allocation17_spill] sm:$0xff]  ;;  %v5812_v37 = vld [vmem:[#allocation24_spill] sm:$0xff] }
 0x3a1   : > { %2264 = vperm.xlu1 %3205, %v2066_v49   ;;  %2269 = vperm.xlu0 %3204, %v2067_v48   ;;  %v5814_v48 = vld [vmem:[#allocation33_spill] sm:$0xff] }
 0x3a5   : > { %2140 = vperm.xlu1 %3205, %v2022_v44   ;;  %2145 = vperm.xlu0 %3204, %v2023_v2   ;;  %v5811_v2 = vld [vmem:[#allocation18_spill] sm:$0xff] }
 0x3a9   : > { %2274 = vperm.xlu1 %3205, %v2068_v14   ;;  %2279 = vperm.xlu0 %3204, %v2069_v23   ;;  %v5816_v23 = vld [vmem:[#allocation56_spill] sm:$0xff] }
 0x3ad   : > { %2150 = vperm.xlu1 %3205, %v2024_v42   ;;  %2289 = vperm.xlu0 %3204, %v2071_v5   ;;  %v5817_v5 = vld [vmem:[#allocation58_spill] sm:$0xff] }
 0x3b1   : > { %2284 = vperm.xlu1 %3205, %v2070_v31  }
 0x3b5   : > { %2294 = vperm.xlu1 %3205, %v2072_v36  }
 0x3f3   : > { %v2081_v51 = vpop.permute.xlu0 %2080 }
 0x3f4   : > { %v2076_v4 = vpop.permute.xlu1 %2075  ;;  %v2157_v8 = vmul.f32 %v2081_v51, %v5810_v20  ;;  %v2158_v25 = vmul.f32 %v2081_v51, %v5811_v2  ;;  %v2159_v26 = vmul.f32 %v2081_v51, %v5812_v37  ;;  %v2160_v29 = vmul.f32 %v2081_v51, %v5813_v12 }
 0x3f5   : > { %v2153_v56 = vmul.f32 %v2076_v4, %v5806_v6  ;;  %v2154_v44 = vmul.f32 %v2076_v4, %v5807_v13  ;;  %v2155_v18 = vmul.f32 %v2076_v4, %v5808_v46  ;;  %v2156_v32 = vmul.f32 %v2076_v4, %v5809_v30 }
 0x3f8   : > { %v2220_v55 = vpop.permute.xlu0 %2219  ;;  %v2091_v50 = vpop.permute.xlu1 %2090 }
 0x3f9   : > { %v2297_v39 = vadd.f32 %v2220_v55, %v2153_v56  ;;  %v2298_v57 = vadd.f32 %v2220_v55, %v2154_v44  ;;  %v2299_v41 = vadd.f32 %v2220_v55, %v2155_v18  ;;  %v2300_v42 = vadd.f32 %v2220_v55, %v2156_v32 }
 0x3fa   : > { %v5244_v40 = vmul.f32 %v2091_v50, %v5814_v48  ;;  %v5247_v14 = vmul.f32 %v2091_v50, %v5815_v22  ;;  %v5250_v9 = vmul.f32 %v2091_v50, %v5816_v23  ;;  %v5253_v53 = vmul.f32 %v2091_v50, %v5817_v5  ;;  %v5818_v5 = vld [vmem:[#allocation54_spill] sm:$0xff] }
 0x3fb   : > { %v2361_v28 = vadd.f32 3.0, %v2297_v39  ;;  %v2362_v34 = vadd.f32 3.0, %v2298_v57  ;;  %v2363_v11 = vadd.f32 3.0, %v2299_v41  ;;  %v2364_v49 = vadd.f32 3.0, %v2300_v42 }
 0x3fc   : > { %v2225_v31 = vpop.permute.xlu1 %2224  ;;  %v2096_v6 = vpop.permute.xlu0 %2095 }
 0x3fd   : > { %v2425_v59 = vmax.f32 %v2361_v28, 0.0  ;;  %v2426_v36 = vmax.f32 %v2362_v34, 0.0  ;;  %v2427_v51 = vmax.f32 %v2363_v11, 0.0  ;;  %v2428_v4 = vmax.f32 %v2364_v49, 0.0 }
 0x3fe   : > { %v2301_v56 = vadd.f32 %v2225_v31, %v2157_v8  ;;  %v2302_v13 = vadd.f32 %v2225_v31, %v2158_v25  ;;  %v2303_v44 = vadd.f32 %v2225_v31, %v2159_v26  ;;  %v2304_v46 = vadd.f32 %v2225_v31, %v2160_v29 }
 0x3ff   : > { %v2489_v18 = vmin.f32 %v2425_v59, 6.0  ;;  %v2490_v30 = vmin.f32 %v2426_v36, 6.0  ;;  %v2491_v32 = vmin.f32 %v2427_v51, 6.0  ;;  %v2492_v55 = vmin.f32 %v2428_v4, 6.0 }
 0x400   : > { %v2365_v20 = vadd.f32 3.0, %v2301_v56  ;;  %v2366_v2 = vadd.f32 3.0, %v2302_v13  ;;  %v2367_v37 = vadd.f32 3.0, %v2303_v44  ;;  %v2368_v50 = vadd.f32 3.0, %v2304_v46  ;;  %v2086_v12 = vpop.permute.xlu1 %2085  ;;  %v2230_v59 = vpop.permute.xlu0 %2229 }
 0x401   : > { %v2553_v48 = vmul.f32 %v2489_v18, %v2297_v39  ;;  %v2554_v28 = vmul.f32 %v2490_v30, %v2298_v57  ;;  %v2555_v34 = vmul.f32 %v2491_v32, %v2299_v41  ;;  %v2556_v11 = vmul.f32 %v2492_v55, %v2300_v42  ;;  %v5819_v57 = vld [vmem:[#allocation57_spill] sm:$0xff]  ;;  %v5820_v42 = vld [vmem:[#allocation60_spill] sm:$0xff] }
 0x402   : > { %v2429_v49 = vmax.f32 %v2365_v20, 0.0  ;;  %v2430_v22 = vmax.f32 %v2366_v2, 0.0  ;;  %v2431_v8 = vmax.f32 %v2367_v37, 0.0  ;;  %v2432_v25 = vmax.f32 %v2368_v50, 0.0  ;;  %v5821_v37 = vld [vmem:[#allocation21_spill] sm:$0xff] }
 0x403   : > { %v2617_v26 = vmul.f32 0.16666667, %v2553_v48  ;;  %v2618_v29 = vmul.f32 0.16666667, %v2554_v28  ;;  %v2619_v23 = vmul.f32 0.16666667, %v2555_v34  ;;  %v5257_v31 = vmul.f32 %v2096_v6, %v5818_v5 }
 0x404   : > { %v2620_v36 = vmul.f32 0.16666667, %v2556_v11  ;;  %v2493_v51 = vmin.f32 %v2429_v49, 6.0  ;;  %v2494_v4 = vmin.f32 %v2430_v22, 6.0  ;;  %v2495_v47 = vmin.f32 %v2431_v8, 6.0  ;;  %v2101_v32 = vpop.permute.xlu1 %2100  ;;  %v5822_v28 = vld [vmem:[#allocation30_spill] sm:$0xff] }
 0x405   : > { %2681 = vst [vmem:[%s5259_s29] sm:$0xff] %v2617_v26  ;;  %2682 = vst [vmem:[%s5259_s29 + $0x8] sm:$0xff] %v2618_v29  ;;  %v2496_v39 = vmin.f32 %v2432_v25, 6.0  ;;  %v5265_v41 = vmul.f32 %v2096_v6, %v5819_v57  ;;  %v5268_v18 = vmul.f32 %v2096_v6, %v5820_v42  ;;  %v5271_v30 = vmul.f32 %v2096_v6, %v4375_v15  ;;  %v5823_v11 = vld [vmem:[#allocation28_spill] sm:$0xff]  ;;  %v5824_v22 = vld [vmem:[#allocation31_spill] sm:$0xff] }
 0x406   : > { %2683 = vst [vmem:[%s5259_s29 + $0x10] sm:$0xff] %v2619_v23  ;;  %2684 = vst [vmem:[%s5259_s29 + $0x18] sm:$0xff] %v2620_v36  ;;  %v2557_v55 = vmul.f32 %v2493_v51, %v2301_v56  ;;  %v2558_v20 = vmul.f32 %v2494_v4, %v2302_v13  ;;  %v2559_v2 = vmul.f32 %v2495_v47, %v2303_v44  ;;  %v2106_v44 = vpop.permute.xlu0 %2105  ;;  %v5825_v23 = vld [vmem:[#allocation59_spill] sm:$0xff] }
 0x407   : > { %v2161_v50 = vmul.f32 %v2086_v12, %v5821_v37  ;;  %v2560_v48 = vmul.f32 %v2496_v39, %v2304_v46  ;;  %v2162_v34 = vmul.f32 %v2086_v12, %v5822_v28  ;;  %v2163_v49 = vmul.f32 %v2086_v12, %v5823_v11  ;;  %v5826_v36 = vld [vmem:[#allocation63_spill] sm:$0xff] }
 0x408   : > { %v2164_v8 = vmul.f32 %v2086_v12, %v5824_v22  ;;  %v2621_v25 = vmul.f32 0.16666667, %v2557_v55  ;;  %v2622_v15 = vmul.f32 0.16666667, %v2558_v20  ;;  %v2623_v6 = vmul.f32 0.16666667, %v2559_v2  ;;  %v2235_v42 = vpop.permute.xlu1 %2234 }
 0x409   : > { %v2305_v26 = vadd.f32 %v2230_v59, %v2161_v50  ;;  %v2624_v56 = vmul.f32 0.16666667, %v2560_v48  ;;  %v2306_v13 = vadd.f32 %v2230_v59, %v2162_v34  ;;  %v2307_v29 = vadd.f32 %v2230_v59, %v2163_v49  ;;  %v5827_v20 = vld [vmem:[#allocation11_spill] sm:$0xff]  ;;  %v5829_v48 = vld [vmem:[#allocation13_spill] sm:$0xff] }
 0x40a   : > { %v2308_v47 = vadd.f32 %v2230_v59, %v2164_v8  ;;  %2685 = vst [vmem:[%s5259_s29 + $0x20] sm:$0xff] %v2621_v25  ;;  %2686 = vst [vmem:[%s5259_s29 + $0x28] sm:$0xff] %v2622_v15  ;;  %v5282_v5 = vmul.f32 %v2101_v32, %v5825_v23  ;;  %v5285_v51 = vmul.f32 %v2101_v32, %v5826_v36  ;;  %v5828_v37 = vld [vmem:[#allocation15_spill] sm:$0xff] }
 0x40b   : > { %2687 = vst [vmem:[%s5259_s29 + $0x30] sm:$0xff] %v2623_v6  ;;  %v2369_v46 = vadd.f32 3.0, %v2305_v26  ;;  %v5288_v12 = vmul.f32 %v2101_v32, %v5778_v7  ;;  %2688 = vst [vmem:[%s5259_s29 + $0x38] sm:$0xff] %v2624_v56  ;;  %v2370_v4 = vadd.f32 3.0, %v2306_v13  ;;  %v2371_v39 = vadd.f32 3.0, %v2307_v29 }
 0x40c   : > { %v2372_v57 = vadd.f32 3.0, %v2308_v47  ;;  %v5292_v59 = vmul.f32 %v2101_v32, %v5781_v38  ;;  %v5295_v2 = vmul.f32 %v2106_v44, %v5827_v20  ;;  %v5298_v50 = vmul.f32 %v2106_v44, %v5828_v37 }
 0x40d   : > { %v2433_v55 = vmax.f32 %v2369_v46, 0.0  ;;  %v5301_v28 = vmul.f32 %v2106_v44, %v5829_v48  ;;  %v2434_v7 = vmax.f32 %v2370_v4, 0.0  ;;  %v2435_v34 = vmax.f32 %v2371_v39, 0.0  ;;  %v2240_v39 = vpop.permute.xlu0 %2239 }
 0x40e   : > { %v2436_v11 = vmax.f32 %v2372_v57, 0.0  ;;  %v5304_v49 = vmul.f32 %v2106_v44, %v4535_v10  ;;  %v2309_v38 = vadd.f32 %v2235_v42, %v5244_v40  ;;  %v2310_v32 = vadd.f32 %v2235_v42, %v5247_v14 }
 0x40f   : > { %v2497_v22 = vmin.f32 %v2433_v55, 6.0  ;;  %v2311_v8 = vadd.f32 %v2235_v42, %v5250_v9  ;;  %v2498_v25 = vmin.f32 %v2434_v7, 6.0  ;;  %v2499_v15 = vmin.f32 %v2435_v34, 6.0 }
 0x410   : > { %v2500_v6 = vmin.f32 %v2436_v11, 6.0  ;;  %v2312_v56 = vadd.f32 %v2235_v42, %v5253_v53  ;;  %v2373_v23 = vadd.f32 3.0, %v2309_v38  ;;  %v2374_v36 = vadd.f32 3.0, %v2310_v32 }
 0x411   : > { %v2561_v46 = vmul.f32 %v2497_v22, %v2305_v26  ;;  %v2375_v4 = vadd.f32 3.0, %v2311_v8  ;;  %v2562_v10 = vmul.f32 %v2498_v25, %v2306_v13  ;;  %v2563_v44 = vmul.f32 %v2499_v15, %v2307_v29  ;;  %v2111_v25 = vpop.permute.xlu1 %2110 }
 0x412   : > { %v2564_v57 = vmul.f32 %v2500_v6, %v2308_v47  ;;  %v2376_v40 = vadd.f32 3.0, %v2312_v56  ;;  %v2437_v9 = vmax.f32 %v2373_v23, 0.0  ;;  %v2438_v55 = vmax.f32 %v2374_v36, 0.0 }
 0x413   : > { %v2625_v14 = vmul.f32 0.16666667, %v2561_v46  ;;  %v2439_v20 = vmax.f32 %v2375_v4, 0.0  ;;  %v2626_v37 = vmul.f32 0.16666667, %v2562_v10  ;;  %v2313_v26 = vadd.f32 %v2240_v39, %v5257_v31 }
 0x414   : > { %v2627_v48 = vmul.f32 0.16666667, %v2563_v44  ;;  %v2628_v53 = vmul.f32 0.16666667, %v2564_v57  ;;  %v2440_v42 = vmax.f32 %v2376_v40, 0.0  ;;  %v2501_v7 = vmin.f32 %v2437_v9, 6.0  ;;  %v2116_v44 = vpop.permute.xlu0 %2115 }
 0x415   : > { %2689 = vst [vmem:[%s5259_s29 + $0x40] sm:$0xff] %v2625_v14  ;;  %v2502_v34 = vmin.f32 %v2438_v55, 6.0  ;;  %v2503_v13 = vmin.f32 %v2439_v20, 6.0  ;;  %2690 = vst [vmem:[%s5259_s29 + $0x48] sm:$0xff] %v2626_v37  ;;  %v2314_v29 = vadd.f32 %v2240_v39, %v5265_v41  ;;  %v2315_v47 = vadd.f32 %v2240_v39, %v5268_v18  ;;  %v5831_v55 = vld [vmem:[#allocation23_spill] sm:$0xff] }
 0x416   : > { %2691 = vst [vmem:[%s5259_s29 + $0x50] sm:$0xff] %v2627_v48  ;;  %2692 = vst [vmem:[%s5259_s29 + $0x58] sm:$0xff] %v2628_v53  ;;  %v2316_v11 = vadd.f32 %v2240_v39, %v5271_v30  ;;  %v2377_v22 = vadd.f32 3.0, %v2313_v26  ;;  %v2504_v15 = vmin.f32 %v2440_v42, 6.0  ;;  %v2565_v6 = vmul.f32 %v2501_v7, %v2309_v38  ;;  %v2245_v7 = vpop.permute.xlu1 %2244 }
 0x417   : > { %v2566_v46 = vmul.f32 %v2502_v34, %v2310_v32  ;;  %v2567_v31 = vmul.f32 %v2503_v13, %v2311_v8  ;;  %v2378_v23 = vadd.f32 3.0, %v2314_v29  ;;  %v2379_v36 = vadd.f32 3.0, %v2315_v47  ;;  %v5830_v32 = vld [vmem:[#allocation22_spill] sm:$0xff]  ;;  %v5832_v13 = vld [vmem:[#allocation71_spill] sm:$0xff] }
 0x418   : > { %v2380_v4 = vadd.f32 3.0, %v2316_v11  ;;  %v2441_v10 = vmax.f32 %v2377_v22, 0.0  ;;  %v2568_v57 = vmul.f32 %v2504_v15, %v2312_v56  ;;  %v2629_v41 = vmul.f32 0.16666667, %v2565_v6  ;;  %v5833_v15 = vld [vmem:[#allocation73_spill] sm:$0xff] }
 0x419   : > { %v2630_v40 = vmul.f32 0.16666667, %v2566_v46  ;;  %v2631_v18 = vmul.f32 0.16666667, %v2567_v31  ;;  %v2442_v14 = vmax.f32 %v2378_v23, 0.0  ;;  %v2443_v30 = vmax.f32 %v2379_v36, 0.0  ;;  %v2250_v36 = vpop.permute.xlu0 %2249 }
 0x41a   : > { %v2444_v39 = vmax.f32 %v2380_v4, 0.0  ;;  %v2505_v9 = vmin.f32 %v2441_v10, 6.0  ;;  %v2632_v38 = vmul.f32 0.16666667, %v2568_v57  ;;  %2693 = vst [vmem:[%s5259_s29 + $0x60] sm:$0xff] %v2629_v41  ;;  %v5322_v8 = vmul.f32 %v2111_v25, %v5830_v32 }
 0x41b   : > { %2694 = vst [vmem:[%s5259_s29 + $0x68] sm:$0xff] %v2630_v40  ;;  %2695 = vst [vmem:[%s5259_s29 + $0x70] sm:$0xff] %v2631_v18  ;;  %v5325_v20 = vmul.f32 %v2111_v25, %v5831_v55  ;;  %v5328_v56 = vmul.f32 %v2111_v25, %v5785_v0  ;;  %v2506_v37 = vmin.f32 %v2442_v14, 6.0  ;;  %v2507_v48 = vmin.f32 %v2443_v30, 6.0 }
 0x41c   : > { %v2508_v53 = vmin.f32 %v2444_v39, 6.0  ;;  %v2569_v42 = vmul.f32 %v2505_v9, %v2313_v26  ;;  %2696 = vst [vmem:[%s5259_s29 + $0x78] sm:$0xff] %v2632_v38  ;;  %v5332_v34 = vmul.f32 %v2111_v25, %v5788_v3  ;;  %v5335_v22 = vmul.f32 %v2116_v44, %v5832_v13 }
 0x41d   : > { %v5338_v6 = vmul.f32 %v2116_v44, %v5833_v15  ;;  %v5341_v46 = vmul.f32 %v2116_v44, %v5789_v43  ;;  %v2570_v0 = vmul.f32 %v2506_v37, %v2314_v29  ;;  %v2571_v31 = vmul.f32 %v2507_v48, %v2315_v47 }
 0x41e   : > { %v2572_v23 = vmul.f32 %v2508_v53, %v2316_v11  ;;  %v2633_v26 = vmul.f32 0.16666667, %v2569_v42  ;;  %v5344_v3 = vmul.f32 %v2116_v44, %v5790_v1  ;;  %v2317_v25 = vadd.f32 %v2245_v7, %v5282_v5  ;;  %v2121_v53 = vpop.permute.xlu1 %2120 }
 0x41f   : > { %v2318_v4 = vadd.f32 %v2245_v7, %v5285_v51  ;;  %v2319_v10 = vadd.f32 %v2245_v7, %v5288_v12  ;;  %v2634_v57 = vmul.f32 0.16666667, %v2570_v0  ;;  %v2635_v43 = vmul.f32 0.16666667, %v2571_v31 }
 0x420   : > { %v2636_v41 = vmul.f32 0.16666667, %v2572_v23  ;;  %2697 = vst [vmem:[%s5259_s29 + $0x80] sm:$0xff] %v2633_v26  ;;  %v2320_v29 = vadd.f32 %v2245_v7, %v5292_v59  ;;  %v2381_v47 = vadd.f32 3.0, %v2317_v25  ;;  %v2321_v18 = vadd.f32 %v2250_v36, %v5295_v2 }
 0x421   : > { %v2382_v11 = vadd.f32 3.0, %v2318_v4  ;;  %v2383_v40 = vadd.f32 3.0, %v2319_v10  ;;  %2698 = vst [vmem:[%s5259_s29 + $0x88] sm:$0xff] %v2634_v57  ;;  %2699 = vst [vmem:[%s5259_s29 + $0x90] sm:$0xff] %v2635_v43  ;;  %v2322_v5 = vadd.f32 %v2250_v36, %v5298_v50  ;;  %v2323_v51 = vadd.f32 %v2250_v36, %v5301_v28  ;;  %v2126_v28 = vpop.permute.xlu0 %2125 }
 0x422   : > { %2700 = vst [vmem:[%s5259_s29 + $0x98] sm:$0xff] %v2636_v41  ;;  %v2384_v1 = vadd.f32 3.0, %v2320_v29  ;;  %v2324_v12 = vadd.f32 %v2250_v36, %v5304_v49  ;;  %v2445_v44 = vmax.f32 %v2381_v47, 0.0  ;;  %v2385_v39 = vadd.f32 3.0, %v2321_v18 }
 0x423   : > { %v2446_v14 = vmax.f32 %v2382_v11, 0.0  ;;  %v2447_v30 = vmax.f32 %v2383_v40, 0.0  ;;  %v2386_v9 = vadd.f32 3.0, %v2322_v5  ;;  %v2387_v38 = vadd.f32 3.0, %v2323_v51 }
 0x424   : > { %v2448_v59 = vmax.f32 %v2384_v1, 0.0  ;;  %v2388_v32 = vadd.f32 3.0, %v2324_v12  ;;  %v2509_v55 = vmin.f32 %v2445_v44, 6.0  ;;  %v2449_v48 = vmax.f32 %v2385_v39, 0.0 }
 0x425   : > { %v2510_v2 = vmin.f32 %v2446_v14, 6.0  ;;  %v2511_v37 = vmin.f32 %v2447_v30, 6.0  ;;  %v2450_v7 = vmax.f32 %v2386_v9, 0.0  ;;  %v2451_v50 = vmax.f32 %v2387_v38, 0.0  ;;  %v5835_v14 = vld [vmem:[#allocation27_spill] sm:$0xff]  ;;  %v2260_v9 = vpop.permute.xlu0 %2259  ;;  %v5836_v38 = vld [vmem:[#allocation29_spill] sm:$0xff] }
 0x426   : > { %v2512_v42 = vmin.f32 %v2448_v59, 6.0  ;;  %v2452_v13 = vmax.f32 %v2388_v32, 0.0  ;;  %v2573_v15 = vmul.f32 %v2509_v55, %v2317_v25  ;;  %v2513_v31 = vmin.f32 %v2449_v48, 6.0  ;;  %v5837_v55 = vld [vmem:[#allocation42_spill] sm:$0xff] }
 0x427   : > { %v2574_v49 = vmul.f32 %v2510_v2, %v2318_v4  ;;  %v2575_v0 = vmul.f32 %v2511_v37, %v2319_v10  ;;  %v2514_v26 = vmin.f32 %v2450_v7, 6.0  ;;  %v2515_v36 = vmin.f32 %v2451_v50, 6.0  ;;  %v5834_v10 = vld [vmem:[#allocation75_spill] sm:$0xff] }
 0x428   : > { %v2576_v23 = vmul.f32 %v2512_v42, %v2320_v29  ;;  %v2516_v57 = vmin.f32 %v2452_v13, 6.0  ;;  %v2637_v43 = vmul.f32 0.16666667, %v2573_v15  ;;  %v2577_v11 = vmul.f32 %v2513_v31, %v2321_v18 }
 0x429   : > { %v2638_v41 = vmul.f32 0.16666667, %v2574_v49  ;;  %v2639_v47 = vmul.f32 0.16666667, %v2575_v0  ;;  %v2578_v1 = vmul.f32 %v2514_v26, %v2322_v5  ;;  %v2579_v44 = vmul.f32 %v2515_v36, %v2323_v51  ;;  %v2255_v5 = vpop.permute.xlu1 %2254 }
 0x42a   : > { %v2640_v40 = vmul.f32 0.16666667, %v2576_v23  ;;  %v2580_v25 = vmul.f32 %v2516_v57, %v2324_v12  ;;  %2701 = vst [vmem:[%s5259_s29 + $0xa0] sm:$0xff] %v2637_v43  ;;  %v2641_v4 = vmul.f32 0.16666667, %v2577_v11  ;;  %v5362_v29 = vmul.f32 %v2121_v53, %v5834_v10  ;;  %v2136_v11 = vpop.permute.xlu0 %2135 }
 0x42b   : > { %2702 = vst [vmem:[%s5259_s29 + $0xa8] sm:$0xff] %v2638_v41  ;;  %2703 = vst [vmem:[%s5259_s29 + $0xb0] sm:$0xff] %v2639_v47  ;;  %v5365_v30 = vmul.f32 %v2121_v53, %v5835_v14  ;;  %v5368_v18 = vmul.f32 %v2121_v53, %v4675_v16  ;;  %v2642_v51 = vmul.f32 0.16666667, %v2578_v1  ;;  %v2643_v12 = vmul.f32 0.16666667, %v2579_v44 }
 0x42c   : > { %2704 = vst [vmem:[%s5259_s29 + $0xb8] sm:$0xff] %v2640_v40  ;;  %v2644_v39 = vmul.f32 0.16666667, %v2580_v25  ;;  %v5372_v59 = vmul.f32 %v2121_v53, %v4704_v62  ;;  %2705 = vst [vmem:[%s5259_s29 + $0xc0] sm:$0xff] %v2641_v4  ;;  %v5376_v32 = vmul.f32 %v2126_v28, %v5836_v38  ;;  %v5379_v2 = vmul.f32 %v2126_v28, %v5837_v55 }
 0x42d   : > { %v5382_v37 = vmul.f32 %v2126_v28, %v4707_v58  ;;  %v5385_v16 = vmul.f32 %v2126_v28, %v4710_v35  ;;  %2706 = vst [vmem:[%s5259_s29 + $0xc8] sm:$0xff] %v2642_v51  ;;  %2707 = vst [vmem:[%s5259_s29 + $0xd0] sm:$0xff] %v2643_v12  ;;  %v2325_v62 = vadd.f32 %v2255_v5, %v5322_v8  ;;  %v2131_v43 = vpop.permute.xlu1 %2130 }
 0x42e   : > { %2708 = vst [vmem:[%s5259_s29 + $0xd8] sm:$0xff] %v2644_v39  ;;  %v2326_v48 = vadd.f32 %v2255_v5, %v5325_v20  ;;  %v2327_v53 = vadd.f32 %v2255_v5, %v5328_v56  ;;  %v2328_v42 = vadd.f32 %v2255_v5, %v5332_v34  ;;  %v2329_v7 = vadd.f32 %v2260_v9, %v5335_v22 }
 0x42f   : > { %v2330_v50 = vadd.f32 %v2260_v9, %v5338_v6  ;;  %v2331_v58 = vadd.f32 %v2260_v9, %v5341_v46  ;;  %v2332_v35 = vadd.f32 %v2260_v9, %v5344_v3  ;;  %v2389_v13 = vadd.f32 3.0, %v2325_v62 }
 0x430   : > { %v2390_v28 = vadd.f32 3.0, %v2326_v48  ;;  %v2391_v15 = vadd.f32 3.0, %v2327_v53  ;;  %v2392_v49 = vadd.f32 3.0, %v2328_v42  ;;  %v2393_v0 = vadd.f32 3.0, %v2329_v7 }
 0x431   : > { %v2394_v8 = vadd.f32 3.0, %v2330_v50  ;;  %v2395_v31 = vadd.f32 3.0, %v2331_v58  ;;  %v2396_v20 = vadd.f32 3.0, %v2332_v35  ;;  %v2453_v23 = vmax.f32 %v2389_v13, 0.0 }
 0x432   : > { %v2454_v56 = vmax.f32 %v2390_v28, 0.0  ;;  %v2455_v26 = vmax.f32 %v2391_v15, 0.0  ;;  %v2456_v34 = vmax.f32 %v2392_v49, 0.0  ;;  %v2457_v36 = vmax.f32 %v2393_v0, 0.0  ;;  %v5838_v28 = vld [vmem:[#allocation32_spill] sm:$0xff] }
 0x433   : > { %v2458_v22 = vmax.f32 %v2394_v8, 0.0  ;;  %v2459_v57 = vmax.f32 %v2395_v31, 0.0  ;;  %v2460_v6 = vmax.f32 %v2396_v20, 0.0  ;;  %v2517_v46 = vmin.f32 %v2453_v23, 6.0  ;;  %v2270_v8 = vpop.permute.xlu0 %2269  ;;  %v5840_v31 = vld [vmem:[#allocation40_spill] sm:$0xff]  ;;  %v5841_v23 = vld [vmem:[#allocation46_spill] sm:$0xff] }
 0x434   : > { %v2518_v41 = vmin.f32 %v2454_v56, 6.0  ;;  %v2519_v3 = vmin.f32 %v2455_v26, 6.0  ;;  %v2520_v47 = vmin.f32 %v2456_v34, 6.0  ;;  %v2521_v40 = vmin.f32 %v2457_v36, 6.0 }
 0x435   : > { %v2522_v1 = vmin.f32 %v2458_v22, 6.0  ;;  %v2523_v44 = vmin.f32 %v2459_v57, 6.0  ;;  %v2524_v25 = vmin.f32 %v2460_v6, 6.0  ;;  %v2581_v4 = vmul.f32 %v2517_v46, %v2325_v62 }
 0x436   : > { %v2582_v10 = vmul.f32 %v2518_v41, %v2326_v48  ;;  %v2583_v14 = vmul.f32 %v2519_v3, %v2327_v53  ;;  %v2584_v5 = vmul.f32 %v2520_v47, %v2328_v42  ;;  %v2585_v51 = vmul.f32 %v2521_v40, %v2329_v7  ;;  %v5839_v53 = vld [vmem:[#allocation45_spill] sm:$0xff]  ;;  %v2265_v42 = vpop.permute.xlu1 %2264 }
 0x437   : > { %v2586_v12 = vmul.f32 %v2522_v1, %v2330_v50  ;;  %v2587_v39 = vmul.f32 %v2523_v44, %v2331_v58  ;;  %v2588_v9 = vmul.f32 %v2524_v25, %v2332_v35  ;;  %v2645_v38 = vmul.f32 0.16666667, %v2581_v4 }
 0x438   : > { %v2646_v55 = vmul.f32 0.16666667, %v2582_v10  ;;  %v2647_v13 = vmul.f32 0.16666667, %v2583_v14  ;;  %v5399_v15 = vmul.f32 %v2131_v43, %v5838_v28  ;;  %v2648_v62 = vmul.f32 0.16666667, %v2584_v5 }
 0x439   : > { %v2649_v48 = vmul.f32 0.16666667, %v2585_v51  ;;  %v2650_v49 = vmul.f32 0.16666667, %v2586_v12  ;;  %v5402_v0 = vmul.f32 %v2131_v43, %v5839_v53  ;;  %2709 = vst [vmem:[%s5259_s29 + $0xe0] sm:$0xff] %v2645_v38  ;;  %v5408_v58 = vmul.f32 %v2131_v43, %v4734_v63 }
 0x43a   : > { %2710 = vst [vmem:[%s5259_s29 + $0xe8] sm:$0xff] %v2646_v55  ;;  %2711 = vst [vmem:[%s5259_s29 + $0xf0] sm:$0xff] %v2647_v13  ;;  %v2651_v7 = vmul.f32 0.16666667, %v2587_v39  ;;  %v2652_v50 = vmul.f32 0.16666667, %v2588_v9  ;;  %v5411_v35 = vmul.f32 %v2131_v43, %v4784_v27  ;;  %v5417_v20 = vmul.f32 %v2136_v11, %v5840_v31  ;;  %v2141_v44 = vpop.permute.xlu1 %2140 }
 0x43b   : > { %2712 = vst [vmem:[%s5259_s29 + $0xf8] sm:$0xff] %v2648_v62  ;;  %2713 = vst [vmem:[%s5259_s29 + $0x100] sm:$0xff] %v2649_v48  ;;  %v5420_v56 = vmul.f32 %v2136_v11, %v5841_v23  ;;  %v5423_v26 = vmul.f32 %v2136_v11, %v4833_v24  ;;  %v5426_v34 = vmul.f32 %v2136_v11, %v4841_v19 }
 0x43c   : > { %2714 = vst [vmem:[%s5259_s29 + $0x108] sm:$0xff] %v2650_v49  ;;  %2715 = vst [vmem:[%s5259_s29 + $0x110] sm:$0xff] %v2651_v7  ;;  %v2333_v63 = vadd.f32 %v2265_v42, %v5362_v29  ;;  %v2334_v27 = vadd.f32 %v2265_v42, %v5365_v30  ;;  %v2335_v36 = vadd.f32 %v2265_v42, %v5368_v18 }
 0x43d   : > { %2716 = vst [vmem:[%s5259_s29 + $0x118] sm:$0xff] %v2652_v50  ;;  %v2336_v22 = vadd.f32 %v2265_v42, %v5372_v59  ;;  %v2337_v57 = vadd.f32 %v2270_v8, %v5376_v32  ;;  %v2338_v6 = vadd.f32 %v2270_v8, %v5379_v2  ;;  %v2339_v24 = vadd.f32 %v2270_v8, %v5382_v37  ;;  %v5438_v37 = vpop.permute.xlu0 %2145 }
 0x43e   : > { %v2340_v43 = vadd.f32 %v2270_v8, %v5385_v16  ;;  %v2397_v19 = vadd.f32 3.0, %v2333_v63  ;;  %v2398_v46 = vadd.f32 3.0, %v2334_v27  ;;  %v2399_v41 = vadd.f32 3.0, %v2335_v36  ;;  %v2275_v31 = vpop.permute.xlu1 %2274 }
 0x43f   : > { %v2400_v3 = vadd.f32 3.0, %v2336_v22  ;;  %v2401_v47 = vadd.f32 3.0, %v2337_v57  ;;  %v2402_v29 = vadd.f32 3.0, %v2338_v6  ;;  %v2403_v11 = vadd.f32 3.0, %v2339_v24 }
 0x440   : > { %v2404_v30 = vadd.f32 3.0, %v2340_v43  ;;  %v2461_v40 = vmax.f32 %v2397_v19, 0.0  ;;  %v2462_v18 = vmax.f32 %v2398_v46, 0.0  ;;  %v2463_v1 = vmax.f32 %v2399_v41, 0.0 }
 0x441   : > { %v2464_v59 = vmax.f32 %v2400_v3, 0.0  ;;  %v2465_v32 = vmax.f32 %v2401_v47, 0.0  ;;  %v2466_v25 = vmax.f32 %v2402_v29, 0.0  ;;  %v2467_v2 = vmax.f32 %v2403_v11, 0.0 }
 0x442   : > { %v2468_v4 = vmax.f32 %v2404_v30, 0.0  ;;  %v2525_v16 = vmin.f32 %v2461_v40, 6.0  ;;  %v2526_v10 = vmin.f32 %v2462_v18, 6.0  ;;  %v2527_v14 = vmin.f32 %v2463_v1, 6.0 }
 0x443   : > { %v2528_v5 = vmin.f32 %v2464_v59, 6.0  ;;  %v2529_v51 = vmin.f32 %v2465_v32, 6.0  ;;  %v2530_v12 = vmin.f32 %v2466_v25, 6.0  ;;  %v2531_v39 = vmin.f32 %v2467_v2, 6.0 }
 0x444   : > { %v2532_v9 = vmin.f32 %v2468_v4, 6.0  ;;  %v2589_v38 = vmul.f32 %v2525_v16, %v2333_v63  ;;  %v2590_v55 = vmul.f32 %v2526_v10, %v2334_v27  ;;  %v2591_v13 = vmul.f32 %v2527_v14, %v2335_v36 }
 0x445   : > { %v2592_v28 = vmul.f32 %v2528_v5, %v2336_v22  ;;  %v2593_v62 = vmul.f32 %v2529_v51, %v2337_v57  ;;  %v2594_v48 = vmul.f32 %v2530_v12, %v2338_v6  ;;  %v2595_v49 = vmul.f32 %v2531_v39, %v2339_v24  ;;  %v2280_v22 = vpop.permute.xlu0 %2279 }
 0x446   : > { %v2596_v53 = vmul.f32 %v2532_v9, %v2340_v43  ;;  %v2653_v42 = vmul.f32 0.16666667, %v2589_v38  ;;  %v2654_v7 = vmul.f32 0.16666667, %v2590_v55  ;;  %v2655_v50 = vmul.f32 0.16666667, %v2591_v13 }
 0x447   : > { %v5441_v8 = vmul.f32 %v2141_v44, %v4853_v54  ;;  %v2656_v23 = vmul.f32 0.16666667, %v2592_v28  ;;  %v2657_v63 = vmul.f32 0.16666667, %v2593_v62  ;;  %v2658_v27 = vmul.f32 0.16666667, %v2594_v48 }
 0x448   : > { %v5444_v36 = vmul.f32 %v2141_v44, %v4880_v45  ;;  %2717 = vst [vmem:[%s5259_s29 + $0x120] sm:$0xff] %v2653_v42  ;;  %2718 = vst [vmem:[%s5259_s29 + $0x128] sm:$0xff] %v2654_v7  ;;  %v2659_v57 = vmul.f32 0.16666667, %v2595_v49  ;;  %v2660_v6 = vmul.f32 0.16666667, %v2596_v53  ;;  %v5450_v24 = vmul.f32 %v2141_v44, %v4935_v52 }
 0x449   : > { %2719 = vst [vmem:[%s5259_s29 + $0x130] sm:$0xff] %v2655_v50  ;;  %v5453_v54 = vmul.f32 %v2141_v44, %v4938_v60  ;;  %2720 = vst [vmem:[%s5259_s29 + $0x138] sm:$0xff] %v2656_v23  ;;  %v2341_v45 = vadd.f32 %v2275_v31, %v5399_v15  ;;  %v2342_v43 = vadd.f32 %v2275_v31, %v5402_v0  ;;  %v5468_v44 = vpop.permute.xlu1 %2150  ;;  %v2290_v42 = vpop.permute.xlu0 %2289 }
 0x44a   : > { %2721 = vst [vmem:[%s5259_s29 + $0x140] sm:$0xff] %v2657_v63  ;;  %2722 = vst [vmem:[%s5259_s29 + $0x148] sm:$0xff] %v2658_v27  ;;  %v2343_v19 = vadd.f32 %v2275_v31, %v5408_v58  ;;  %v2344_v46 = vadd.f32 %v2275_v31, %v5411_v35  ;;  %v2345_v41 = vadd.f32 %v2280_v22, %v5417_v20 }
 0x44b   : > { %2723 = vst [vmem:[%s5259_s29 + $0x150] sm:$0xff] %v2659_v57  ;;  %2724 = vst [vmem:[%s5259_s29 + $0x158] sm:$0xff] %v2660_v6  ;;  %v2346_v52 = vadd.f32 %v2280_v22, %v5420_v56  ;;  %v2347_v60 = vadd.f32 %v2280_v22, %v5423_v26  ;;  %v2348_v3 = vadd.f32 %v2280_v22, %v5426_v34  ;;  %v2405_v47 = vadd.f32 3.0, %v2341_v45 }
 0x44c   : > { %v2406_v29 = vadd.f32 3.0, %v2342_v43  ;;  %v2407_v11 = vadd.f32 3.0, %v2343_v19  ;;  %v2408_v15 = vadd.f32 3.0, %v2344_v46  ;;  %v2409_v30 = vadd.f32 3.0, %v2345_v41 }
 0x44d   : > { %v2410_v0 = vadd.f32 3.0, %v2346_v52  ;;  %v2411_v40 = vadd.f32 3.0, %v2347_v60  ;;  %v2412_v58 = vadd.f32 3.0, %v2348_v3  ;;  %v2469_v18 = vmax.f32 %v2405_v47, 0.0  ;;  %v2285_v7 = vpop.permute.xlu1 %2284 }
 0x44e   : > { %v2470_v35 = vmax.f32 %v2406_v29, 0.0  ;;  %v2471_v1 = vmax.f32 %v2407_v11, 0.0  ;;  %v2472_v59 = vmax.f32 %v2408_v15, 0.0  ;;  %v2473_v20 = vmax.f32 %v2409_v30, 0.0 }
 0x44f   : > { %v2474_v56 = vmax.f32 %v2410_v0, 0.0  ;;  %v2475_v32 = vmax.f32 %v2411_v40, 0.0  ;;  %v2476_v26 = vmax.f32 %v2412_v58, 0.0  ;;  %v2533_v25 = vmin.f32 %v2469_v18, 6.0 }
 0x450   : > { %v2534_v34 = vmin.f32 %v2470_v35, 6.0  ;;  %v2535_v2 = vmin.f32 %v2471_v1, 6.0  ;;  %v2536_v4 = vmin.f32 %v2472_v59, 6.0  ;;  %v2537_v16 = vmin.f32 %v2473_v20, 6.0 }
 0x451   : > { %v2538_v10 = vmin.f32 %v2474_v56, 6.0  ;;  %v2539_v14 = vmin.f32 %v2475_v32, 6.0  ;;  %v2540_v5 = vmin.f32 %v2476_v26, 6.0  ;;  %v2597_v51 = vmul.f32 %v2533_v25, %v2341_v45 }
 0x452   : > { %v2598_v12 = vmul.f32 %v2534_v34, %v2342_v43  ;;  %v2599_v39 = vmul.f32 %v2535_v2, %v2343_v19  ;;  %v2600_v9 = vmul.f32 %v2536_v4, %v2344_v46  ;;  %v2601_v38 = vmul.f32 %v2537_v16, %v2345_v41 }
 0x453   : > { %v2602_v55 = vmul.f32 %v2538_v10, %v2346_v52  ;;  %v2603_v13 = vmul.f32 %v2539_v14, %v2347_v60  ;;  %v2604_v28 = vmul.f32 %v2540_v5, %v2348_v3  ;;  %v2661_v62 = vmul.f32 0.16666667, %v2597_v51 }
 0x454   : > { %v2662_v48 = vmul.f32 0.16666667, %v2598_v12  ;;  %v2663_v49 = vmul.f32 0.16666667, %v2599_v39  ;;  %v2209_v53 = vmul.f32 %v5438_v37, %v4917_v61  ;;  %v2664_v50 = vmul.f32 0.16666667, %v2600_v9 }
 0x455   : > { %v2665_v31 = vmul.f32 0.16666667, %v2601_v38  ;;  %v2666_v23 = vmul.f32 0.16666667, %v2602_v55  ;;  %v2210_v63 = vmul.f32 %v5438_v37, %v4958_v21  ;;  %2725 = vst [vmem:[%s5259_s29 + $0x160] sm:$0xff] %v2661_v62  ;;  %v2211_v57 = vmul.f32 %v5438_v37, %v4972_v33  ;;  %v5842_v39 = vld [vmem:[#allocation61_spill] sm:$0xff]  ;;  %v2295_v38 = vpop.permute.xlu1 %2294 }
 0x456   : > { %2726 = vst [vmem:[%s5259_s29 + $0x168] sm:$0xff] %v2662_v48  ;;  %2727 = vst [vmem:[%s5259_s29 + $0x170] sm:$0xff] %v2663_v49  ;;  %v2667_v27 = vmul.f32 0.16666667, %v2603_v13  ;;  %v2668_v22 = vmul.f32 0.16666667, %v2604_v28  ;;  %v2212_v61 = vmul.f32 %v5438_v37, %v5001_v17  ;;  %v2353_v6 = vadd.f32 %v2290_v42, %v2209_v53 }
 0x457   : > { %2728 = vst [vmem:[%s5259_s29 + $0x178] sm:$0xff] %v2664_v50  ;;  %2729 = vst [vmem:[%s5259_s29 + $0x180] sm:$0xff] %v2665_v31  ;;  %v2354_v45 = vadd.f32 %v2290_v42, %v2210_v63  ;;  %v2349_v43 = vadd.f32 %v2285_v7, %v5441_v8  ;;  %v2350_v21 = vadd.f32 %v2285_v7, %v5444_v36  ;;  %v5843_v62 = vld [vmem:[#allocation51_spill] sm:$0xff]  ;;  %v5845_v50 = vld [vmem:[#allocation53_spill] sm:$0xff] }
 0x458   : > { %2730 = vst [vmem:[%s5259_s29 + $0x188] sm:$0xff] %v2666_v23  ;;  %2731 = vst [vmem:[%s5259_s29 + $0x190] sm:$0xff] %v2667_v27  ;;  %v2355_v19 = vadd.f32 %v2290_v42, %v2211_v57  ;;  %v2356_v46 = vadd.f32 %v2290_v42, %v2212_v61  ;;  %v2351_v41 = vadd.f32 %v2285_v7, %v5450_v24  ;;  %v2417_v52 = vadd.f32 3.0, %v2353_v6  ;;  %v5844_v42 = vld [vmem:[#allocation52_spill] sm:$0xff] }
 0x459   : > { %2732 = vst [vmem:[%s5259_s29 + $0x198] sm:$0xff] %v2668_v22  ;;  %v2352_v33 = vadd.f32 %v2285_v7, %v5453_v54  ;;  %v2418_v60 = vadd.f32 3.0, %v2354_v45  ;;  %v2413_v17 = vadd.f32 3.0, %v2349_v43  ;;  %v2414_v37 = vadd.f32 3.0, %v2350_v21 }
 0x45a   : > { %v2419_v3 = vadd.f32 3.0, %v2355_v19  ;;  %v2420_v47 = vadd.f32 3.0, %v2356_v46  ;;  %v2415_v29 = vadd.f32 3.0, %v2351_v41  ;;  %v2481_v15 = vmax.f32 %v2417_v52, 0.0 }
 0x45b   : > { %v2416_v11 = vadd.f32 3.0, %v2352_v33  ;;  %v2482_v8 = vmax.f32 %v2418_v60, 0.0  ;;  %v2477_v30 = vmax.f32 %v2413_v17, 0.0  ;;  %v2478_v36 = vmax.f32 %v2414_v37, 0.0 }
 0x45c   : > { %v2483_v0 = vmax.f32 %v2419_v3, 0.0  ;;  %v2484_v40 = vmax.f32 %v2420_v47, 0.0  ;;  %v2479_v58 = vmax.f32 %v2415_v29, 0.0  ;;  %v2545_v35 = vmin.f32 %v2481_v15, 6.0 }
 0x45d   : > { %v2480_v18 = vmax.f32 %v2416_v11, 0.0  ;;  %v2546_v24 = vmin.f32 %v2482_v8, 6.0  ;;  %v2541_v1 = vmin.f32 %v2477_v30, 6.0  ;;  %v2542_v54 = vmin.f32 %v2478_v36, 6.0 }
 0x45e   : > { %v2547_v59 = vmin.f32 %v2483_v0, 6.0  ;;  %v2548_v20 = vmin.f32 %v2484_v40, 6.0  ;;  %v2543_v56 = vmin.f32 %v2479_v58, 6.0  ;;  %v2609_v26 = vmul.f32 %v2545_v35, %v2353_v6 }
 0x45f   : > { %v2544_v32 = vmin.f32 %v2480_v18, 6.0  ;;  %v2610_v25 = vmul.f32 %v2546_v24, %v2354_v45  ;;  %v2605_v34 = vmul.f32 %v2541_v1, %v2349_v43  ;;  %v2606_v2 = vmul.f32 %v2542_v54, %v2350_v21 }
 0x460   : > { %v2611_v4 = vmul.f32 %v2547_v59, %v2355_v19  ;;  %v2612_v16 = vmul.f32 %v2548_v20, %v2356_v46  ;;  %v2607_v10 = vmul.f32 %v2543_v56, %v2351_v41  ;;  %v2673_v5 = vmul.f32 0.16666667, %v2609_v26 }
 0x461   : > { %v2608_v14 = vmul.f32 %v2544_v32, %v2352_v33  ;;  %v2674_v51 = vmul.f32 0.16666667, %v2610_v25  ;;  %v2669_v12 = vmul.f32 0.16666667, %v2605_v34  ;;  %v2213_v9 = vmul.f32 %v5468_v44, %v5842_v39 }
 0x462   : > { %v2675_v55 = vmul.f32 0.16666667, %v2611_v4  ;;  %v2676_v13 = vmul.f32 0.16666667, %v2612_v16  ;;  %v2670_v28 = vmul.f32 0.16666667, %v2606_v2  ;;  %v2214_v48 = vmul.f32 %v5468_v44, %v5843_v62 }
 0x463   : > { %2737 = vst [vmem:[%s5259_s29 + $0x1c0] sm:$0xff] %v2673_v5  ;;  %2738 = vst [vmem:[%s5259_s29 + $0x1c8] sm:$0xff] %v2674_v51  ;;  %v2671_v49 = vmul.f32 0.16666667, %v2607_v10  ;;  %v2672_v53 = vmul.f32 0.16666667, %v2608_v14  ;;  %v2215_v7 = vmul.f32 %v5468_v44, %v5844_v42  ;;  %v2216_v31 = vmul.f32 %v5468_v44, %v5845_v50 }
 0x464   : > { %2733 = vst [vmem:[%s5259_s29 + $0x1a0] sm:$0xff] %v2669_v12  ;;  %2739 = vst [vmem:[%s5259_s29 + $0x1d0] sm:$0xff] %v2675_v55  ;;  %v2357_v23 = vadd.f32 %v2295_v38, %v2213_v9  ;;  %v2358_v63 = vadd.f32 %v2295_v38, %v2214_v48 }
 0x465   : > { %2740 = vst [vmem:[%s5259_s29 + $0x1d8] sm:$0xff] %v2676_v13  ;;  %2734 = vst [vmem:[%s5259_s29 + $0x1a8] sm:$0xff] %v2670_v28  ;;  %v2359_v27 = vadd.f32 %v2295_v38, %v2215_v7  ;;  %v2360_v22 = vadd.f32 %v2295_v38, %v2216_v31 }
 0x466   : > { %2735 = vst [vmem:[%s5259_s29 + $0x1b0] sm:$0xff] %v2671_v49  ;;  %2736 = vst [vmem:[%s5259_s29 + $0x1b8] sm:$0xff] %v2672_v53  ;;  %v2421_v57 = vadd.f32 3.0, %v2357_v23  ;;  %v2422_v61 = vadd.f32 3.0, %v2358_v63 }
 0x467   : > { %v2423_v6 = vadd.f32 3.0, %v2359_v27  ;;  %v2424_v45 = vadd.f32 3.0, %v2360_v22 }
 0x468   : > { %v2485_v43 = vmax.f32 %v2421_v57, 0.0  ;;  %v2486_v21 = vmax.f32 %v2422_v61, 0.0 }
 0x469   : > { %v2487_v19 = vmax.f32 %v2423_v6, 0.0  ;;  %v2488_v46 = vmax.f32 %v2424_v45, 0.0 }
 0x46a   : > { %v2549_v44 = vmin.f32 %v2485_v43, 6.0  ;;  %v2550_v41 = vmin.f32 %v2486_v21, 6.0 }
 0x46b   : > { %v2551_v33 = vmin.f32 %v2487_v19, 6.0  ;;  %v2552_v52 = vmin.f32 %v2488_v46, 6.0 }
 0x46c   : > { %v2613_v60 = vmul.f32 %v2549_v44, %v2357_v23  ;;  %v2614_v17 = vmul.f32 %v2550_v41, %v2358_v63 }
 0x46d   : > { %v2615_v37 = vmul.f32 %v2551_v33, %v2359_v27  ;;  %v2616_v3 = vmul.f32 %v2552_v52, %v2360_v22 }
 0x46e   : > { %v2677_v47 = vmul.f32 0.16666667, %v2613_v60  ;;  %v2678_v29 = vmul.f32 0.16666667, %v2614_v17 }
 0x46f   : > { %v2679_v11 = vmul.f32 0.16666667, %v2615_v37  ;;  %v2680_v15 = vmul.f32 0.16666667, %v2616_v3 }
 0x470   : > { %2741 = vst [vmem:[%s5259_s29 + $0x1e0] sm:$0xff] %v2677_v47  ;;  %2742 = vst [vmem:[%s5259_s29 + $0x1e8] sm:$0xff] %v2678_v29 }
 0x471   : > { %2743 = vst [vmem:[%s5259_s29 + $0x1f0] sm:$0xff] %v2679_v11  ;;  %2744 = vst [vmem:[%s5259_s29 + $0x1f8] sm:$0xff] %v2680_v15 }
 0x472   : > { %3565 = shalt.err (!%p3562_p7)
}
 0x473   : > { %s3566_s9 = scalar_lea.hbm %s5511_s17, 8192  ;;  %s3570_s15 = scalar_lea.hbm %s5568_s7, 16384 }
 0x474   : > { %p3567_p9 = scmp.ne.s32.totalorder %s5511_s17, %s3566_s9  ;;  %p3571_p5 = scmp.lt.u32.totalorder %s5511_s17, %s5568_s7 }
 0x475   : > { %p3572_p11 = scmp.lt.u32.totalorder %s3570_s15, %s3566_s9  ;;  %p3574_p4 = scmp.lt.u32.totalorder %s3566_s9, %s5511_s17 }
 0x476   : > { %p3568_p2 = pnand %p3567_p9, %p3766_p12 }
 0x477   : > { %p3573_p1 = por %p3572_p11, %p3571_p5 }
 0x478   : > { %p3569_p0 = pneg %p3568_p2 }
 0x479   : > { %p3575_p6 = por %p3574_p4, %p3573_p1 }
 0x47b   : > { %p3576_p8 = pnand %p3575_p6, %p3569_p0 }
 0x47d   : > { %3579 = shalt.err (!%p3576_p8)
}
 0x47e   : > { %s3633_s5 = smov 512   ;;  %s3634_s10 = smov 32  }
 0x47f   : > { %3145 = dma.vmem_to_hbm [thread:$0]  (%p3766_p12), %s5513_s14, 8192, %s5511_s17, %s2746_s28, %s3633_s5, %s3633_s5, %s3634_s10  }
 0x480 PF: > { %s2774_s12 = sand.u32 1, %s3610_s24   ;;  %p5846_p10 = scmp.ne.s32.totalorder %s5642_s8, 0 }
 0x481   : > { %p5847_p13 = scmp.ge.s32.totalorder %s3622_s27, 2  ;;  %s2775_s23 = scalar_lea.sflag [#allocation4], %s2774_s12 }
 0x483   : > { %p3156_p3 = pnand %p5847_p13, %p5846_p10 }
 0x485   : > { %3605 = dma.done.wait (!%p3156_p3), %s2775_s23, 8192  }
 0x486   : > { %3607 = vsyncadd (!%p3156_p3), %s2775_s23, 4294959104  ;;  %p21_p7 = scmp.ge.s32.totalorder %s3731_s13, 4   ;;  %s5848_s24 = smov %s3614_s25 }
 0x487   : > { %s5849_s25 = smov %s3618_s26  ;;  %s5850_s26 = smov %s3762_s18 }
 0x488   : > { %s5851_s27 = smov %s3731_s13  ;;  %23 = sbr.rel (!%p21_p7) target bundleno = 8 (0x8), region = 97 }
 0x48f   :  { %2780 = vsyncpa [#allocation3], 1 }
 0x490   :  { %2782 = vsyncpa [#allocation3 + $0x1], 1 }
 0x491   :  { %2783 = vsyncpa [#allocation6], 1 }
 0x492   :  { %2784 = vsyncpa [#allocation4], 1 }
 0x493   :  { %2786 = vsyncpa [#allocation4 + $0x1], 1 }

</bundles_post_ra>
